<compile_context>
chip_gen: v7x
topology: tpu7x:2x2x1
jax: 0.10.0
libtpu: 0.0.40
codegen_flags: <defaults>
</compile_context>

<pallas_src>
import jax
import jax.numpy as jnp
from jax.experimental import pallas as pl
from jax.experimental.pallas import tpu as pltpu

_EPS = 1e-5


# ----------------------------------------------------------------------------
# Fused Pallas kernel: entire forward pass, activations resident in VMEM/vregs.
# Per-grid-step: one sample, activations in [H*W, C] layout (pixels x channels).
# ----------------------------------------------------------------------------
def _fused_mobileface_kernel(
        x_ref,
        w1_ref, ba1_ref,
        w2_ref, ba2_ref,
        w3_ref, ba3_ref,
        w4_ref, ba4_ref,
        w5_ref, b5_ref,
        w6_ref, ba6_ref,
        wg_ref, w8_ref, bh_ref,
        o_ref,
        scr1, scr2):

    def mdot(a, b_ref):
        # bf16 MXU operands (weights pre-cast on host), f32 accumulation.
        return jnp.dot(a.astype(jnp.bfloat16), b_ref[...],
                       preferred_element_type=jnp.float32)

    def bias_prelu(z, ba_ref):
        # f32 epilogue: folded-BN bias + per-channel PReLU (VPU).
        y = z + ba_ref[0:1, :]
        return jnp.where(y >= 0.0, y, ba_ref[1:2, :] * y)

    def row_shift(x, off):
        # Shift pixel rows by `off` with zero fill (handles h-padding).
        hw, c = x.shape
        if off == 0:
            return x
        pad = jnp.zeros((abs(off), c), x.dtype)
        if off > 0:
            return jnp.concatenate([x[off:, :], pad], axis=0)
        return jnp.concatenate([pad, x[:hw + off, :]], axis=0)

    def taps3x3(x, w):
        # 9 zero-padded 3x3 stride-1 taps of x in [h*w, c] layout.
        hw, c = x.shape
        col = jax.lax.broadcasted_iota(jnp.int32, (hw, c), 0) % w
        keep_l = col != 0          # tap reads w-1 -> invalid at w == 0
        keep_r = col != (w - 1)    # tap reads w+1 -> invalid at w == W-1
        out = []
        for di in range(3):
            for dj in range(3):
                t = row_shift(x, (di - 1) * w + (dj - 1))
                if dj == 0:
                    t = jnp.where(keep_l, t, jnp.zeros_like(t))
                elif dj == 2:
                    t = jnp.where(keep_r, t, jnp.zeros_like(t))
                out.append(t)
        return out

    def dw3x3(x, wdw_ref, w):
        # Depthwise 3x3 s1 p1: weighted tap sum, pure VPU in f32.
        taps = taps3x3(x, w)
        wdw = wdw_ref[...]
        acc = taps[0] * wdw[0:1, :]                    # init with first tap
        for t in range(1, 9):
            acc = acc + taps[t] * wdw[t:t + 1, :]
        return acc

    # ---- conv1: 3x3 s2 p1, 3 -> 16 (+BN+PReLU), 16x16 -> 8x8 ----------------
    x = x_ref[0]                                       # (256, 3) f32
    patches = jnp.concatenate(taps3x3(x, 16), axis=1)  # (256, 27) patch tensor
    y = mdot(patches, w1_ref)                          # (256, 16) stride-1 conv
    # stride-2 decimation: even h via static slices, even w via a
    # sublane-strided VMEM read (w parity == row parity in [h*W+w, C] layout).
    scr1[...] = jnp.concatenate(
        [y[32 * i:32 * i + 16, :] for i in range(8)], axis=0)   # (128, 16)
    y = bias_prelu(scr1[pl.ds(0, 64, stride=2), :], ba1_ref)    # (64, 16)

    # ---- dw1: depthwise 3x3 s1 p1 (+BN+PReLU), 8x8x16 -----------------------
    y = bias_prelu(dw3x3(y, w2_ref, 8), ba2_ref)                # (64, 16)

    # ---- bottleneck expand: 1x1, 16 -> 32 (+BN+PReLU) ------------------------
    y = bias_prelu(mdot(y, w3_ref), ba3_ref)                    # (64, 32)

    # ---- bottleneck depthwise: 3x3 s2 p1 (+BN+PReLU), 8x8 -> 4x4 -------------
    y = dw3x3(y, w4_ref, 8)                                     # (64, 32) s1
    scr2[...] = jnp.concatenate(
        [y[16 * i:16 * i + 8, :] for i in range(4)], axis=0)    # (32, 32)
    y = bias_prelu(scr2[pl.ds(0, 16, stride=2), :], ba4_ref)    # (16, 32)

    # ---- bottleneck project: 1x1, 32 -> 16, linear (BN only) -----------------
    y = mdot(y, w5_ref) + b5_ref[...]                           # (16, 16)

    # ---- separable 1x1: 16 -> 64 (+BN+PReLU) ---------------------------------
    y = bias_prelu(mdot(y, w6_ref), ba6_ref)                    # (16, 64)

    # ---- GDConv (global 4x4 dw, linear) folded through the 64->128 head ------
    #   emb = sum_p (y_p * wg_p) @ W8 + (bg @ W8 + b8)   (bias folded on host)
    head = mdot(y * wg_ref[...], w8_ref)                        # (16, 128)
    emb = jnp.sum(head, axis=0, keepdims=True) + bh_ref[...]    # (1, 128)
    o_ref[0] = emb.astype(o_ref.dtype)                          # lane-dense


# ----------------------------------------------------------------------------
# Host-side packing: BN folding, bias/alpha packing, bf16 pre-cast.
# (Batch-size independent: no selection matrices any more.)
# ----------------------------------------------------------------------------
def _fold_bn(p):
    scale = p["gamma"] / jnp.sqrt(p["var"] + _EPS)
    bias = p["beta"] - p["mean"] * scale
    return scale, bias


def pack_params(params):
    p = params

    sc, b = _fold_bn(p["conv1"])
    w1 = (p["conv1"]["w"].reshape(9, 3, 16) * sc).reshape(27, 16)
    w1 = w1.astype(jnp.bfloat16)
    ba1 = jnp.stack([b, p["conv1"]["alpha"]])                  # (2, 16) f32

    sc, b = _fold_bn(p["dw1"])
    w2 = (p["dw1"]["w"].reshape(9, 16) * sc).astype(jnp.float32)
    ba2 = jnp.stack([b, p["dw1"]["alpha"]])

    sc, b = _fold_bn(p["b_expand"])
    w3 = (p["b_expand"]["w"].reshape(16, 32) * sc).astype(jnp.bfloat16)
    ba3 = jnp.stack([b, p["b_expand"]["alpha"]])

    sc, b = _fold_bn(p["b_dw"])
    w4 = (p["b_dw"]["w"].reshape(9, 32) * sc).astype(jnp.float32)
    ba4 = jnp.stack([b, p["b_dw"]["alpha"]])

    sc, b = _fold_bn(p["b_proj"])
    w5 = (p["b_proj"]["w"].reshape(32, 16) * sc).astype(jnp.bfloat16)
    b5 = b.reshape(1, 16)

    sc, b = _fold_bn(p["sep"])
    w6 = (p["sep"]["w"].reshape(16, 64) * sc).astype(jnp.bfloat16)
    ba6 = jnp.stack([b, p["sep"]["alpha"]])

    sc, bg = _fold_bn(p["gdconv"])
    wg = (p["gdconv"]["w"].reshape(16, 64) * sc).astype(jnp.float32)

    sc, b8 = _fold_bn(p["linear"])
    w8_f32 = p["linear"]["w"].reshape(64, 128) * sc
    b_head = (bg @ w8_f32 + b8).reshape(1, 128)   # GDConv bias folded into head
    w8 = w8_f32.astype(jnp.bfloat16)

    return (w1, ba1, w2, ba2, w3, ba3, w4, ba4,
            w5, b5, w6, ba6, wg, w8, b_head)


# ----------------------------------------------------------------------------
# Parameter construction (deterministic, synthetic)
# ----------------------------------------------------------------------------
def _bn_params(key, c):
    k1, k2, k3, k4 = jax.random.split(key, 4)
    return dict(
        gamma=1.0 + 0.1 * jax.random.normal(k1, (c,), jnp.float32),
        beta=0.05 * jax.random.normal(k2, (c,), jnp.float32),
        mean=0.05 * jax.random.normal(k3, (c,), jnp.float32),
        var=1.0 + 0.1 * jax.random.uniform(k4, (c,), jnp.float32),
    )


def _conv_block(key, kh, kw, cin, cout, linear=False):
    kw_, kb = jax.random.split(key)
    p = dict(w=0.1 * jax.random.normal(kw_, (kh, kw, cin, cout), jnp.float32))
    p.update(_bn_params(kb, cout))
    p["alpha"] = (jnp.ones((cout,), jnp.float32) if linear
                  else jnp.full((cout,), 0.25, jnp.float32))
    return p


def _dw_block(key, kh, kw, c, linear=False):
    kw_, kb = jax.random.split(key)
    p = dict(w=0.1 * jax.random.normal(kw_, (kh, kw, c), jnp.float32))
    p.update(_bn_params(kb, c))
    p["alpha"] = (jnp.ones((c,), jnp.float32) if linear
                  else jnp.full((c,), 0.25, jnp.float32))
    return p


def init_mobileface_params(key):
    ks = jax.random.split(key, 8)
    return dict(
        conv1=_conv_block(ks[0], 3, 3, 3, 16),           # 3x3 s2 -> 16
        dw1=_dw_block(ks[1], 3, 3, 16),                  # dw 3x3 s1
        b_expand=_conv_block(ks[2], 1, 1, 16, 32),       # 1x1 expand
        b_dw=_dw_block(ks[3], 3, 3, 32),                 # dw 3x3 s2
        b_proj=_conv_block(ks[4], 1, 1, 32, 16, linear=True),
        sep=_conv_block(ks[5], 1, 1, 16, 64),            # 1x1 sep
        gdconv=_dw_block(ks[6], 4, 4, 64, linear=True),  # global dw conv
        linear=_conv_block(ks[7], 1, 1, 64, 128, linear=True),
    )


# ----------------------------------------------------------------------------
# Forward pass: one pallas_call, batch tiled onto a "parallel" grid.
# ----------------------------------------------------------------------------
def _const_spec(shape):
    nd = len(shape)
    return pl.BlockSpec(shape, lambda i, _nd=nd: (0,) * _nd)


@jax.jit
def model_forward(packed, img_nchw):
    n, c, h, w = img_nchw.shape
    assert (c, h, w) == (3, 16, 16), "stand-in network expects 3x16x16 input"
    hw = h * w
    # NCHW -> per-sample [H*W, C] (pixel rows x channel lanes).
    # TODO(synk): this tiny layout op stays in XLA; folding it into the kernel
    # would need an in-kernel (H,W)->(H*W,1) relayout that Mosaic handles badly.
    x = jnp.transpose(img_nchw, (0, 2, 3, 1)).reshape(n, hw, c)
    x = x.astype(jnp.float32)

    in_specs = [pl.BlockSpec((1, hw, c), lambda i: (i, 0, 0))]
    in_specs += [_const_spec(op.shape) for op in packed]

    out = pl.pallas_call(
        _fused_mobileface_kernel,
        out_shape=jax.ShapeDtypeStruct((n, 1, 128), jnp.float32),
        grid_spec=pltpu.PrefetchScalarGridSpec(
            num_scalar_prefetch=0,
            grid=(n,),
            in_specs=in_specs,
            out_specs=pl.BlockSpec((1, 1, 128), lambda i: (i, 0, 0)),
            scratch_shapes=[pltpu.VMEM((128, 16), jnp.float32),   # conv1 decimate
                            pltpu.VMEM((32, 32), jnp.float32)],   # b_dw decimate
        ),
        compiler_params=pltpu.CompilerParams(
            dimension_semantics=("parallel",),
            vmem_limit_bytes=16 * 1024 * 1024,
        ),
    )(x, *packed)
    return out.reshape(n, 128)


if __name__ == "__main__":
    key = jax.random.PRNGKey(0)
    kp, kx = jax.random.split(key)
    params = init_mobileface_params(kp)
    packed = pack_params(params)
    img = jax.random.normal(kx, (2, 3, 16, 16), jnp.float32)  # NCHW input
    emb = model_forward(packed, img)
    jax.block_until_ready(emb)
    assert emb.shape == (2, 128) and emb.dtype == jnp.float32
    print("KERNEL_OK")
</pallas_src>

<mosaic_0001>
module attributes {stable_mosaic.version = 11 : i64} {
  func.func @_fused_mobileface_kernel(%arg0: i32, %arg1: memref<1x256x3xf32, #tpu.memory_space<vmem>>, %arg2: memref<27x16xbf16, #tpu.memory_space<vmem>>, %arg3: memref<2x16xf32, #tpu.memory_space<vmem>>, %arg4: memref<9x16xf32, #tpu.memory_space<vmem>>, %arg5: memref<2x16xf32, #tpu.memory_space<vmem>>, %arg6: memref<16x32xbf16, #tpu.memory_space<vmem>>, %arg7: memref<2x32xf32, #tpu.memory_space<vmem>>, %arg8: memref<9x32xf32, #tpu.memory_space<vmem>>, %arg9: memref<2x32xf32, #tpu.memory_space<vmem>>, %arg10: memref<32x16xbf16, #tpu.memory_space<vmem>>, %arg11: memref<1x16xf32, #tpu.memory_space<vmem>>, %arg12: memref<16x64xbf16, #tpu.memory_space<vmem>>, %arg13: memref<2x64xf32, #tpu.memory_space<vmem>>, %arg14: memref<16x64xf32, #tpu.memory_space<vmem>>, %arg15: memref<64x128xbf16, #tpu.memory_space<vmem>>, %arg16: memref<1x128xf32, #tpu.memory_space<vmem>>, %arg17: memref<1x1x128xf32, #tpu.memory_space<vmem>>, %arg18: memref<128x16xf32, #tpu.memory_space<vmem>>, %arg19: memref<32x32xf32, #tpu.memory_space<vmem>>) attributes {dimension_semantics = [#tpu.dimension_semantics<parallel>], iteration_bounds = array<i64: 2>, scalar_prefetch = 0 : i64, scratch_operands = 2 : i64, tpu.core_type = #tpu.core_type<tc>, window_params = [{transform_indices = @transform_0, window_bounds = array<i64: 1, 256, 3>}, {pipeline_mode = #tpu.pipeline_mode<synchronous>, transform_indices = @transform_1, window_bounds = array<i64: 27, 16>}, {pipeline_mode = #tpu.pipeline_mode<synchronous>, transform_indices = @transform_2, window_bounds = array<i64: 2, 16>}, {pipeline_mode = #tpu.pipeline_mode<synchronous>, transform_indices = @transform_3, window_bounds = array<i64: 9, 16>}, {pipeline_mode = #tpu.pipeline_mode<synchronous>, transform_indices = @transform_4, window_bounds = array<i64: 2, 16>}, {pipeline_mode = #tpu.pipeline_mode<synchronous>, transform_indices = @transform_5, window_bounds = array<i64: 16, 32>}, {pipeline_mode = #tpu.pipeline_mode<synchronous>, transform_indices = @transform_6, window_bounds = array<i64: 2, 32>}, {pipeline_mode = #tpu.pipeline_mode<synchronous>, transform_indices = @transform_7, window_bounds = array<i64: 9, 32>}, {pipeline_mode = #tpu.pipeline_mode<synchronous>, transform_indices = @transform_8, window_bounds = array<i64: 2, 32>}, {pipeline_mode = #tpu.pipeline_mode<synchronous>, transform_indices = @transform_9, window_bounds = array<i64: 32, 16>}, {pipeline_mode = #tpu.pipeline_mode<synchronous>, transform_indices = @transform_10, window_bounds = array<i64: 1, 16>}, {pipeline_mode = #tpu.pipeline_mode<synchronous>, transform_indices = @transform_11, window_bounds = array<i64: 16, 64>}, {pipeline_mode = #tpu.pipeline_mode<synchronous>, transform_indices = @transform_12, window_bounds = array<i64: 2, 64>}, {pipeline_mode = #tpu.pipeline_mode<synchronous>, transform_indices = @transform_13, window_bounds = array<i64: 16, 64>}, {pipeline_mode = #tpu.pipeline_mode<synchronous>, transform_indices = @transform_14, window_bounds = array<i64: 64, 128>}, {pipeline_mode = #tpu.pipeline_mode<synchronous>, transform_indices = @transform_15, window_bounds = array<i64: 1, 128>}, {transform_indices = @transform_16, window_bounds = array<i64: 1, 1, 128>}]} {
    %c0 = arith.constant 0 : index
    %c0_0 = arith.constant 0 : index
    %c0_1 = arith.constant 0 : index
    %0 = vector.load %arg1[%c0, %c0_0, %c0_1] : memref<1x256x3xf32, #tpu.memory_space<vmem>>, vector<1x256x3xf32>
    %1 = vector.shape_cast %0 : vector<1x256x3xf32> to vector<256x3xf32>
    %2 = tpu.iota {dimensions = array<i32: 0>} : vector<256x3xi32>
    %c16_i32 = arith.constant 16 : i32
    %c0_i32 = arith.constant 0 : i32
    %3 = arith.cmpi eq, %c16_i32, %c0_i32 : i32
    %c1_i32 = arith.constant 1 : i32
    %4 = arith.select %3, %c1_i32, %c16_i32 : i32
    %5 = vector.broadcast %4 : i32 to vector<256x3xi32>
    %6 = arith.remsi %2, %5 : vector<256x3xi32>
    %c0_i32_2 = arith.constant 0 : i32
    %7 = vector.broadcast %c0_i32_2 : i32 to vector<256x3xi32>
    %8 = arith.cmpi ne, %6, %7 : vector<256x3xi32>
    %c0_i32_3 = arith.constant 0 : i32
    %9 = vector.broadcast %c0_i32_3 : i32 to vector<256x3xi32>
    %10 = arith.cmpi slt, %6, %9 : vector<256x3xi32>
    %c0_i32_4 = arith.constant 0 : i32
    %11 = arith.cmpi slt, %4, %c0_i32_4 : i32
    %12 = vector.broadcast %11 : i1 to vector<256x3xi1>
    %13 = vector.broadcast %12 : vector<256x3xi1> to vector<256x3xi1>
    %14 = arith.xori %10, %13 : vector<256x3xi1>
    %15 = arith.andi %14, %8 : vector<256x3xi1>
    %16 = vector.broadcast %4 : i32 to vector<256x3xi32>
    %17 = arith.addi %6, %16 : vector<256x3xi32>
    %18 = arith.select %15, %17, %6 : vector<256x3xi1>, vector<256x3xi32>
    %c0_i32_5 = arith.constant 0 : i32
    %19 = vector.broadcast %c0_i32_5 : i32 to vector<256x3xi32>
    %20 = arith.cmpi ne, %18, %19 : vector<256x3xi32>
    %c15_i32 = arith.constant 15 : i32
    %21 = vector.broadcast %c15_i32 : i32 to vector<256x3xi32>
    %22 = arith.cmpi ne, %18, %21 : vector<256x3xi32>
    %cst = arith.constant 0.000000e+00 : f32
    %23 = vector.broadcast %cst : f32 to vector<17x3xf32>
    %24 = vector.extract_strided_slice %1 {offsets = [0, 0], sizes = [239, 3], strides = [1, 1]} : vector<256x3xf32> to vector<239x3xf32>
    %25 = tpu.concatenate %23, %24 in 0 : vector<17x3xf32>, vector<239x3xf32> -> vector<256x3xf32>
    %cst_6 = arith.constant 0.000000e+00 : f32
    %26 = vector.broadcast %cst_6 : f32 to vector<256x3xf32>
    %27 = arith.select %20, %25, %26 : vector<256x3xi1>, vector<256x3xf32>
    %cst_7 = arith.constant 0.000000e+00 : f32
    %28 = vector.broadcast %cst_7 : f32 to vector<16x3xf32>
    %29 = vector.extract_strided_slice %1 {offsets = [0, 0], sizes = [240, 3], strides = [1, 1]} : vector<256x3xf32> to vector<240x3xf32>
    %30 = tpu.concatenate %28, %29 in 0 : vector<16x3xf32>, vector<240x3xf32> -> vector<256x3xf32>
    %cst_8 = arith.constant 0.000000e+00 : f32
    %31 = vector.broadcast %cst_8 : f32 to vector<15x3xf32>
    %32 = vector.extract_strided_slice %1 {offsets = [0, 0], sizes = [241, 3], strides = [1, 1]} : vector<256x3xf32> to vector<241x3xf32>
    %33 = tpu.concatenate %31, %32 in 0 : vector<15x3xf32>, vector<241x3xf32> -> vector<256x3xf32>
    %cst_9 = arith.constant 0.000000e+00 : f32
    %34 = vector.broadcast %cst_9 : f32 to vector<256x3xf32>
    %35 = arith.select %22, %33, %34 : vector<256x3xi1>, vector<256x3xf32>
    %cst_10 = arith.constant 0.000000e+00 : f32
    %36 = vector.broadcast %cst_10 : f32 to vector<1x3xf32>
    %37 = vector.extract_strided_slice %1 {offsets = [0, 0], sizes = [255, 3], strides = [1, 1]} : vector<256x3xf32> to vector<255x3xf32>
    %38 = tpu.concatenate %36, %37 in 0 : vector<1x3xf32>, vector<255x3xf32> -> vector<256x3xf32>
    %cst_11 = arith.constant 0.000000e+00 : f32
    %39 = vector.broadcast %cst_11 : f32 to vector<256x3xf32>
    %40 = arith.select %20, %38, %39 : vector<256x3xi1>, vector<256x3xf32>
    %cst_12 = arith.constant 0.000000e+00 : f32
    %41 = vector.broadcast %cst_12 : f32 to vector<1x3xf32>
    %42 = vector.extract_strided_slice %1 {offsets = [1, 0], sizes = [255, 3], strides = [1, 1]} : vector<256x3xf32> to vector<255x3xf32>
    %43 = tpu.concatenate %42, %41 in 0 : vector<255x3xf32>, vector<1x3xf32> -> vector<256x3xf32>
    %cst_13 = arith.constant 0.000000e+00 : f32
    %44 = vector.broadcast %cst_13 : f32 to vector<256x3xf32>
    %45 = arith.select %22, %43, %44 : vector<256x3xi1>, vector<256x3xf32>
    %cst_14 = arith.constant 0.000000e+00 : f32
    %46 = vector.broadcast %cst_14 : f32 to vector<15x3xf32>
    %47 = vector.extract_strided_slice %1 {offsets = [15, 0], sizes = [241, 3], strides = [1, 1]} : vector<256x3xf32> to vector<241x3xf32>
    %48 = tpu.concatenate %47, %46 in 0 : vector<241x3xf32>, vector<15x3xf32> -> vector<256x3xf32>
    %cst_15 = arith.constant 0.000000e+00 : f32
    %49 = vector.broadcast %cst_15 : f32 to vector<256x3xf32>
    %50 = arith.select %20, %48, %49 : vector<256x3xi1>, vector<256x3xf32>
    %cst_16 = arith.constant 0.000000e+00 : f32
    %51 = vector.broadcast %cst_16 : f32 to vector<16x3xf32>
    %52 = vector.extract_strided_slice %1 {offsets = [16, 0], sizes = [240, 3], strides = [1, 1]} : vector<256x3xf32> to vector<240x3xf32>
    %53 = tpu.concatenate %52, %51 in 0 : vector<240x3xf32>, vector<16x3xf32> -> vector<256x3xf32>
    %cst_17 = arith.constant 0.000000e+00 : f32
    %54 = vector.broadcast %cst_17 : f32 to vector<17x3xf32>
    %55 = vector.extract_strided_slice %1 {offsets = [17, 0], sizes = [239, 3], strides = [1, 1]} : vector<256x3xf32> to vector<239x3xf32>
    %56 = tpu.concatenate %55, %54 in 0 : vector<239x3xf32>, vector<17x3xf32> -> vector<256x3xf32>
    %cst_18 = arith.constant 0.000000e+00 : f32
    %57 = vector.broadcast %cst_18 : f32 to vector<256x3xf32>
    %58 = arith.select %22, %56, %57 : vector<256x3xi1>, vector<256x3xf32>
    %59 = tpu.concatenate %27, %30, %35, %40, %1, %45, %50, %53, %58 in 1 : vector<256x3xf32>, vector<256x3xf32>, vector<256x3xf32>, vector<256x3xf32>, vector<256x3xf32>, vector<256x3xf32>, vector<256x3xf32>, vector<256x3xf32>, vector<256x3xf32> -> vector<256x27xf32>
    %60 = arith.truncf %59 : vector<256x27xf32> to vector<256x27xbf16>
    %c0_19 = arith.constant 0 : index
    %c0_20 = arith.constant 0 : index
    %61 = vector.load %arg2[%c0_19, %c0_20] : memref<27x16xbf16, #tpu.memory_space<vmem>>, vector<27x16xbf16>
    %cst_21 = arith.constant dense<0.000000e+00> : vector<256x16xf32>
    %62 = tpu.matmul %60, %61, %cst_21 {dimension_numbers = #tpu.dot_dimension_numbers<[1], [0], [0], [1], [0, 0, 1, 1], [], []>} : vector<256x27xbf16>, vector<27x16xbf16>, vector<256x16xf32> -> vector<256x16xf32>
    %63 = vector.extract_strided_slice %62 {offsets = [0, 0], sizes = [16, 16], strides = [1, 1]} : vector<256x16xf32> to vector<16x16xf32>
    %64 = vector.extract_strided_slice %62 {offsets = [32, 0], sizes = [16, 16], strides = [1, 1]} : vector<256x16xf32> to vector<16x16xf32>
    %65 = vector.extract_strided_slice %62 {offsets = [64, 0], sizes = [16, 16], strides = [1, 1]} : vector<256x16xf32> to vector<16x16xf32>
    %66 = vector.extract_strided_slice %62 {offsets = [96, 0], sizes = [16, 16], strides = [1, 1]} : vector<256x16xf32> to vector<16x16xf32>
    %67 = vector.extract_strided_slice %62 {offsets = [128, 0], sizes = [16, 16], strides = [1, 1]} : vector<256x16xf32> to vector<16x16xf32>
    %68 = vector.extract_strided_slice %62 {offsets = [160, 0], sizes = [16, 16], strides = [1, 1]} : vector<256x16xf32> to vector<16x16xf32>
    %69 = vector.extract_strided_slice %62 {offsets = [192, 0], sizes = [16, 16], strides = [1, 1]} : vector<256x16xf32> to vector<16x16xf32>
    %70 = vector.extract_strided_slice %62 {offsets = [224, 0], sizes = [16, 16], strides = [1, 1]} : vector<256x16xf32> to vector<16x16xf32>
    %71 = tpu.concatenate %63, %64, %65, %66, %67, %68, %69, %70 in 0 : vector<16x16xf32>, vector<16x16xf32>, vector<16x16xf32>, vector<16x16xf32>, vector<16x16xf32>, vector<16x16xf32>, vector<16x16xf32>, vector<16x16xf32> -> vector<128x16xf32>
    %c0_22 = arith.constant 0 : index
    %c0_23 = arith.constant 0 : index
    %72 = vector.load %arg18[%c0_22, %c0_23] : memref<128x16xf32, #tpu.memory_space<vmem>>, vector<128x16xf32>
    tpu.vector_store %arg18[%c0_22, %c0_23], %71 {strides = array<i32>} : memref<128x16xf32, #tpu.memory_space<vmem>>, vector<128x16xf32>,
    %c0_24 = arith.constant 0 : index
    %c0_25 = arith.constant 0 : index
    %73 = tpu.strided_load %arg18[%c0_24, %c0_25] {strides = array<i32: 2, 1>} : memref<128x16xf32, #tpu.memory_space<vmem>>, vector<64x16xf32>
    %c0_26 = arith.constant 0 : index
    %c0_27 = arith.constant 0 : index
    %74 = vector.load %arg3[%c0_26, %c0_27] : memref<2x16xf32, #tpu.memory_space<vmem>>, vector<1x16xf32>
    %75 = vector.broadcast %74 : vector<1x16xf32> to vector<64x16xf32>
    %76 = arith.addf %73, %75 : vector<64x16xf32>
    %cst_28 = arith.constant 0.000000e+00 : f32
    %77 = vector.broadcast %cst_28 : f32 to vector<64x16xf32>
    %78 = arith.cmpf oge, %76, %77 : vector<64x16xf32>
    %c1 = arith.constant 1 : index
    %c0_29 = arith.constant 0 : index
    %79 = vector.load %arg3[%c1, %c0_29] : memref<2x16xf32, #tpu.memory_space<vmem>>, vector<1x16xf32>
    %80 = vector.broadcast %79 : vector<1x16xf32> to vector<64x16xf32>
    %81 = arith.mulf %80, %76 : vector<64x16xf32>
    %82 = arith.select %78, %76, %81 : vector<64x16xi1>, vector<64x16xf32>
    %83 = tpu.iota {dimensions = array<i32: 0>} : vector<64x16xi32>
    %c8_i32 = arith.constant 8 : i32
    %c0_i32_30 = arith.constant 0 : i32
    %84 = arith.cmpi eq, %c8_i32, %c0_i32_30 : i32
    %c1_i32_31 = arith.constant 1 : i32
    %85 = arith.select %84, %c1_i32_31, %c8_i32 : i32
    %86 = vector.broadcast %85 : i32 to vector<64x16xi32>
    %87 = arith.remsi %83, %86 : vector<64x16xi32>
    %c0_i32_32 = arith.constant 0 : i32
    %88 = vector.broadcast %c0_i32_32 : i32 to vector<64x16xi32>
    %89 = arith.cmpi ne, %87, %88 : vector<64x16xi32>
    %c0_i32_33 = arith.constant 0 : i32
    %90 = vector.broadcast %c0_i32_33 : i32 to vector<64x16xi32>
    %91 = arith.cmpi slt, %87, %90 : vector<64x16xi32>
    %c0_i32_34 = arith.constant 0 : i32
    %92 = arith.cmpi slt, %85, %c0_i32_34 : i32
    %93 = vector.broadcast %92 : i1 to vector<64x16xi1>
    %94 = vector.broadcast %93 : vector<64x16xi1> to vector<64x16xi1>
    %95 = arith.xori %91, %94 : vector<64x16xi1>
    %96 = arith.andi %95, %89 : vector<64x16xi1>
    %97 = vector.broadcast %85 : i32 to vector<64x16xi32>
    %98 = arith.addi %87, %97 : vector<64x16xi32>
    %99 = arith.select %96, %98, %87 : vector<64x16xi1>, vector<64x16xi32>
    %c0_i32_35 = arith.constant 0 : i32
    %100 = vector.broadcast %c0_i32_35 : i32 to vector<64x16xi32>
    %101 = arith.cmpi ne, %99, %100 : vector<64x16xi32>
    %c7_i32 = arith.constant 7 : i32
    %102 = vector.broadcast %c7_i32 : i32 to vector<64x16xi32>
    %103 = arith.cmpi ne, %99, %102 : vector<64x16xi32>
    %cst_36 = arith.constant 0.000000e+00 : f32
    %104 = vector.broadcast %cst_36 : f32 to vector<9x16xf32>
    %105 = vector.extract_strided_slice %82 {offsets = [0, 0], sizes = [55, 16], strides = [1, 1]} : vector<64x16xf32> to vector<55x16xf32>
    %106 = tpu.concatenate %104, %105 in 0 : vector<9x16xf32>, vector<55x16xf32> -> vector<64x16xf32>
    %cst_37 = arith.constant 0.000000e+00 : f32
    %107 = vector.broadcast %cst_37 : f32 to vector<64x16xf32>
    %108 = arith.select %101, %106, %107 : vector<64x16xi1>, vector<64x16xf32>
    %cst_38 = arith.constant 0.000000e+00 : f32
    %109 = vector.broadcast %cst_38 : f32 to vector<8x16xf32>
    %110 = vector.extract_strided_slice %82 {offsets = [0, 0], sizes = [56, 16], strides = [1, 1]} : vector<64x16xf32> to vector<56x16xf32>
    %111 = tpu.concatenate %109, %110 in 0 : vector<8x16xf32>, vector<56x16xf32> -> vector<64x16xf32>
    %cst_39 = arith.constant 0.000000e+00 : f32
    %112 = vector.broadcast %cst_39 : f32 to vector<7x16xf32>
    %113 = vector.extract_strided_slice %82 {offsets = [0, 0], sizes = [57, 16], strides = [1, 1]} : vector<64x16xf32> to vector<57x16xf32>
    %114 = tpu.concatenate %112, %113 in 0 : vector<7x16xf32>, vector<57x16xf32> -> vector<64x16xf32>
    %cst_40 = arith.constant 0.000000e+00 : f32
    %115 = vector.broadcast %cst_40 : f32 to vector<64x16xf32>
    %116 = arith.select %103, %114, %115 : vector<64x16xi1>, vector<64x16xf32>
    %cst_41 = arith.constant 0.000000e+00 : f32
    %117 = vector.broadcast %cst_41 : f32 to vector<1x16xf32>
    %118 = vector.extract_strided_slice %82 {offsets = [0, 0], sizes = [63, 16], strides = [1, 1]} : vector<64x16xf32> to vector<63x16xf32>
    %119 = tpu.concatenate %117, %118 in 0 : vector<1x16xf32>, vector<63x16xf32> -> vector<64x16xf32>
    %cst_42 = arith.constant 0.000000e+00 : f32
    %120 = vector.broadcast %cst_42 : f32 to vector<64x16xf32>
    %121 = arith.select %101, %119, %120 : vector<64x16xi1>, vector<64x16xf32>
    %cst_43 = arith.constant 0.000000e+00 : f32
    %122 = vector.broadcast %cst_43 : f32 to vector<1x16xf32>
    %123 = vector.extract_strided_slice %82 {offsets = [1, 0], sizes = [63, 16], strides = [1, 1]} : vector<64x16xf32> to vector<63x16xf32>
    %124 = tpu.concatenate %123, %122 in 0 : vector<63x16xf32>, vector<1x16xf32> -> vector<64x16xf32>
    %cst_44 = arith.constant 0.000000e+00 : f32
    %125 = vector.broadcast %cst_44 : f32 to vector<64x16xf32>
    %126 = arith.select %103, %124, %125 : vector<64x16xi1>, vector<64x16xf32>
    %cst_45 = arith.constant 0.000000e+00 : f32
    %127 = vector.broadcast %cst_45 : f32 to vector<7x16xf32>
    %128 = vector.extract_strided_slice %82 {offsets = [7, 0], sizes = [57, 16], strides = [1, 1]} : vector<64x16xf32> to vector<57x16xf32>
    %129 = tpu.concatenate %128, %127 in 0 : vector<57x16xf32>, vector<7x16xf32> -> vector<64x16xf32>
    %cst_46 = arith.constant 0.000000e+00 : f32
    %130 = vector.broadcast %cst_46 : f32 to vector<64x16xf32>
    %131 = arith.select %101, %129, %130 : vector<64x16xi1>, vector<64x16xf32>
    %cst_47 = arith.constant 0.000000e+00 : f32
    %132 = vector.broadcast %cst_47 : f32 to vector<8x16xf32>
    %133 = vector.extract_strided_slice %82 {offsets = [8, 0], sizes = [56, 16], strides = [1, 1]} : vector<64x16xf32> to vector<56x16xf32>
    %134 = tpu.concatenate %133, %132 in 0 : vector<56x16xf32>, vector<8x16xf32> -> vector<64x16xf32>
    %cst_48 = arith.constant 0.000000e+00 : f32
    %135 = vector.broadcast %cst_48 : f32 to vector<9x16xf32>
    %136 = vector.extract_strided_slice %82 {offsets = [9, 0], sizes = [55, 16], strides = [1, 1]} : vector<64x16xf32> to vector<55x16xf32>
    %137 = tpu.concatenate %136, %135 in 0 : vector<55x16xf32>, vector<9x16xf32> -> vector<64x16xf32>
    %cst_49 = arith.constant 0.000000e+00 : f32
    %138 = vector.broadcast %cst_49 : f32 to vector<64x16xf32>
    %139 = arith.select %103, %137, %138 : vector<64x16xi1>, vector<64x16xf32>
    %c0_50 = arith.constant 0 : index
    %c0_51 = arith.constant 0 : index
    %140 = vector.load %arg4[%c0_50, %c0_51] : memref<9x16xf32, #tpu.memory_space<vmem>>, vector<9x16xf32>
    %141 = vector.extract_strided_slice %140 {offsets = [0, 0], sizes = [1, 16], strides = [1, 1]} : vector<9x16xf32> to vector<1x16xf32>
    %142 = vector.broadcast %141 : vector<1x16xf32> to vector<64x16xf32>
    %143 = arith.mulf %108, %142 : vector<64x16xf32>
    %144 = vector.extract_strided_slice %140 {offsets = [1, 0], sizes = [1, 16], strides = [1, 1]} : vector<9x16xf32> to vector<1x16xf32>
    %145 = vector.broadcast %144 : vector<1x16xf32> to vector<64x16xf32>
    %146 = arith.mulf %111, %145 : vector<64x16xf32>
    %147 = arith.addf %143, %146 : vector<64x16xf32>
    %148 = vector.extract_strided_slice %140 {offsets = [2, 0], sizes = [1, 16], strides = [1, 1]} : vector<9x16xf32> to vector<1x16xf32>
    %149 = vector.broadcast %148 : vector<1x16xf32> to vector<64x16xf32>
    %150 = arith.mulf %116, %149 : vector<64x16xf32>
    %151 = arith.addf %147, %150 : vector<64x16xf32>
    %152 = vector.extract_strided_slice %140 {offsets = [3, 0], sizes = [1, 16], strides = [1, 1]} : vector<9x16xf32> to vector<1x16xf32>
    %153 = vector.broadcast %152 : vector<1x16xf32> to vector<64x16xf32>
    %154 = arith.mulf %121, %153 : vector<64x16xf32>
    %155 = arith.addf %151, %154 : vector<64x16xf32>
    %156 = vector.extract_strided_slice %140 {offsets = [4, 0], sizes = [1, 16], strides = [1, 1]} : vector<9x16xf32> to vector<1x16xf32>
    %157 = vector.broadcast %156 : vector<1x16xf32> to vector<64x16xf32>
    %158 = arith.mulf %82, %157 : vector<64x16xf32>
    %159 = arith.addf %155, %158 : vector<64x16xf32>
    %160 = vector.extract_strided_slice %140 {offsets = [5, 0], sizes = [1, 16], strides = [1, 1]} : vector<9x16xf32> to vector<1x16xf32>
    %161 = vector.broadcast %160 : vector<1x16xf32> to vector<64x16xf32>
    %162 = arith.mulf %126, %161 : vector<64x16xf32>
    %163 = arith.addf %159, %162 : vector<64x16xf32>
    %164 = vector.extract_strided_slice %140 {offsets = [6, 0], sizes = [1, 16], strides = [1, 1]} : vector<9x16xf32> to vector<1x16xf32>
    %165 = vector.broadcast %164 : vector<1x16xf32> to vector<64x16xf32>
    %166 = arith.mulf %131, %165 : vector<64x16xf32>
    %167 = arith.addf %163, %166 : vector<64x16xf32>
    %168 = vector.extract_strided_slice %140 {offsets = [7, 0], sizes = [1, 16], strides = [1, 1]} : vector<9x16xf32> to vector<1x16xf32>
    %169 = vector.broadcast %168 : vector<1x16xf32> to vector<64x16xf32>
    %170 = arith.mulf %134, %169 : vector<64x16xf32>
    %171 = arith.addf %167, %170 : vector<64x16xf32>
    %172 = vector.extract_strided_slice %140 {offsets = [8, 0], sizes = [1, 16], strides = [1, 1]} : vector<9x16xf32> to vector<1x16xf32>
    %173 = vector.broadcast %172 : vector<1x16xf32> to vector<64x16xf32>
    %174 = arith.mulf %139, %173 : vector<64x16xf32>
    %175 = arith.addf %171, %174 : vector<64x16xf32>
    %c0_52 = arith.constant 0 : index
    %c0_53 = arith.constant 0 : index
    %176 = vector.load %arg5[%c0_52, %c0_53] : memref<2x16xf32, #tpu.memory_space<vmem>>, vector<1x16xf32>
    %177 = vector.broadcast %176 : vector<1x16xf32> to vector<64x16xf32>
    %178 = arith.addf %175, %177 : vector<64x16xf32>
    %cst_54 = arith.constant 0.000000e+00 : f32
    %179 = vector.broadcast %cst_54 : f32 to vector<64x16xf32>
    %180 = arith.cmpf oge, %178, %179 : vector<64x16xf32>
    %c1_55 = arith.constant 1 : index
    %c0_56 = arith.constant 0 : index
    %181 = vector.load %arg5[%c1_55, %c0_56] : memref<2x16xf32, #tpu.memory_space<vmem>>, vector<1x16xf32>
    %182 = vector.broadcast %181 : vector<1x16xf32> to vector<64x16xf32>
    %183 = arith.mulf %182, %178 : vector<64x16xf32>
    %184 = arith.select %180, %178, %183 : vector<64x16xi1>, vector<64x16xf32>
    %185 = arith.truncf %184 : vector<64x16xf32> to vector<64x16xbf16>
    %c0_57 = arith.constant 0 : index
    %c0_58 = arith.constant 0 : index
    %186 = vector.load %arg6[%c0_57, %c0_58] : memref<16x32xbf16, #tpu.memory_space<vmem>>, vector<16x32xbf16>
    %cst_59 = arith.constant dense<0.000000e+00> : vector<64x32xf32>
    %187 = tpu.matmul %185, %186, %cst_59 {dimension_numbers = #tpu.dot_dimension_numbers<[1], [0], [0], [1], [0, 0, 1, 1], [], []>} : vector<64x16xbf16>, vector<16x32xbf16>, vector<64x32xf32> -> vector<64x32xf32>
    %c0_60 = arith.constant 0 : index
    %c0_61 = arith.constant 0 : index
    %188 = vector.load %arg7[%c0_60, %c0_61] : memref<2x32xf32, #tpu.memory_space<vmem>>, vector<1x32xf32>
    %189 = vector.broadcast %188 : vector<1x32xf32> to vector<64x32xf32>
    %190 = arith.addf %187, %189 : vector<64x32xf32>
    %cst_62 = arith.constant 0.000000e+00 : f32
    %191 = vector.broadcast %cst_62 : f32 to vector<64x32xf32>
    %192 = arith.cmpf oge, %190, %191 : vector<64x32xf32>
    %c1_63 = arith.constant 1 : index
    %c0_64 = arith.constant 0 : index
    %193 = vector.load %arg7[%c1_63, %c0_64] : memref<2x32xf32, #tpu.memory_space<vmem>>, vector<1x32xf32>
    %194 = vector.broadcast %193 : vector<1x32xf32> to vector<64x32xf32>
    %195 = arith.mulf %194, %190 : vector<64x32xf32>
    %196 = arith.select %192, %190, %195 : vector<64x32xi1>, vector<64x32xf32>
    %197 = tpu.iota {dimensions = array<i32: 0>} : vector<64x32xi32>
    %c8_i32_65 = arith.constant 8 : i32
    %c0_i32_66 = arith.constant 0 : i32
    %198 = arith.cmpi eq, %c8_i32_65, %c0_i32_66 : i32
    %c1_i32_67 = arith.constant 1 : i32
    %199 = arith.select %198, %c1_i32_67, %c8_i32_65 : i32
    %200 = vector.broadcast %199 : i32 to vector<64x32xi32>
    %201 = arith.remsi %197, %200 : vector<64x32xi32>
    %c0_i32_68 = arith.constant 0 : i32
    %202 = vector.broadcast %c0_i32_68 : i32 to vector<64x32xi32>
    %203 = arith.cmpi ne, %201, %202 : vector<64x32xi32>
    %c0_i32_69 = arith.constant 0 : i32
    %204 = vector.broadcast %c0_i32_69 : i32 to vector<64x32xi32>
    %205 = arith.cmpi slt, %201, %204 : vector<64x32xi32>
    %c0_i32_70 = arith.constant 0 : i32
    %206 = arith.cmpi slt, %199, %c0_i32_70 : i32
    %207 = vector.broadcast %206 : i1 to vector<64x32xi1>
    %208 = vector.broadcast %207 : vector<64x32xi1> to vector<64x32xi1>
    %209 = arith.xori %205, %208 : vector<64x32xi1>
    %210 = arith.andi %209, %203 : vector<64x32xi1>
    %211 = vector.broadcast %199 : i32 to vector<64x32xi32>
    %212 = arith.addi %201, %211 : vector<64x32xi32>
    %213 = arith.select %210, %212, %201 : vector<64x32xi1>, vector<64x32xi32>
    %c0_i32_71 = arith.constant 0 : i32
    %214 = vector.broadcast %c0_i32_71 : i32 to vector<64x32xi32>
    %215 = arith.cmpi ne, %213, %214 : vector<64x32xi32>
    %c7_i32_72 = arith.constant 7 : i32
    %216 = vector.broadcast %c7_i32_72 : i32 to vector<64x32xi32>
    %217 = arith.cmpi ne, %213, %216 : vector<64x32xi32>
    %cst_73 = arith.constant 0.000000e+00 : f32
    %218 = vector.broadcast %cst_73 : f32 to vector<9x32xf32>
    %219 = vector.extract_strided_slice %196 {offsets = [0, 0], sizes = [55, 32], strides = [1, 1]} : vector<64x32xf32> to vector<55x32xf32>
    %220 = tpu.concatenate %218, %219 in 0 : vector<9x32xf32>, vector<55x32xf32> -> vector<64x32xf32>
    %cst_74 = arith.constant 0.000000e+00 : f32
    %221 = vector.broadcast %cst_74 : f32 to vector<64x32xf32>
    %222 = arith.select %215, %220, %221 : vector<64x32xi1>, vector<64x32xf32>
    %cst_75 = arith.constant 0.000000e+00 : f32
    %223 = vector.broadcast %cst_75 : f32 to vector<8x32xf32>
    %224 = vector.extract_strided_slice %196 {offsets = [0, 0], sizes = [56, 32], strides = [1, 1]} : vector<64x32xf32> to vector<56x32xf32>
    %225 = tpu.concatenate %223, %224 in 0 : vector<8x32xf32>, vector<56x32xf32> -> vector<64x32xf32>
    %cst_76 = arith.constant 0.000000e+00 : f32
    %226 = vector.broadcast %cst_76 : f32 to vector<7x32xf32>
    %227 = vector.extract_strided_slice %196 {offsets = [0, 0], sizes = [57, 32], strides = [1, 1]} : vector<64x32xf32> to vector<57x32xf32>
    %228 = tpu.concatenate %226, %227 in 0 : vector<7x32xf32>, vector<57x32xf32> -> vector<64x32xf32>
    %cst_77 = arith.constant 0.000000e+00 : f32
    %229 = vector.broadcast %cst_77 : f32 to vector<64x32xf32>
    %230 = arith.select %217, %228, %229 : vector<64x32xi1>, vector<64x32xf32>
    %cst_78 = arith.constant 0.000000e+00 : f32
    %231 = vector.broadcast %cst_78 : f32 to vector<1x32xf32>
    %232 = vector.extract_strided_slice %196 {offsets = [0, 0], sizes = [63, 32], strides = [1, 1]} : vector<64x32xf32> to vector<63x32xf32>
    %233 = tpu.concatenate %231, %232 in 0 : vector<1x32xf32>, vector<63x32xf32> -> vector<64x32xf32>
    %cst_79 = arith.constant 0.000000e+00 : f32
    %234 = vector.broadcast %cst_79 : f32 to vector<64x32xf32>
    %235 = arith.select %215, %233, %234 : vector<64x32xi1>, vector<64x32xf32>
    %cst_80 = arith.constant 0.000000e+00 : f32
    %236 = vector.broadcast %cst_80 : f32 to vector<1x32xf32>
    %237 = vector.extract_strided_slice %196 {offsets = [1, 0], sizes = [63, 32], strides = [1, 1]} : vector<64x32xf32> to vector<63x32xf32>
    %238 = tpu.concatenate %237, %236 in 0 : vector<63x32xf32>, vector<1x32xf32> -> vector<64x32xf32>
    %cst_81 = arith.constant 0.000000e+00 : f32
    %239 = vector.broadcast %cst_81 : f32 to vector<64x32xf32>
    %240 = arith.select %217, %238, %239 : vector<64x32xi1>, vector<64x32xf32>
    %cst_82 = arith.constant 0.000000e+00 : f32
    %241 = vector.broadcast %cst_82 : f32 to vector<7x32xf32>
    %242 = vector.extract_strided_slice %196 {offsets = [7, 0], sizes = [57, 32], strides = [1, 1]} : vector<64x32xf32> to vector<57x32xf32>
    %243 = tpu.concatenate %242, %241 in 0 : vector<57x32xf32>, vector<7x32xf32> -> vector<64x32xf32>
    %cst_83 = arith.constant 0.000000e+00 : f32
    %244 = vector.broadcast %cst_83 : f32 to vector<64x32xf32>
    %245 = arith.select %215, %243, %244 : vector<64x32xi1>, vector<64x32xf32>
    %cst_84 = arith.constant 0.000000e+00 : f32
    %246 = vector.broadcast %cst_84 : f32 to vector<8x32xf32>
    %247 = vector.extract_strided_slice %196 {offsets = [8, 0], sizes = [56, 32], strides = [1, 1]} : vector<64x32xf32> to vector<56x32xf32>
    %248 = tpu.concatenate %247, %246 in 0 : vector<56x32xf32>, vector<8x32xf32> -> vector<64x32xf32>
    %cst_85 = arith.constant 0.000000e+00 : f32
    %249 = vector.broadcast %cst_85 : f32 to vector<9x32xf32>
    %250 = vector.extract_strided_slice %196 {offsets = [9, 0], sizes = [55, 32], strides = [1, 1]} : vector<64x32xf32> to vector<55x32xf32>
    %251 = tpu.concatenate %250, %249 in 0 : vector<55x32xf32>, vector<9x32xf32> -> vector<64x32xf32>
    %cst_86 = arith.constant 0.000000e+00 : f32
    %252 = vector.broadcast %cst_86 : f32 to vector<64x32xf32>
    %253 = arith.select %217, %251, %252 : vector<64x32xi1>, vector<64x32xf32>
    %c0_87 = arith.constant 0 : index
    %c0_88 = arith.constant 0 : index
    %254 = vector.load %arg8[%c0_87, %c0_88] : memref<9x32xf32, #tpu.memory_space<vmem>>, vector<9x32xf32>
    %255 = vector.extract_strided_slice %254 {offsets = [0, 0], sizes = [1, 32], strides = [1, 1]} : vector<9x32xf32> to vector<1x32xf32>
    %256 = vector.broadcast %255 : vector<1x32xf32> to vector<64x32xf32>
    %257 = arith.mulf %222, %256 : vector<64x32xf32>
    %258 = vector.extract_strided_slice %254 {offsets = [1, 0], sizes = [1, 32], strides = [1, 1]} : vector<9x32xf32> to vector<1x32xf32>
    %259 = vector.broadcast %258 : vector<1x32xf32> to vector<64x32xf32>
    %260 = arith.mulf %225, %259 : vector<64x32xf32>
    %261 = arith.addf %257, %260 : vector<64x32xf32>
    %262 = vector.extract_strided_slice %254 {offsets = [2, 0], sizes = [1, 32], strides = [1, 1]} : vector<9x32xf32> to vector<1x32xf32>
    %263 = vector.broadcast %262 : vector<1x32xf32> to vector<64x32xf32>
    %264 = arith.mulf %230, %263 : vector<64x32xf32>
    %265 = arith.addf %261, %264 : vector<64x32xf32>
    %266 = vector.extract_strided_slice %254 {offsets = [3, 0], sizes = [1, 32], strides = [1, 1]} : vector<9x32xf32> to vector<1x32xf32>
    %267 = vector.broadcast %266 : vector<1x32xf32> to vector<64x32xf32>
    %268 = arith.mulf %235, %267 : vector<64x32xf32>
    %269 = arith.addf %265, %268 : vector<64x32xf32>
    %270 = vector.extract_strided_slice %254 {offsets = [4, 0], sizes = [1, 32], strides = [1, 1]} : vector<9x32xf32> to vector<1x32xf32>
    %271 = vector.broadcast %270 : vector<1x32xf32> to vector<64x32xf32>
    %272 = arith.mulf %196, %271 : vector<64x32xf32>
    %273 = arith.addf %269, %272 : vector<64x32xf32>
    %274 = vector.extract_strided_slice %254 {offsets = [5, 0], sizes = [1, 32], strides = [1, 1]} : vector<9x32xf32> to vector<1x32xf32>
    %275 = vector.broadcast %274 : vector<1x32xf32> to vector<64x32xf32>
    %276 = arith.mulf %240, %275 : vector<64x32xf32>
    %277 = arith.addf %273, %276 : vector<64x32xf32>
    %278 = vector.extract_strided_slice %254 {offsets = [6, 0], sizes = [1, 32], strides = [1, 1]} : vector<9x32xf32> to vector<1x32xf32>
    %279 = vector.broadcast %278 : vector<1x32xf32> to vector<64x32xf32>
    %280 = arith.mulf %245, %279 : vector<64x32xf32>
    %281 = arith.addf %277, %280 : vector<64x32xf32>
    %282 = vector.extract_strided_slice %254 {offsets = [7, 0], sizes = [1, 32], strides = [1, 1]} : vector<9x32xf32> to vector<1x32xf32>
    %283 = vector.broadcast %282 : vector<1x32xf32> to vector<64x32xf32>
    %284 = arith.mulf %248, %283 : vector<64x32xf32>
    %285 = arith.addf %281, %284 : vector<64x32xf32>
    %286 = vector.extract_strided_slice %254 {offsets = [8, 0], sizes = [1, 32], strides = [1, 1]} : vector<9x32xf32> to vector<1x32xf32>
    %287 = vector.broadcast %286 : vector<1x32xf32> to vector<64x32xf32>
    %288 = arith.mulf %253, %287 : vector<64x32xf32>
    %289 = arith.addf %285, %288 : vector<64x32xf32>
    %290 = vector.extract_strided_slice %289 {offsets = [0, 0], sizes = [8, 32], strides = [1, 1]} : vector<64x32xf32> to vector<8x32xf32>
    %291 = vector.extract_strided_slice %289 {offsets = [16, 0], sizes = [8, 32], strides = [1, 1]} : vector<64x32xf32> to vector<8x32xf32>
    %292 = vector.extract_strided_slice %289 {offsets = [32, 0], sizes = [8, 32], strides = [1, 1]} : vector<64x32xf32> to vector<8x32xf32>
    %293 = vector.extract_strided_slice %289 {offsets = [48, 0], sizes = [8, 32], strides = [1, 1]} : vector<64x32xf32> to vector<8x32xf32>
    %294 = tpu.concatenate %290, %291, %292, %293 in 0 : vector<8x32xf32>, vector<8x32xf32>, vector<8x32xf32>, vector<8x32xf32> -> vector<32x32xf32>
    %c0_89 = arith.constant 0 : index
    %c0_90 = arith.constant 0 : index
    %295 = vector.load %arg19[%c0_89, %c0_90] : memref<32x32xf32, #tpu.memory_space<vmem>>, vector<32x32xf32>
    tpu.vector_store %arg19[%c0_89, %c0_90], %294 {strides = array<i32>} : memref<32x32xf32, #tpu.memory_space<vmem>>, vector<32x32xf32>,
    %c0_91 = arith.constant 0 : index
    %c0_92 = arith.constant 0 : index
    %296 = tpu.strided_load %arg19[%c0_91, %c0_92] {strides = array<i32: 2, 1>} : memref<32x32xf32, #tpu.memory_space<vmem>>, vector<16x32xf32>
    %c0_93 = arith.constant 0 : index
    %c0_94 = arith.constant 0 : index
    %297 = vector.load %arg9[%c0_93, %c0_94] : memref<2x32xf32, #tpu.memory_space<vmem>>, vector<1x32xf32>
    %298 = vector.broadcast %297 : vector<1x32xf32> to vector<16x32xf32>
    %299 = arith.addf %296, %298 : vector<16x32xf32>
    %cst_95 = arith.constant 0.000000e+00 : f32
    %300 = vector.broadcast %cst_95 : f32 to vector<16x32xf32>
    %301 = arith.cmpf oge, %299, %300 : vector<16x32xf32>
    %c1_96 = arith.constant 1 : index
    %c0_97 = arith.constant 0 : index
    %302 = vector.load %arg9[%c1_96, %c0_97] : memref<2x32xf32, #tpu.memory_space<vmem>>, vector<1x32xf32>
    %303 = vector.broadcast %302 : vector<1x32xf32> to vector<16x32xf32>
    %304 = arith.mulf %303, %299 : vector<16x32xf32>
    %305 = arith.select %301, %299, %304 : vector<16x32xi1>, vector<16x32xf32>
    %306 = arith.truncf %305 : vector<16x32xf32> to vector<16x32xbf16>
    %c0_98 = arith.constant 0 : index
    %c0_99 = arith.constant 0 : index
    %307 = vector.load %arg10[%c0_98, %c0_99] : memref<32x16xbf16, #tpu.memory_space<vmem>>, vector<32x16xbf16>
    %cst_100 = arith.constant dense<0.000000e+00> : vector<16x16xf32>
    %308 = tpu.matmul %306, %307, %cst_100 {dimension_numbers = #tpu.dot_dimension_numbers<[1], [0], [0], [1], [0, 0, 1, 1], [], []>} : vector<16x32xbf16>, vector<32x16xbf16>, vector<16x16xf32> -> vector<16x16xf32>
    %c0_101 = arith.constant 0 : index
    %c0_102 = arith.constant 0 : index
    %309 = vector.load %arg11[%c0_101, %c0_102] : memref<1x16xf32, #tpu.memory_space<vmem>>, vector<1x16xf32>
    %310 = vector.broadcast %309 : vector<1x16xf32> to vector<16x16xf32>
    %311 = arith.addf %308, %310 : vector<16x16xf32>
    %312 = arith.truncf %311 : vector<16x16xf32> to vector<16x16xbf16>
    %c0_103 = arith.constant 0 : index
    %c0_104 = arith.constant 0 : index
    %313 = vector.load %arg12[%c0_103, %c0_104] : memref<16x64xbf16, #tpu.memory_space<vmem>>, vector<16x64xbf16>
    %cst_105 = arith.constant dense<0.000000e+00> : vector<16x64xf32>
    %314 = tpu.matmul %312, %313, %cst_105 {dimension_numbers = #tpu.dot_dimension_numbers<[1], [0], [0], [1], [0, 0, 1, 1], [], []>} : vector<16x16xbf16>, vector<16x64xbf16>, vector<16x64xf32> -> vector<16x64xf32>
    %c0_106 = arith.constant 0 : index
    %c0_107 = arith.constant 0 : index
    %315 = vector.load %arg13[%c0_106, %c0_107] : memref<2x64xf32, #tpu.memory_space<vmem>>, vector<1x64xf32>
    %316 = vector.broadcast %315 : vector<1x64xf32> to vector<16x64xf32>
    %317 = arith.addf %314, %316 : vector<16x64xf32>
    %cst_108 = arith.constant 0.000000e+00 : f32
    %318 = vector.broadcast %cst_108 : f32 to vector<16x64xf32>
    %319 = arith.cmpf oge, %317, %318 : vector<16x64xf32>
    %c1_109 = arith.constant 1 : index
    %c0_110 = arith.constant 0 : index
    %320 = vector.load %arg13[%c1_109, %c0_110] : memref<2x64xf32, #tpu.memory_space<vmem>>, vector<1x64xf32>
    %321 = vector.broadcast %320 : vector<1x64xf32> to vector<16x64xf32>
    %322 = arith.mulf %321, %317 : vector<16x64xf32>
    %323 = arith.select %319, %317, %322 : vector<16x64xi1>, vector<16x64xf32>
    %c0_111 = arith.constant 0 : index
    %c0_112 = arith.constant 0 : index
    %324 = vector.load %arg14[%c0_111, %c0_112] : memref<16x64xf32, #tpu.memory_space<vmem>>, vector<16x64xf32>
    %325 = arith.mulf %323, %324 : vector<16x64xf32>
    %326 = arith.truncf %325 : vector<16x64xf32> to vector<16x64xbf16>
    %c0_113 = arith.constant 0 : index
    %c0_114 = arith.constant 0 : index
    %327 = vector.load %arg15[%c0_113, %c0_114] : memref<64x128xbf16, #tpu.memory_space<vmem>>, vector<64x128xbf16>
    %cst_115 = arith.constant dense<0.000000e+00> : vector<16x128xf32>
    %328 = tpu.matmul %326, %327, %cst_115 {dimension_numbers = #tpu.dot_dimension_numbers<[1], [0], [0], [1], [0, 0, 1, 1], [], []>} : vector<16x64xbf16>, vector<64x128xbf16>, vector<16x128xf32> -> vector<16x128xf32>
    %cst_116 = arith.constant dense<0.000000e+00> : vector<128xf32>
    %329 = vector.multi_reduction <add>, %328, %cst_116 [0] : vector<16x128xf32> to vector<128xf32>
    %330 = vector.shape_cast %329 : vector<128xf32> to vector<1x128xf32>
    %c0_117 = arith.constant 0 : index
    %c0_118 = arith.constant 0 : index
    %331 = vector.load %arg16[%c0_117, %c0_118] : memref<1x128xf32, #tpu.memory_space<vmem>>, vector<1x128xf32>
    %332 = arith.addf %330, %331 : vector<1x128xf32>
    %c0_119 = arith.constant 0 : index
    %c0_120 = arith.constant 0 : index
    %c0_121 = arith.constant 0 : index
    %333 = vector.load %arg17[%c0_119, %c0_120, %c0_121] : memref<1x1x128xf32, #tpu.memory_space<vmem>>, vector<1x1x128xf32>
    %334 = vector.shape_cast %333 : vector<1x1x128xf32> to vector<1x128xf32>
    %335 = vector.shape_cast %332 : vector<1x128xf32> to vector<1x1x128xf32>
    tpu.vector_store %arg17[%c0_119, %c0_120, %c0_121], %335 {strides = array<i32>} : memref<1x1x128xf32, #tpu.memory_space<vmem>>, vector<1x1x128xf32>,
    return
  }
  func.func @transform_0(%arg0: i32) -> (i32, i32, i32) {
    %c0_i32 = arith.constant 0 : i32
    %c0_i32_0 = arith.constant 0 : i32
    %c0_i32_1 = arith.constant 0 : i32
    return %arg0, %c0_i32, %c0_i32_0 : i32, i32, i32
  }
  func.func @transform_1(%arg0: i32) -> (i32, i32) {
    %c0_i32 = arith.constant 0 : i32
    %c0_i32_0 = arith.constant 0 : i32
    %c0_i32_1 = arith.constant 0 : i32
    return %c0_i32, %c0_i32_0 : i32, i32
  }
  func.func @transform_2(%arg0: i32) -> (i32, i32) {
    %c0_i32 = arith.constant 0 : i32
    %c0_i32_0 = arith.constant 0 : i32
    %c0_i32_1 = arith.constant 0 : i32
    return %c0_i32, %c0_i32_0 : i32, i32
  }
  func.func @transform_3(%arg0: i32) -> (i32, i32) {
    %c0_i32 = arith.constant 0 : i32
    %c0_i32_0 = arith.constant 0 : i32
    %c0_i32_1 = arith.constant 0 : i32
    return %c0_i32, %c0_i32_0 : i32, i32
  }
  func.func @transform_4(%arg0: i32) -> (i32, i32) {
    %c0_i32 = arith.constant 0 : i32
    %c0_i32_0 = arith.constant 0 : i32
    %c0_i32_1 = arith.constant 0 : i32
    return %c0_i32, %c0_i32_0 : i32, i32
  }
  func.func @transform_5(%arg0: i32) -> (i32, i32) {
    %c0_i32 = arith.constant 0 : i32
    %c0_i32_0 = arith.constant 0 : i32
    %c0_i32_1 = arith.constant 0 : i32
    return %c0_i32, %c0_i32_0 : i32, i32
  }
  func.func @transform_6(%arg0: i32) -> (i32, i32) {
    %c0_i32 = arith.constant 0 : i32
    %c0_i32_0 = arith.constant 0 : i32
    %c0_i32_1 = arith.constant 0 : i32
    return %c0_i32, %c0_i32_0 : i32, i32
  }
  func.func @transform_7(%arg0: i32) -> (i32, i32) {
    %c0_i32 = arith.constant 0 : i32
    %c0_i32_0 = arith.constant 0 : i32
    %c0_i32_1 = arith.constant 0 : i32
    return %c0_i32, %c0_i32_0 : i32, i32
  }
  func.func @transform_8(%arg0: i32) -> (i32, i32) {
    %c0_i32 = arith.constant 0 : i32
    %c0_i32_0 = arith.constant 0 : i32
    %c0_i32_1 = arith.constant 0 : i32
    return %c0_i32, %c0_i32_0 : i32, i32
  }
  func.func @transform_9(%arg0: i32) -> (i32, i32) {
    %c0_i32 = arith.constant 0 : i32
    %c0_i32_0 = arith.constant 0 : i32
    %c0_i32_1 = arith.constant 0 : i32
    return %c0_i32, %c0_i32_0 : i32, i32
  }
  func.func @transform_10(%arg0: i32) -> (i32, i32) {
    %c0_i32 = arith.constant 0 : i32
    %c0_i32_0 = arith.constant 0 : i32
    %c0_i32_1 = arith.constant 0 : i32
    return %c0_i32, %c0_i32_0 : i32, i32
  }
  func.func @transform_11(%arg0: i32) -> (i32, i32) {
    %c0_i32 = arith.constant 0 : i32
    %c0_i32_0 = arith.constant 0 : i32
    %c0_i32_1 = arith.constant 0 : i32
    return %c0_i32, %c0_i32_0 : i32, i32
  }
  func.func @transform_12(%arg0: i32) -> (i32, i32) {
    %c0_i32 = arith.constant 0 : i32
    %c0_i32_0 = arith.constant 0 : i32
    %c0_i32_1 = arith.constant 0 : i32
    return %c0_i32, %c0_i32_0 : i32, i32
  }
  func.func @transform_13(%arg0: i32) -> (i32, i32) {
    %c0_i32 = arith.constant 0 : i32
    %c0_i32_0 = arith.constant 0 : i32
    %c0_i32_1 = arith.constant 0 : i32
    return %c0_i32, %c0_i32_0 : i32, i32
  }
  func.func @transform_14(%arg0: i32) -> (i32, i32) {
    %c0_i32 = arith.constant 0 : i32
    %c0_i32_0 = arith.constant 0 : i32
    %c0_i32_1 = arith.constant 0 : i32
    return %c0_i32, %c0_i32_0 : i32, i32
  }
  func.func @transform_15(%arg0: i32) -> (i32, i32) {
    %c0_i32 = arith.constant 0 : i32
    %c0_i32_0 = arith.constant 0 : i32
    %c0_i32_1 = arith.constant 0 : i32
    return %c0_i32, %c0_i32_0 : i32, i32
  }
  func.func @transform_16(%arg0: i32) -> (i32, i32, i32) {
    %c0_i32 = arith.constant 0 : i32
    %c0_i32_0 = arith.constant 0 : i32
    %c0_i32_1 = arith.constant 0 : i32
    return %arg0, %c0_i32, %c0_i32_0 : i32, i32, i32
  }
}

</mosaic_0001>

<bundles_post_ra>
// kernel: model_forward.1
= control target key start
LH: loop header
LB: loop body
LE: loop exit
PB: predicated region body
PF: predicated region fallthrough
CT: control target
= control target key end

     0   :  { %s7532_s0 = inlined_call_operand.vmem [shape: f32[2,256,3], index: 0, kind: input, shape index: {}]   ;;  %s7533_s1 = inlined_call_operand.vmem [shape: bf16[27,16], index: 1, kind: input, shape index: {}]   ;;  %s7534_s2 = inlined_call_operand.vmem [shape: f32[2,16], index: 2, kind: input, shape index: {}]   ;;  %s7535_s3 = inlined_call_operand.vmem [shape: f32[9,16], index: 3, kind: input, shape index: {}]   ;;  %s7536_s4 = inlined_call_operand.vmem [shape: f32[2,16], index: 4, kind: input, shape index: {}]   ;;  %s7537_s5 = inlined_call_operand.vmem [shape: bf16[16,32], index: 5, kind: input, shape index: {}]   ;;  %s7538_s6 = inlined_call_operand.vmem [shape: f32[2,32], index: 6, kind: input, shape index: {}]   ;;  %s7539_s7 = inlined_call_operand.vmem [shape: f32[9,32], index: 7, kind: input, shape index: {}]   ;;  %s7540_s8 = inlined_call_operand.vmem [shape: f32[2,32], index: 8, kind: input, shape index: {}]   ;;  %s7541_s9 = inlined_call_operand.vmem [shape: bf16[32,16], index: 9, kind: input, shape index: {}]   ;;  %s7542_s10 = inlined_call_operand.vmem [shape: f32[1,16], index: 10, kind: input, shape index: {}]   ;;  %s7543_s11 = inlined_call_operand.vmem [shape: bf16[16,64], index: 11, kind: input, shape index: {}]   ;;  %s7544_s12 = inlined_call_operand.vmem [shape: f32[2,64], index: 12, kind: input, shape index: {}]   ;;  %s7545_s13 = inlined_call_operand.vmem [shape: f32[16,64], index: 13, kind: input, shape index: {}]   ;;  %s7546_s14 = inlined_call_operand.vmem [shape: bf16[64,128], index: 14, kind: input, shape index: {}]   ;;  %s7547_s15 = inlined_call_operand.vmem [shape: f32[1,128], index: 15, kind: input, shape index: {}]   ;;  %s7548_s16 = inlined_call_operand.hbm [shape: f32[2,1,128], index: 16, kind: output, shape index: {}]  }
   0x1   :  { %7611 = sst [smem:[#allocation37_spill]] %s7532_s0 }
   0x2   :  { %7612 = sst [smem:[#allocation38_spill]] %s7533_s1 }
   0x3   :  { %7613 = sst [smem:[#allocation39_spill]] %s7534_s2 }
   0x4   :  { %7614 = sst [smem:[#allocation40_spill]] %s7535_s3 }
   0x5   :  { %21 = vsyncpa [#allocation5], 0 }
   0x6   :  { %23 = vsyncpa [#allocation5 + $0x1], 0  ;;  %s5012_s21 = smov 0   ;;  %s5014_s22 = smov 0  }
   0x7   :  { %s5016_s23 = smov 0   ;;  %s5018_s24 = smov 0  }
   0x8 LB: > { %7615 = sst [smem:[#allocation7_spill]] %s4909_s23  ;;  %s5033_s25 = sadd.s32 4294967295, %s4913_s24   ;;  %s4913_s24 = sphi %s5018_s24, %s8135_s24   ;;  %s4909_s23 = sphi %s5016_s23, %s8134_s23   ;;  %s4905_s22 = sphi %s5014_s22, %s8133_s22   ;;  %s4901_s21 = sphi %s5012_s21, %s8132_s21  }
   0x9   : > { %s4001_s26 = sadd.s32 4294967294, %s4913_s24   ;;  %s5037_s27 = sadd.s32 1, %s4913_s24  }
   0xa   : > { %s377_s28 = sadd.s32 1, %s4909_s23  ;;  %s374_s29 = ssub.s32 %s4913_s24, %s5037_s27 }
   0xb   : > { %p387_p0 = scmp.ne.s32.totalorder %s4909_s23, %s4905_s22  ;;  %p375_p1 = scmp.eq.s32.totalorder %s374_s29, 0 }
   0xc   : > { %p388_p2 = scmp.eq.s32.totalorder %s5033_s25, 1  ;;  %p393_p3 = scmp.ne.s32.totalorder %s4905_s22, %s4901_s21 }
   0xd   : > { %p394_p4 = scmp.eq.s32.totalorder %s4001_s26, 1  ;;  %p4004_p7 = scmp.ge.s32.totalorder %s4913_s24, 1 }
   0xe   : > { %s5048_s30 = scalar_select %p375_p1, %s4909_s23, %s377_s28  }
   0xf   : > { %p5050_p5 = por %p388_p2, %p387_p0  ;;  %p5054_p6 = por %p394_p4, %p393_p3 }
  0x10   : > { %7616 = sst [smem:[#allocation8_spill]] %s5048_s30  ;;  %p465_p8 = scmp.lt.s32.totalorder %s4913_s24, 3 }
  0x12   : > { %p466_p9 = pnand %p4004_p7, %p465_p8 }
  0x14   : > { %469 = sbr.rel (%p466_p9) target bundleno = 1616 (0x650), region = 84 }
  0x1b   : > { %p514_p10 = scmp.lt.s32.totalorder %s5033_s25, 1  ;;  %v552_v0 = vlaneseq  ;;  %s7622_s28 = sld [smem:[#allocation37_spill]]  ;;  %vm7578_vm0 = vcmask 1046528   ;;  %v7566_v11 = vmov 0.0   ;;  %vm7580_vm2 = vcmask 1040384  }
  0x1c   : > { %s7549_s20 = smov 9   ;;  %s7559_s26 = smov 12   ;;  %vm2708_vm14 = vcmask 1044480   ;;  %vm2709_vm15 = vcmask 1045504  }
  0x1d   : > { %s515_s18 = scalar_select %p514_p10, %s5033_s25, 1  ;;  %v5062_v1 = vshrl.u32 %v552_v0, 7 }
  0x1e   : > { %s7633_s1 = sld [smem:[#allocation38_spill]]  ;;  %s7655_s30 = smov 3  }
  0x1f   : > { %7619 = vst [vmem:[#allocation9_spill] sm:$0xff] %v5062_v1  ;;  %s4056_s19 = sshll.u32 %s515_s18, 8  ;;  %v5065_v2 = vadd.s32 8, %v5062_v1  ;;  %v5068_v3 = vadd.s32 24, %v5062_v1  ;;  %v5076_v4 = vadd.s32 16, %v5062_v1  ;;  %v589_v10 = vand.u32 15, %v5062_v1 }
  0x20   : > { %s7557_s18 = smov 3   ;;  %v5157_v51 = vadd.s32 32, %v5062_v1  ;;  %v5184_v0 = vadd.s32 48, %v5062_v1  ;;  %s7660_s23 = smov 12  }
  0x21   : > { %7620 = vst [vmem:[#allocation10_spill] sm:$0xff] %v5065_v2  ;;  %7621 = vst [vmem:[#allocation11_spill] sm:$0xff] %v5068_v3  ;;  %s5073_s29 = scalar_lea.vmem %s7622_s28, %s4056_s19  ;;  %v596_v8 = vand.u32 15, %v5065_v2  ;;  %v610_v9 = vand.u32 15, %v5068_v3  ;;  %v603_v22 = vand.u32 15, %v5076_v4  ;;  %vm5099_vm4 = vcmp.ne.s32.totalorder %v589_v10, 0 }
  0x22   : > { %7623 = vst [vmem:[#allocation12_spill] sm:$0xff] %v5076_v4  ;;  %v520_v5 = vld [vmem:[%s5073_s29] sm:$0xff]  ;;  %v521_v6 = vld [vmem:[%s5073_s29 + $0x8] sm:$0xff]  ;;  %v522_v7 = vld [vmem:[%s5073_s29 + $0x10] sm:$0xff]  ;;  %s7551_s19 = smov 6   ;;  %v617_v61 = vand.u32 15, %v5157_v51 }
  0x23   : > { %v4216_v12 = vpack.i.bf16 %v520_v5, %v7566_v11  ;;  %v1186_v13 = vrot.slane %v520_v5, 1  ;;  %v1187_v14 = vrot.slane %v521_v6, 1  ;;  %v4221_v15 = vpack.i.bf16 %v522_v7, %v521_v6  ;;  %v5106_v27 = vld [vmem:[%s5073_s29 + $0x18] sm:$0xff]  ;;  %v5126_v35 = vld [vmem:[%s5073_s29 + $0x20] sm:$0xff]  ;;  %v5153_v49 = vld [vmem:[%s5073_s29 + $0x28] sm:$0xff]  ;;  %7632 = vst [vmem:[#allocation13_spill] sm:$0xff] %v5157_v51 }
  0x24   : > { %vm5085_vm1 = vcmp.ne.s32.totalorder %v596_v8, 15  ;;  %vm5091_vm3 = vcmp.ne.s32.totalorder %v610_v9, 15  ;;  %v1189_v20 = vrot.slane %v522_v7, 1  ;;  %v1064_v24 = vrot.slane %v520_v5, 7  ;;  %v4841_v59 = vld [vmem:[%s7633_s1] sm:$0xff]   ;;  %v5177_v60 = vld [vmem:[%s5073_s29 + $0x30] sm:$0xff] }
  0x25   : > { %4217 = vrot.lane.b32.xlu0 %v4216_v12, %s7557_s18  ;;  %v1278_v17 = vsel %vm7578_vm0, 0.0, %v1186_v13  ;;  %v1188_v19 = vsel %vm7578_vm0, %v1186_v13, %v1187_v14  ;;  %vm5110_vm5 = vcmp.ne.s32.totalorder %v603_v22, 0  ;;  %v1065_v30 = vrot.slane %v521_v6, 7  ;;  %7634 = vst [vmem:[#allocation14_spill] sm:$0xff] %v5184_v0  ;;  %4090 = vmatprep.subr.bf16.mxu0 %v4841_v59  ;;  %s7563_s28 = smov 21   ;;  %v5593_v13 = vld [vmem:[%s5073_s29 + $0xa0] sm:$0xff] }
  0x26   : > { %v1279_v21 = vsel %vm5085_vm1, %v1278_v17, 0.0  ;;  %v1190_v26 = vsel %vm7578_vm0, %v1187_v14, %v1189_v20  ;;  %v5115_v31 = vsel %vm7580_vm2, 0.0, %v1064_v24  ;;  %v1067_v37 = vrot.slane %v522_v7, 7  ;;  %4162 = vmatprep.subr.bf16.mxu1 %v4841_v59  ;;  %4091 = vmatpush3.bf16.msra.mxu0 %v4841_v59  ;;  %v5606_v33 = vld [vmem:[%s5073_s29 + $0x98] sm:$0xff]  ;;  %s8057_s2 = sld [smem:[#allocation39_spill]]  ;;  %s8063_s3 = sld [smem:[#allocation40_spill]] }
  0x27   : > { %v4226_v25 = vpack.i.bf16 %v1279_v21, %v7566_v11  ;;  %v1281_v28 = vsel %vm5091_vm3, %v1190_v26, 0.0  ;;  %v1317_v34 = vsel %vm5099_vm4, %v5115_v31, 0.0  ;;  %v5129_v36 = vsel %vm7580_vm2, %v1064_v24, %v1065_v30  ;;  %4164 = vmatpush3.bf16.msra.mxu1 %v4841_v59 }
  0x28   : > { %v4231_v32 = vpack.i.bf16 %v1281_v28, %v1188_v19  ;;  %v1069_v38 = vrot.slane %v5106_v27, 7  ;;  %v4236_v39 = vpack.i.bf16 %v5129_v36, %v1317_v34  ;;  %v5134_v40 = vsel %vm7580_vm2, %v1065_v30, %v1067_v37 }
  0x29   : > { %4222 = vrot.lane.b32.xlu0 %v4221_v15, %s7557_s18  ;;  %4227 = vrot.lane.b32.xlu1 %v4226_v25, %s7551_s19  ;;  %v1191_v42 = vrot.slane %v5106_v27, 1  ;;  %v1319_v43 = vsel %vm5110_vm5, %v5134_v40, 0.0  ;;  %v4241_v44 = vpack.i.bf16 %v521_v6, %v520_v5  ;;  %v1193_v45 = vrot.slane %v5126_v35, 1 }
  0x2a   : > { %v5137_v41 = vsel %vm7580_vm2, %v1067_v37, %v1069_v38  ;;  %v1355_v47 = vsel %vm5085_vm1, %v1190_v26, 0.0  ;;  %v1071_v50 = vrot.slane %v5126_v35, 7  ;;  %v4251_v52 = vpack.i.bf16 %v5106_v27, %v522_v7  ;;  %v5249_v37 = vld [vmem:[%s5073_s29 + $0x38] sm:$0xff] }
  0x2b   : > { %v4246_v46 = vpack.i.bf16 %v5137_v41, %v1319_v43  ;;  %v5150_v48 = vsel %vm7578_vm0, %v1191_v42, %v1193_v45  ;;  %v4256_v53 = vpack.i.bf16 %v1355_v47, %v1188_v19  ;;  %v1192_v54 = vsel %vm7578_vm0, %v1189_v20, %v1191_v42  ;;  %v528_v47 = vld [vmem:[%s5073_s29 + $0x40] sm:$0xff] }
  0x2c   : > { %v1357_v55 = vsel %vm5091_vm3, %v5150_v48, 0.0  ;;  %v1388_v56 = vsel %vm5099_vm4, %v5134_v40, 0.0  ;;  %v1073_v57 = vrot.slane %v5153_v49, 7  ;;  %v5171_v58 = vsel %vm7580_vm2, %v1069_v38, %v1071_v50 }
  0x2d   : > { %4232 = vrot.lane.b32.xlu1 %v4231_v32, %s7551_s19  ;;  %4237 = vrot.lane.b32.xlu0 %v4236_v39, %s7549_s20  ;;  %s7561_s19 = smov 15   ;;  %v4261_v62 = vpack.i.bf16 %v1357_v55, %v1192_v54  ;;  %v4266_v63 = vpack.i.bf16 %v5137_v41, %v1388_v56  ;;  %v1390_v6 = vsel %vm5110_vm5, %v5171_v58, 0.0  ;;  %v1195_v7 = vrot.slane %v5153_v49, 1 }
  0x2e   : > { %v5187_v5 = vsel %vm7580_vm2, %v1071_v50, %v1073_v57  ;;  %v1197_v8 = vrot.slane %v5177_v60, 1  ;;  %v5195_v9 = vadd.s32 40, %v5062_v1  ;;  %vm5197_vm6 = vcmp.ne.s32.totalorder %v617_v61, 0 }
  0x2f   : > { %v4271_v12 = vpack.i.bf16 %v5187_v5, %v1390_v6  ;;  %v631_v14 = vand.u32 15, %v5184_v0  ;;  %v1420_v15 = vsel %vm5085_vm1, %v5150_v48, 0.0  ;;  %v5216_v20 = vadd.s32 56, %v5062_v1 }
  0x30   : > { %7635 = vst [vmem:[#allocation15_spill] sm:$0xff] %v5195_v9  ;;  %v1198_v17 = vsel %vm7578_vm0, %v1195_v7, %v1197_v8  ;;  %v624_v19 = vand.u32 15, %v5195_v9  ;;  %v4281_v16 = vpack.i.bf16 %v5153_v49, %v5126_v35  ;;  %v4286_v22 = vpack.i.bf16 %v1420_v15, %v1192_v54 }
  0x31   : > { %4247 = vrot.lane.b32.xlu1 %v4246_v46, %s7549_s20  ;;  %4242 = vrot.lane.b32.xlu0 %v4241_v44, %s7559_s26  ;;  %s7553_s20 = smov 18   ;;  %7638 = vst [vmem:[#allocation16_spill] sm:$0xff] %v5216_v20  ;;  %vm5218_vm7 = vcmp.ne.s32.totalorder %v631_v14, 0  ;;  %v1196_v24 = vsel %vm7578_vm0, %v1193_v45, %v1195_v7  ;;  %v1422_v25 = vsel %vm5091_vm3, %v1198_v17, 0.0  ;;  %v638_v28 = vand.u32 15, %v5216_v20 }
  0x32   : > { %vm5232_vm8 = vcmp.ne.s32.totalorder %v624_v19, 15  ;;  %v4291_v30 = vpack.i.bf16 %v5126_v35, %v5106_v27  ;;  %v4296_v32 = vpack.i.bf16 %v1422_v25, %v1196_v24  ;;  %v1075_v38 = vrot.slane %v5177_v60, 7 }
  0x33   : > { %v1283_v18 = vsel %vm5232_vm8, %v5150_v48, 0.0  ;;  %vm5244_vm9 = vcmp.ne.s32.totalorder %v638_v28, 15  ;;  %v561_v39 = vadd.s32 64, %v5062_v1  ;;  %v4301_v27 = vpack.i.bf16 %v5177_v60, %v5153_v49 }
  0x34   : > { %v4306_v35 = vpack.i.bf16 %v1283_v18, %v1192_v54  ;;  %v1285_v42 = vsel %vm5244_vm9, %v1198_v17, 0.0  ;;  %v1321_v43 = vsel %vm5197_vm6, %v5171_v58, 0.0  ;;  %v1077_v44 = vrot.slane %v5249_v37, 7 }
  0x35   : > { %4252 = vrot.lane.b32.xlu1 %v4251_v52, %s7559_s26  ;;  %4257 = vrot.lane.b32.xlu0 %v4256_v53, %s7561_s19  ;;  %v645_v45 = vand.u32 15, %v561_v39  ;;  %v5264_v46 = vsel %vm7580_vm2, %v1073_v57, %v1075_v38  ;;  %v4311_v49 = vpack.i.bf16 %v1285_v42, %v1196_v24  ;;  %v4316_v50 = vpack.i.bf16 %v5187_v5, %v1321_v43 }
  0x36   : > { %v5278_v53 = vsel %vm7580_vm2, %v1075_v38, %v1077_v44  ;;  %v1323_v54 = vsel %vm5218_vm7, %v5264_v46, 0.0  ;;  %v1199_v55 = vrot.slane %v5249_v37, 1  ;;  %v1201_v56 = vrot.slane %v528_v47, 1 }
  0x37   : > { %vm5267_vm10 = vcmp.ne.s32.totalorder %v645_v45, 0  ;;  %v4321_v57 = vpack.i.bf16 %v5278_v53, %v1323_v54  ;;  %v1359_v59 = vsel %vm5232_vm8, %v1198_v17, 0.0  ;;  %v4331_v6 = vpack.i.bf16 %v5249_v37, %v5177_v60 }
  0x38   : > { %v1202_v61 = vsel %vm7578_vm0, %v1199_v55, %v1201_v56  ;;  %v4336_v7 = vpack.i.bf16 %v1359_v59, %v1196_v24  ;;  %v1392_v15 = vsel %vm5197_vm6, %v5264_v46, 0.0  ;;  %v7691_v9 = vrot.slane %v5593_v13, 1 }
  0x39   : > { %4262 = vrot.lane.b32.xlu1 %v4261_v62, %s7561_s19  ;;  %4267 = vrot.lane.b32.xlu0 %v4266_v63, %s7553_s20  ;;  %v529_v62 = vld [vmem:[%s5073_s29 + $0x48] sm:$0xff]  ;;  %v1079_v63 = vrot.slane %v528_v47, 7  ;;  %v1361_v14 = vsel %vm5244_vm9, %v1202_v61, 0.0  ;;  %v1424_v18 = vsel %vm5232_vm8, %v1202_v61, 0.0 }
  0x3a   : > { %v1081_v17 = vrot.slane %v529_v62, 7  ;;  %v1203_v25 = vrot.slane %v529_v62, 1 }
  0x3b   : > { %v5304_v19 = vsel %vm7580_vm2, %v1077_v44, %v1079_v63 }
  0x3c   : > { %v1394_v24 = vsel %vm5218_vm7, %v5304_v19, 0.0  ;;  %v1204_v43 = vsel %vm7578_vm0, %v1201_v56, %v1203_v25  ;;  %v5349_v56 = vld [vmem:[%s5073_s29 + $0x58] sm:$0xff] }
  0x3d   : > { %4272 = vrot.lane.b32.xlu1 %v4271_v12, %s7553_s20  ;;  %4277 = vrot.lane.b32.xlu0 %v4251_v52, %s7563_s28  ;;  %s7555_s20 = smov 24   ;;  %v1200_v12 = vsel %vm7578_vm0, %v1197_v8, %v1199_v55  ;;  %v4346_v8 = vpack.i.bf16 %v5278_v53, %v1392_v15  ;;  %v7684_v52 = vmov 0 }
  0x3e   : > { %v4341_v60 = vpack.i.bf16 %v1361_v14, %v1200_v12  ;;  %v4366_v42 = vpack.i.bf16 %v1424_v18, %v1200_v12 }
  0x41   : > { %4282 = vrot.lane.b32.xlu1 %v4281_v16, %s7563_s28  ;;  %4287 = vrot.lane.b32.xlu0 %v4286_v22, %s7555_s20  ;;  %v5313_v22 = vsel %vm7580_vm2, %v1079_v63, %v1081_v17  ;;  %v1325_v63 = vsel %vm5267_vm10, %v5304_v19, 0.0 }
  0x45   : > { %4292 = vrot.lane.b32.xlu1 %v4291_v30, %s7557_s18  ;;  %4297 = vrot.lane.b32.xlu0 %v4296_v32, %s7555_s20  ;;  %s7647_s20 = smov 6   ;;  %v562_v30 = vadd.s32 72, %v5062_v1  ;;  %v4351_v32 = vpack.i.bf16 %v5313_v22, %v1394_v24 }
  0x47   : > { %v652_v39 = vand.u32 15, %v562_v30 }
  0x49   : > { %4302 = vrot.lane.b32.xlu1 %v4301_v27, %s7557_s18  ;;  %4307 = vrot.lane.b32.xlu0 %v4306_v35, %s7647_s20  ;;  %s7648_s18 = smov 9   ;;  %v564_v27 = vadd.s32 88, %v5062_v1  ;;  %v4361_v35 = vpack.i.bf16 %v529_v62, %v528_v47  ;;  %vm5334_vm11 = vcmp.ne.s32.totalorder %v652_v39, 15 }
  0x4a   : > { %v1287_v55 = vsel %vm5334_vm11, %v1202_v61, 0.0 }
  0x4b   : > { %v666_v45 = vand.u32 15, %v564_v27 }
  0x4d   : > { %4312 = vrot.lane.b32.xlu1 %v4311_v49, %s7647_s20  ;;  %4317 = vrot.lane.b32.xlu0 %v4316_v50, %s7648_s18  ;;  %v563_v49 = vadd.s32 80, %v5062_v1  ;;  %v4371_v50 = vpack.i.bf16 %v528_v47, %v5249_v37  ;;  %vm5344_vm12 = vcmp.ne.s32.totalorder %v666_v45, 15  ;;  %v4386_v47 = vpack.i.bf16 %v1287_v55, %v1200_v12  ;;  %v5372_v12 = vld [vmem:[%s5073_s29 + $0x60] sm:$0xff]  ;;  %v5392_v45 = vld [vmem:[%s5073_s29 + $0x68] sm:$0xff] }
  0x4e   : > { %v1209_v18 = vrot.slane %v5372_v12, 1 }
  0x51   : > { %4322 = vrot.lane.b32.xlu1 %v4321_v57, %s7648_s18  ;;  %4327 = vrot.lane.b32.xlu0 %v4281_v16, %s7559_s26  ;;  %v5307_v16 = vld [vmem:[%s5073_s29 + $0x50] sm:$0xff]  ;;  %v659_v57 = vand.u32 15, %v563_v49  ;;  %v1087_v49 = vrot.slane %v5372_v12, 7 }
  0x52   : > { %v1205_v28 = vrot.slane %v5307_v16, 1  ;;  %v1083_v59 = vrot.slane %v5307_v16, 7  ;;  %v4381_v37 = vpack.i.bf16 %v5307_v16, %v529_v62  ;;  %v4842_v62 = vld [vmem:[%s7633_s1 + $0x8] sm:$0x3f]   ;;  %s7666_s1 = smov 21  }
  0x53   : > { %vm5361_vm13 = vcmp.ne.s32.totalorder %v659_v57, 0 }
  0x54   : > { %v1206_v38 = vsel %vm7578_vm0, %v1203_v25, %v1205_v28  ;;  %v5366_v14 = vsel %vm7580_vm2, %v1081_v17, %v1083_v59 }
  0x55   : > { %4332 = vrot.lane.b32.xlu1 %v4331_v6, %s7559_s26  ;;  %4337 = vrot.lane.b32.xlu0 %v4336_v7, %s7561_s19  ;;  %s7649_s26 = smov 18   ;;  %v1426_v26 = vsel %vm5244_vm9, %v1206_v38, 0.0  ;;  %v1289_v61 = vsel %vm5344_vm12, %v1206_v38, 0.0  ;;  %v7656_v7 = vmov 0  ;;  %7658 = vst [vmem:[#allocation17_spill] sm:$0xff] %v5366_v14  ;;  %v1327_v25 = vsel %vm5361_vm13, %v5366_v14, 0.0 }
  0x56   : > { %v4376_v54 = vpack.i.bf16 %v1426_v26, %v1204_v43  ;;  %v7657_v7 = vsel %vm5361_vm13, 4294967295, %v7656_v7  ;;  %v4391_v15 = vpack.i.bf16 %v1289_v61, %v1204_v43  ;;  %v5413_v61 = vld [vmem:[%s5073_s29 + $0x70] sm:$0xff] }
  0x59   : > { %4342 = vrot.lane.b32.xlu1 %v4341_v60, %s7561_s19  ;;  %4347 = vrot.lane.b32.xlu0 %v4346_v8, %s7649_s26  ;;  %s7652_s19 = smov 24   ;;  %v4396_v60 = vpack.i.bf16 %v5313_v22, %v1325_v63  ;;  %v4924_v8 = vmov 65535  }
  0x5a   : > { %v2710_v24 = vsel %vm2708_vm14, 4294967295, %v4924_v8  ;;  %v7664_v8 = vmov 0 }
  0x5b   : > { %v2711_v30 = vsel %vm2709_vm15, %v2710_v24, 0 }
  0x5c   : > { %v2713_v39 = vand.u32 %v4842_v62, %v2711_v30  ;;  %v1211_v62 = vrot.slane %v5392_v45, 1 }
  0x5d   : > { %4352 = vrot.lane.b32.xlu1 %v4351_v32, %s7649_s26  ;;  %4357 = vrot.lane.b32.xlu0 %v4331_v6, %s7563_s28  ;;  %v1085_v6 = vrot.slane %v5349_v56, 7  ;;  %v1207_v32 = vrot.slane %v5349_v56, 1 }
  0x5e   : > { %4092 = vmatprep.subr.bf16.mxu0 %v2713_v39  ;;  %4163 = vmatprep.subr.bf16.mxu1 %v2713_v39  ;;  %v1212_v44 = vsel %vm7578_vm0, %v1209_v18, %v1211_v62 }
  0x5f   : > { %v5378_v17 = vsel %vm7580_vm2, %v1083_v59, %v1085_v6  ;;  %v1210_v26 = vsel %vm7578_vm0, %v1207_v32, %v1209_v18  ;;  %4093 = vmatpush3.bf16.msra.mxu0 %v2713_v39  ;;  %4165 = vmatpush3.bf16.msra.mxu1 %v2713_v39  ;;  %v1208_v55 = vsel %vm7578_vm0, %v1205_v28, %v1207_v32  ;;  %v1396_v59 = vsel %vm5267_vm10, %v5366_v14, 0.0 }
  0x60   : > { %7659 = vst [vmem:[#allocation18_spill] sm:$0xff] %v5378_v17  ;;  %v4401_v27 = vpack.i.bf16 %v5378_v17, %v1327_v25  ;;  %v1365_v57 = vsel %vm5344_vm12, %v1210_v26, 0.0  ;;  %v4426_v28 = vpack.i.bf16 %v5378_v17, %v1396_v59  ;;  %v1428_v30 = vsel %vm5334_vm11, %v1210_v26, 0.0 }
  0x61   : > { %4362 = vrot.lane.b32.xlu1 %v4361_v35, %s7563_s28  ;;  %4367 = vrot.lane.b32.xlu0 %v4366_v42, %s7652_s19  ;;  %v1363_v42 = vsel %vm5334_vm11, %v1206_v38, 0.0  ;;  %v4411_v38 = vpack.i.bf16 %v5349_v56, %v5307_v16  ;;  %s7662_s28 = smov 15   ;;  %v4421_v16 = vpack.i.bf16 %v1365_v57, %v1208_v55 }
  0x65   : > { %4372 = vrot.lane.b32.xlu1 %v4371_v50, %s7655_s30  ;;  %4377 = vrot.lane.b32.xlu0 %v4376_v54, %s7652_s19  ;;  %v565_v50 = vadd.s32 96, %v5062_v1  ;;  %v4416_v54 = vpack.i.bf16 %v1363_v42, %v1204_v43  ;;  %v567_v42 = vadd.s32 112, %v5062_v1 }
  0x69   : > { %4382 = vrot.lane.b32.xlu1 %v4381_v37, %s7655_s30  ;;  %4387 = vrot.lane.b32.xlu0 %v4386_v47, %s7647_s20  ;;  %v1089_v37 = vrot.slane %v5392_v45, 7  ;;  %v5410_v47 = vsel %vm7580_vm2, %v1085_v6, %v1087_v49 }
  0x6a   : > { %7661 = vst [vmem:[#allocation19_spill] sm:$0xff] %v5410_v47  ;;  %v1398_v63 = vsel %vm5361_vm13, %v5410_v47, 0.0 }
  0x6b   : > { %v5419_v43 = vsel %vm7580_vm2, %v1087_v49, %v1089_v37  ;;  %v4441_v49 = vpack.i.bf16 %v5392_v45, %v5372_v12 }
  0x6c   : > { %7663 = vst [vmem:[#allocation20_spill] sm:$0xff] %v5419_v43  ;;  %v4431_v25 = vpack.i.bf16 %v5419_v43, %v1398_v63  ;;  %v5470_v63 = vld [vmem:[%s5073_s29 + $0x78] sm:$0xff] }
  0x6d   : > { %4392 = vrot.lane.b32.xlu1 %v4391_v15, %s7647_s20  ;;  %4397 = vrot.lane.b32.xlu0 %v4396_v60, %s7648_s18  ;;  %v1213_v15 = vrot.slane %v5413_v61, 1  ;;  %v566_v60 = vadd.s32 104, %v5062_v1 }
  0x6f   : > { %v1214_v32 = vsel %vm7578_vm0, %v1211_v62, %v1213_v15  ;;  %v680_v39 = vand.u32 15, %v566_v60  ;;  %v1091_v62 = vrot.slane %v5413_v61, 7 }
  0x71   : > { %4402 = vrot.lane.b32.xlu1 %v4401_v27, %s7648_s18  ;;  %4407 = vrot.lane.b32.xlu0 %v4361_v35, %s7660_s23  ;;  %v673_v35 = vand.u32 15, %v565_v50  ;;  %v568_v27 = vadd.s32 120, %v5062_v1  ;;  %v4446_v50 = vpack.i.bf16 %v1428_v30, %v1208_v55  ;;  %vm5454_vm3 = vcmp.ne.s32.totalorder %v680_v39, 15 }
  0x72   : > { %v1291_v34 = vsel %vm5454_vm3, %v1210_v26, 0.0 }
  0x73   : > { %vm5430_vm1 = vcmp.ne.s32.totalorder %v673_v35, 0  ;;  %v694_v59 = vand.u32 15, %v568_v27  ;;  %v569_v35 = vadd.s32 128, %v5062_v1  ;;  %v1093_v27 = vrot.slane %v5470_v63, 7 }
  0x74   : > { %v7665_v8 = vsel %vm5430_vm1, 4294967295, %v7664_v8  ;;  %v1329_v39 = vsel %vm5430_vm1, %v5410_v47, 0.0 }
  0x75   : > { %4412 = vrot.lane.b32.xlu1 %v4411_v38, %s7660_s23  ;;  %4417 = vrot.lane.b32.xlu0 %v4416_v54, %s7662_s28  ;;  %v1430_v54 = vsel %vm5344_vm12, %v1214_v32, 0.0  ;;  %vm5465_vm4 = vcmp.ne.s32.totalorder %v694_v59, 15  ;;  %v701_v60 = vand.u32 15, %v569_v35  ;;  %v4476_v59 = vpack.i.bf16 %v5419_v43, %v1329_v39 }
  0x76   : > { %v1293_v30 = vsel %vm5465_vm4, %v1214_v32, 0.0 }
  0x77   : > { %vm5493_vm9 = vcmp.ne.s32.totalorder %v701_v60, 0  ;;  %v571_v60 = vadd.s32 144, %v5062_v1 }
  0x79   : > { %4422 = vrot.lane.b32.xlu1 %v4421_v16, %s7662_s28  ;;  %4427 = vrot.lane.b32.xlu0 %v4426_v28, %s7649_s26  ;;  %v687_v16 = vand.u32 15, %v567_v42  ;;  %v4456_v28 = vpack.i.bf16 %v1430_v54, %v1212_v44  ;;  %v5491_v42 = vsel %vm7580_vm2, %v1089_v37, %v1091_v62  ;;  %v4471_v54 = vpack.i.bf16 %v1293_v30, %v1212_v44 }
  0x7a   : > { %7674 = vst [vmem:[#allocation22_spill] sm:$0xff] %v5491_v42  ;;  %v5507_v37 = vsel %vm7580_vm2, %v1091_v62, %v1093_v27  ;;  %v5520_v62 = vld [vmem:[%s5073_s29 + $0x88] sm:$0xff]  ;;  %v4491_v30 = vpack.i.bf16 %v5470_v63, %v5413_v61 }
  0x7b   : > { %vm5473_vm8 = vcmp.ne.s32.totalorder %v687_v16, 0  ;;  %7678 = vst [vmem:[#allocation24_spill] sm:$0xff] %v5507_v37  ;;  %v1215_v16 = vrot.slane %v5470_v63, 1 }
  0x7c   : > { %v1331_v35 = vsel %vm5473_vm8, %v5491_v42, 0.0 }
  0x7d   : > { %4432 = vrot.lane.b32.xlu1 %v4431_v25, %s7649_s26  ;;  %4437 = vrot.lane.b32.xlu0 %v4411_v38, %s7666_s1  ;;  %v4451_v38 = vpack.i.bf16 %v5372_v12, %v5349_v56  ;;  %v7671_v25 = vmov 0  ;;  %v4461_v56 = vpack.i.bf16 %v5413_v61, %v5392_v45  ;;  %v4466_v12 = vpack.i.bf16 %v1291_v34, %v1208_v55  ;;  %v5498_v55 = vld [vmem:[%s5073_s29 + $0x80] sm:$0xff] }
  0x7e   : > { %v7672_v25 = vsel %vm5473_vm8, 4294967295, %v7671_v25  ;;  %v7675_v45 = vmov 0  ;;  %v1367_v34 = vsel %vm5454_vm3, %v1214_v32, 0.0  ;;  %v1400_v32 = vsel %vm5430_vm1, %v5491_v42, 0.0 }
  0x7f   : > { %7673 = vst [vmem:[#allocation21_spill] sm:$0xff] %v7672_v25  ;;  %v7676_v45 = vsel %vm5493_vm9, 4294967295, %v7675_v45  ;;  %v4496_v39 = vpack.i.bf16 %v1367_v34, %v1212_v44  ;;  %v5548_v34 = vld [vmem:[%s5073_s29 + $0x90] sm:$0xff]  ;;  %v4531_v18 = vpack.i.bf16 %v5498_v55, %v5470_v63  ;;  %vm7707_vm1 = vcmask 97280  }
  0x80   : > { %7677 = vst [vmem:[#allocation23_spill] sm:$0xff] %v7676_v45  ;;  %vm7708_vm13 = vmmov %vm7707_vm1 }
  0x81   : > { %4442 = vrot.lane.b32.xlu1 %v4441_v49, %s7666_s1  ;;  %4447 = vrot.lane.b32.xlu0 %v4446_v50, %s7652_s19  ;;  %v1099_v50 = vrot.slane %v5548_v34, 7 }
  0x85   : > { %4452 = vrot.lane.b32.xlu1 %v4451_v38, %s7655_s30  ;;  %4457 = vrot.lane.b32.xlu0 %v4456_v28, %s7652_s19  ;;  %v1217_v38 = vrot.slane %v5498_v55, 1  ;;  %v4481_v28 = vpack.i.bf16 %v5507_v37, %v1331_v35 }
  0x89   : > { %4462 = vrot.lane.b32.xlu1 %v4461_v56, %s7655_s30  ;;  %4467 = vrot.lane.b32.xlu0 %v4466_v12, %s7647_s20  ;;  %v5524_v56 = vsel %vm7578_vm0, %v1215_v16, %v1217_v38  ;;  %v1095_v12 = vrot.slane %v5498_v55, 7 }
  0x8a   : > { %v1369_v35 = vsel %vm5465_vm4, %v5524_v56, 0.0  ;;  %v1432_v11 = vsel %vm5454_vm3, %v5524_v56, 0.0  ;;  %vm7696_vm3 = vcmask 23552  }
  0x8b   : > { %v5545_v44 = vsel %vm7580_vm2, %v1093_v27, %v1095_v12 }
  0x8c   : > { %7679 = vst [vmem:[#allocation25_spill] sm:$0xff] %v5545_v44 }
  0x8d   : > { %4472 = vrot.lane.b32.xlu1 %v4471_v54, %s7647_s20  ;;  %4477 = vrot.lane.b32.xlu0 %v4476_v59, %s7648_s18  ;;  %v1097_v54 = vrot.slane %v5520_v62, 7  ;;  %v5538_v59 = vsel %vm7578_vm0, %v1213_v15, %v1215_v16  ;;  %v4506_v15 = vpack.i.bf16 %v5507_v37, %v1400_v32  ;;  %v1221_v32 = vrot.slane %v5548_v34, 1 }
  0x8e   : > { %v4501_v61 = vpack.i.bf16 %v1369_v35, %v5538_v59 }
  0x8f   : > { %v5555_v16 = vsel %vm7580_vm2, %v1095_v12, %v1097_v54  ;;  %v570_v12 = vadd.s32 136, %v5062_v1  ;;  %v5581_v6 = vsel %vm7580_vm2, %v1097_v54, %v1099_v50  ;;  %v4526_v54 = vpack.i.bf16 %v1432_v11, %v5538_v59 }
  0x90   : > { %7680 = vst [vmem:[#allocation26_spill] sm:$0xff] %v5555_v16  ;;  %7683 = vst [vmem:[#allocation27_spill] sm:$0xff] %v5581_v6 }
  0x91   : > { %4482 = vrot.lane.b32.xlu1 %v4481_v28, %s7648_s18  ;;  %4487 = vrot.lane.b32.xlu0 %v4441_v49, %s7660_s23  ;;  %v715_v49 = vand.u32 15, %v571_v60  ;;  %v573_v28 = vadd.s32 160, %v5062_v1  ;;  %v1402_v60 = vsel %vm5473_vm8, %v5545_v44, 0.0 }
  0x93   : > { %vm5560_vm11 = vcmp.ne.s32.totalorder %v715_v49, 0  ;;  %v729_v26 = vand.u32 15, %v573_v28  ;;  %v572_v49 = vadd.s32 152, %v5062_v1  ;;  %v4511_v28 = vpack.i.bf16 %v5555_v16, %v1402_v60 }
  0x95   : > { %4492 = vrot.lane.b32.xlu1 %v4491_v30, %s7660_s23  ;;  %4497 = vrot.lane.b32.xlu0 %v4496_v39, %s7662_s28  ;;  %v1219_v39 = vrot.slane %v5520_v62, 1  ;;  %vm5583_vm12 = vcmp.ne.s32.totalorder %v729_v26, 0  ;;  %v722_v60 = vand.u32 15, %v572_v49  ;;  %v5602_v26 = vpack.i.bf16 %v5520_v62, %v5498_v55 }
  0x96   : > { %v7685_v52 = vsel %vm5583_vm12, 4294967295, %v7684_v52  ;;  %v1223_v49 = vrot.slane %v5606_v33, 1  ;;  %v1333_v55 = vsel %vm5493_vm9, %v5545_v44, 0.0 }
  0x97   : > { %v5565_v24 = vpop.permute.xlu0 %4217  ;;  %7686 = vst [vmem:[#allocation28_spill] sm:$0xff] %v7685_v52  ;;  %vm5621_vm15 = vcmp.ne.s32.totalorder %v722_v60, 15 }
  0x98   : > { %v5641_v3 = vsel %vm7578_vm0, %v1223_v49, %v7691_v9  ;;  %v1335_v9 = vsel %vm5560_vm11, %v5581_v6, 0.0 }
  0x99   : > { %4502 = vrot.lane.b32.xlu1 %v4501_v61, %s7662_s28  ;;  %4507 = vrot.lane.b32.xlu0 %v4506_v15, %s7649_s26  ;;  %v1222_v61 = vsel %vm7578_vm0, %v1219_v39, %v1221_v32  ;;  %v708_v15 = vand.u32 15, %v570_v12  ;;  %v1220_v12 = vsel %vm7578_vm0, %v1217_v38, %v1219_v39  ;;  %v1101_v38 = vrot.slane %v5606_v33, 7 }
  0x9a   : > { %v1434_v20 = vsel %vm5465_vm4, %v1222_v61, 0.0  ;;  %v1297_v63 = vsel %vm5621_vm15, %v1222_v61, 0.0 }
  0x9b   : > { %v5587_v35 = vpop.permute.xlu0 %4222  ;;  %v5589_v23 = vpop.permute.xlu1 %4227  ;;  %vm5617_vm14 = vcmp.ne.s32.totalorder %v708_v15, 15  ;;  %v4536_v39 = vpack.i.bf16 %v1434_v20, %v1220_v12  ;;  %v1103_v15 = vrot.slane %v5593_v13, 7  ;;  %v4541_v20 = vpack.i.bf16 %v5548_v34, %v5520_v62 }
  0x9c   : > { %v1295_v60 = vsel %vm5617_vm14, %v5524_v56, 0.0  ;;  %v5658_v56 = vsel %vm7580_vm2, %v1099_v50, %v1101_v38  ;;  %v1371_v2 = vsel %vm5617_vm14, %v1222_v61, 0.0  ;;  %v1404_v62 = vsel %vm5493_vm9, %v5581_v6, 0.0 }
  0x9d   : > { %4512 = vrot.lane.b32.xlu1 %v4511_v28, %s7649_s26  ;;  %4517 = vrot.lane.b32.xlu0 %v4491_v30, %s7666_s1  ;;  %v5632_v28 = vld [vmem:[%s5073_s29 + $0xa8] sm:$0xff]  ;;  %7692 = vst [vmem:[#allocation29_spill] sm:$0xff] %v5658_v56  ;;  %v4546_v37 = vpack.i.bf16 %v1295_v60, %v5538_v59  ;;  %v5670_v50 = vsel %vm7578_vm0, %v1221_v32, %v1223_v49  ;;  %v1373_v61 = vsel %vm5621_vm15, %v5641_v3, 0.0  ;;  %v4219_v59 = vunpack.i.l.bf16 %v5565_v24 }
  0x9e   : > { %v5676_v44 = vsel %vm7580_vm2, %v1101_v38, %v1103_v15  ;;  %v4551_v4 = vpack.i.bf16 %v1297_v63, %v1220_v12  ;;  %v4556_v6 = vpack.i.bf16 %v5555_v16, %v1333_v55  ;;  %v4561_v49 = vpack.i.bf16 %v5658_v56, %v1335_v9  ;;  %v5695_v63 = vld [vmem:[%s5073_s29 + $0xb0] sm:$0xff] }
  0x9f   : > { %v5613_v57 = vpop.permute.xlu1 %4232  ;;  %v5615_v30 = vpop.permute.xlu0 %4237  ;;  %7693 = vst [vmem:[#allocation30_spill] sm:$0xff] %v5676_v44  ;;  %v5689_v60 = vpack.i.bf16 %v1371_v2, %v1220_v12  ;;  %v5692_v38 = vpack.i.bf16 %v5658_v56, %v1404_v62  ;;  %v7694_v55 = vrot.slane %v5632_v28, 7  ;;  %v4220_v2 = vunpack.i.h.bf16 %v5565_v24 }
  0xa0   : > { %v4224_v12 = vunpack.i.l.bf16 %v5587_v35  ;;  %v5720_v24 = vadd.s32 168, %v5062_v1  ;;  %v4234_v56 = vunpack.i.l.bf16 %v5613_v57  ;;  %v4239_v45 = vunpack.i.l.bf16 %v5615_v30 }
  0xa1   : > { %4522 = vrot.lane.b32.xlu1 %v5602_v26, %s7666_s1  ;;  %4527 = vrot.lane.b32.xlu0 %v4526_v54, %s7652_s19  ;;  %v5703_v16 = vsel %vm7580_vm2, %v1103_v15, %v7694_v55  ;;  %v4230_v15 = vunpack.i.h.bf16 %v5589_v23  ;;  %v4229_v55 = vunpack.i.l.bf16 %v5589_v23  ;;  %v4240_v23 = vunpack.i.h.bf16 %v5615_v30  ;;  %vm7698_vm2 = vmmov %vm7696_vm3 }
  0xa2   : > { %7695 = vst [vmem:[#allocation31_spill] sm:$0xff] %v5703_v16  ;;  %v2368_v17 = vsel %vm7698_vm2, %v5129_v36, %v4224_v12  ;;  %vm7699_vm0 = vcmask 48128   ;;  %vm7608_vm2 = vcmask 220160   ;;  %vm7703_vm9 = vcmask 72704  }
  0xa3   : > { %v5643_v54 = vpop.permute.xlu1 %4247  ;;  %v5645_v51 = vpop.permute.xlu0 %4242  ;;  %vm7700_vm4 = vmmov %vm7699_vm0 }
  0xa4   : > { %v4250_v9 = vunpack.i.h.bf16 %v5643_v54  ;;  %v4249_v43 = vunpack.i.l.bf16 %v5643_v54  ;;  %v4245_v47 = vunpack.i.h.bf16 %v5645_v51  ;;  %v4244_v25 = vunpack.i.l.bf16 %v5645_v51  ;;  %vm7704_vm8 = vmmov %vm7703_vm9 }
  0xa5   : > { %4532 = vrot.lane.b32.xlu1 %v4531_v18, %s7655_s30  ;;  %4537 = vrot.lane.b32.xlu0 %v4536_v39, %s7652_s19  ;;  %v5681_v18 = vpack.i.bf16 %v5606_v33, %v5548_v34  ;;  %v5698_v34 = vpack.i.bf16 %v1373_v61, %v5670_v50  ;;  %v5726_v61 = vadd.s32 184, %v5062_v1 }
  0xa7   : > { %v5684_v39 = vpop.permute.xlu1 %4252  ;;  %v5686_v32 = vpop.permute.xlu0 %4257 }
  0xa8   : > { %v4260_v29 = vunpack.i.h.bf16 %v5686_v32 }
  0xa9   : > { %4542 = vrot.lane.b32.xlu1 %v4541_v20, %s7655_s30  ;;  %4547 = vrot.lane.b32.xlu0 %v4546_v37, %s7647_s20  ;;  %v2366_v20 = vsel %vm7696_vm3, 0.0, %v4219_v59  ;;  %v4235_v37 = vunpack.i.h.bf16 %v5613_v57  ;;  %v7697_v59 = vsel %vm5110_vm5, %v5115_v31, 0.0  ;;  %v4259_v31 = vunpack.i.l.bf16 %v5686_v32  ;;  %vm7701_vm5 = vmmov %vm7699_vm0 }
  0xaa   : > { %v2367_v57 = vsel %vm7696_vm3, %v7697_v59, %v4220_v2  ;;  %v2399_v30 = vsel %vm7699_vm0, %v2366_v20, %v4230_v15  ;;  %v2398_v54 = vsel %vm7700_vm4, %v2366_v20, %v4229_v55  ;;  %vm7702_vm3 = vmmov %vm7699_vm0 }
  0xab   : > { %v4263_v42 = vpop.permute.xlu1 %4262  ;;  %v4268_v62 = vpop.permute.xlu0 %4267  ;;  %v2400_v2 = vsel %vm7701_vm5, %v2367_v57, %v4234_v56  ;;  %v2401_v36 = vsel %vm7702_vm3, %v2368_v17, %v4235_v37  ;;  %vm7705_vm0 = vmmov %vm7704_vm8  ;;  %v4255_v17 = vunpack.i.h.bf16 %v5684_v39  ;;  %vm7713_vm5 = vcmask 171008  }
  0xac   : > { %v4270_v12 = vunpack.i.h.bf16 %v4268_v62  ;;  %v4269_v59 = vunpack.i.l.bf16 %v4268_v62  ;;  %v2433_v15 = vsel %vm7705_vm0, %v2400_v2, %v4249_v43  ;;  %vm7706_vm4 = vmmov %vm7705_vm0  ;;  %v4254_v62 = vunpack.i.l.bf16 %v5684_v39 }
  0xad   : > { %4552 = vrot.lane.b32.xlu1 %v4551_v4, %s7647_s20  ;;  %4557 = vrot.lane.b32.xlu0 %v4556_v6, %s7648_s18  ;;  %v2432_v4 = vsel %vm7703_vm9, %v2399_v30, %v4240_v23  ;;  %v2431_v6 = vsel %vm7704_vm8, %v2398_v54, %v4239_v45  ;;  %v2434_v55 = vsel %vm7706_vm4, %v2401_v36, %v4250_v9  ;;  %vm7709_vm8 = vcmask 121856   ;;  %vm7714_vm3 = vmmov %vm7713_vm5 }
  0xae   : > { %v2464_v20 = vsel %vm7707_vm1, %v2431_v6, %v4244_v25  ;;  %v2465_v32 = vsel %vm7708_vm13, %v2432_v4, %v4245_v47  ;;  %vm7710_vm9 = vmmov %vm7709_vm8  ;;  %v4265_v9 = vunpack.i.h.bf16 %v4263_v42  ;;  %v4264_v37 = vunpack.i.l.bf16 %v4263_v42 }
  0xaf   : > { %v4273_v14 = vpop.permute.xlu1 %4272  ;;  %v4278_v51 = vpop.permute.xlu0 %4277  ;;  %v2497_v45 = vsel %vm7709_vm8, %v2464_v20, %v4259_v31  ;;  %v2498_v43 = vsel %vm7710_vm9, %v2465_v32, %v4260_v29  ;;  %vm7711_vm13 = vcmask 146432   ;;  %vm7715_vm0 = vcmask 97280  }
  0xb0   : > { %v4280_v56 = vunpack.i.h.bf16 %v4278_v51  ;;  %v4279_v57 = vunpack.i.l.bf16 %v4278_v51  ;;  %v2530_v47 = vsel %vm7711_vm13, %v2497_v45, %v4269_v59  ;;  %vm7712_vm1 = vmmov %vm7711_vm13  ;;  %v4274_v54 = vunpack.i.l.bf16 %v4273_v14 }
  0xb1   : > { %4562 = vrot.lane.b32.xlu1 %v4561_v49, %s7648_s18  ;;  %4567 = vrot.lane.b32.xlu0 %v5602_v26, %s7660_s23  ;;  %v2531_v30 = vsel %vm7712_vm1, %v2498_v43, %v4270_v12  ;;  %v4275_v49 = vunpack.i.h.bf16 %v4273_v14  ;;  %v2466_v29 = vsel %vm7715_vm0, %v2433_v15, %v4254_v62  ;;  %vm7716_vm4 = vmmov %vm7715_vm0  ;;  %vm7717_vm8 = vcmask 195584  }
  0xb2   : > { %v2563_v42 = vsel %vm7713_vm5, %v2530_v47, %v4279_v57  ;;  %v2564_v39 = vsel %vm7714_vm3, %v2531_v30, %v4280_v56  ;;  %v2467_v31 = vsel %vm7716_vm4, %v2434_v55, %v4255_v17  ;;  %vm7718_vm9 = vmmov %vm7717_vm8  ;;  %vm7719_vm13 = vcmask 121856  }
  0xb3   : > { %v4283_v25 = vpop.permute.xlu1 %4282  ;;  %v4288_v23 = vpop.permute.xlu0 %4287  ;;  %v2499_v59 = vsel %vm7719_vm13, %v2466_v29, %v4264_v37  ;;  %vm7720_vm1 = vmmov %vm7719_vm13  ;;  %v575_v32 = vadd.s32 176, %v5062_v1  ;;  %vm7721_vm5 = vcmask 146432   ;;  %vm7723_vm0 = vcmask 171008  }
  0xb4   : > { %v4290_v2 = vunpack.i.h.bf16 %v4288_v23  ;;  %v4289_v26 = vunpack.i.l.bf16 %v4288_v23  ;;  %v4285_v36 = vunpack.i.h.bf16 %v4283_v25  ;;  %v4284_v51 = vunpack.i.l.bf16 %v4283_v25  ;;  %vm7722_vm3 = vmmov %vm7721_vm5 }
  0xb5   : > { %4572 = vrot.lane.b32.xlu1 %v5681_v18, %s7660_s23  ;;  %4577 = vrot.lane.b32.xlu0 %v5689_v60, %s7662_s28  ;;  %v2500_v4 = vsel %vm7720_vm1, %v2467_v31, %v4265_v9  ;;  %v2532_v56 = vsel %vm7721_vm5, %v2499_v59, %v4274_v54  ;;  %vm7724_vm4 = vmmov %vm7723_vm0  ;;  %v7725_v45 = vsel %vm5560_vm11, %v5676_v44, 0.0  ;;  %v736_v9 = vand.u32 15, %v5720_v24  ;;  %v5809_v54 = vld [vmem:[%s5073_s29 + $0xc0] sm:$0xff] }
  0xb6   : > { %v2596_v14 = vsel %vm7717_vm8, %v2563_v42, %v4289_v26  ;;  %v2597_v12 = vsel %vm7718_vm9, %v2564_v39, %v4290_v2  ;;  %v2533_v15 = vsel %vm7722_vm3, %v2500_v4, %v4275_v49  ;;  %v2565_v17 = vsel %vm7723_vm0, %v2532_v56, %v4284_v51  ;;  %vm7726_vm9 = vmmov %vm7717_vm8  ;;  %v5816_v26 = vld [vmem:[%s5073_s29 + $0xb8] sm:$0xff]  ;;  %v5847_v4 = vld [vmem:[%s5073_s29 + $0xc8] sm:$0xff] }
  0xb7   : > { %v5776_v6 = vpop.permute.xlu1 %4292  ;;  %v4298_v20 = vpop.permute.xlu0 %4297  ;;  %v2628_v60 = vpack.c.bf16 %v2597_v12, %v2596_v14  ;;  %v2566_v62 = vsel %vm7724_vm4, %v2533_v15, %v4285_v36  ;;  %v4591_v43 = vpack.i.bf16 %v5703_v16, %v7725_v45  ;;  %v7727_v23 = vrot.slane %v5695_v63, 1 }
  0xb8   : > { %v4300_v57 = vunpack.i.h.bf16 %v4298_v20  ;;  %v4299_v55 = vunpack.i.l.bf16 %v4298_v20  ;;  %vm7729_vm13 = vcmask 1046528   ;;  %v750_v47 = vand.u32 15, %v5726_v61 }
  0xb9   : > { %4582 = vrot.lane.b32.xlu1 %v5698_v34, %s7662_s28  ;;  %4587 = vrot.lane.b32.xlu0 %v5692_v38, %s7649_s26  ;;  %v7728_v34 = vrot.slane %v5632_v28, 1  ;;  %v5813_v2 = vpack.i.bf16 %v5632_v28, %v5593_v13  ;;  %v743_v36 = vand.u32 15, %v575_v32  ;;  %v1107_v51 = vrot.slane %v5695_v63, 7  ;;  %vm7733_vm1 = vmmov %vm7729_vm13 }
  0xba   : > { %v2598_v37 = vsel %vm7717_vm8, %v2565_v17, %v4299_v55  ;;  %v2599_v25 = vsel %vm7726_vm9, %v2566_v62, %v4300_v57  ;;  %4094 = vmatprep.mubr.msk.bf16.mxu0 %vm7608_vm2, %v2628_v60  ;;  %v7730_v61 = vsel %vm5617_vm14, %v5641_v3, 0.0  ;;  %v7732_v29 = vrot.slane %v5593_v13, 1  ;;  %vm7744_vm0 = vmmov %vm7733_vm1 }
  0xbb   : > { %v5801_v38 = vsel %vm7729_vm13, %v7728_v34, %v7727_v23  ;;  %v5804_v30 = vpop.permute.xlu1 %4302  ;;  %v5806_v49 = vpop.permute.xlu0 %4307  ;;  %v2629_v24 = vpack.c.bf16 %v2599_v25, %v2598_v37  ;;  %v4606_v42 = vpack.i.bf16 %v7730_v61, %v5670_v50  ;;  %v7731_v39 = vmov %v7728_v34  ;;  %vm7750_vm9 = vmmov %vm7744_vm0 }
  0xbc   : > { %v1228_v31 = vsel %vm7733_vm1, %v7732_v29, %v7731_v39  ;;  %v1438_v14 = vsel %vm5621_vm15, %v5801_v38, 0.0  ;;  %vm5835_vm5 = vcmp.ne.s32.totalorder %v736_v9, 15  ;;  %vm5840_vm3 = vcmp.ne.s32.totalorder %v750_v47, 15  ;;  %v5901_v47 = vld [vmem:[%s5073_s29 + $0xd0] sm:$0xff]  ;;  %vm7753_vm1 = vmmov %vm7744_vm0 }
  0xbd   : > { %4592 = vrot.lane.b32.xlu1 %v4591_v43, %s7649_s26  ;;  %4597 = vrot.lane.b32.xlu0 %v5681_v18, %s7666_s1  ;;  %v1231_v18 = vrot.slane %v5816_v26, 1  ;;  %v7594_v59 = vrot.slane %v5809_v54, 1  ;;  %v1111_v20 = vrot.slane %v5809_v54, 7  ;;  %v1109_v32 = vrot.slane %v5816_v26, 7 }
  0xbe   : > { %4095 = vmatmul.mubr.msk.bf16.vlgmr.msra.gmra.mrb[0].mxu0 %vm7608_vm2, %v2629_v24  ;;  %v4611_v56 = vpack.i.bf16 %v5593_v13, %v5606_v33  ;;  %v1299_v15 = vsel %vm5835_vm5, %v5641_v3, 0.0  ;;  %vm5860_vm14 = vcmp.ne.s32.totalorder %v743_v36, 0  ;;  %v7738_v57 = vmov 0 }
  0xbf   : > { %v5850_v11 = vpop.permute.xlu1 %4312  ;;  %v5852_v60 = vpop.permute.xlu0 %4317  ;;  %v7739_v57 = vsel %vm5860_vm14, 4294967295, %v7738_v57  ;;  %v7741_v55 = vrot.slane %v5632_v28, 7  ;;  %vm7742_vm15 = vcmask 1040384   ;;  %v4616_v33 = vpack.i.bf16 %v1438_v14, %v1228_v31 }
  0xc0   : > { %7740 = vst [vmem:[#allocation32_spill] sm:$0xff] %v7739_v57  ;;  %v1301_v3 = vsel %vm5840_vm3, %v5801_v38, 0.0  ;;  %v1337_v13 = vsel %vm5583_vm12, %v5676_v44, 0.0  ;;  %v7593_v62 = vrot.slane %v5847_v4, 7  ;;  %v4621_v45 = vpack.i.bf16 %v5695_v63, %v5632_v28  ;;  %vm7745_vm4 = vmmov %vm7742_vm15 }
  0xc1   : > { %v5867_v17 = vsel %vm7742_vm15, %v7741_v55, %v1107_v51  ;;  %4602 = vrot.lane.b32.xlu1 %v5813_v2, %s7666_s1  ;;  %4607 = vrot.lane.b32.xlu0 %v4606_v42, %s7652_s19  ;;  %v5884_v43 = vsel %vm7744_vm0, %v1231_v18, %v7594_v59  ;;  %v5887_v9 = vsel %vm7745_vm4, %v1109_v32, %v1111_v20  ;;  %vm7747_vm8 = vmmov %vm7745_vm4  ;;  %v1375_v61 = vsel %vm5835_vm5, %v5801_v38, 0.0 }
  0xc2   : > { %7743 = vst [vmem:[#allocation33_spill] sm:$0xff] %v5867_v17  ;;  %7746 = vst [vmem:[#allocation34_spill] sm:$0xff] %v5887_v9  ;;  %v4626_v23 = vpack.i.bf16 %v1299_v15, %v5670_v50  ;;  %v5895_v34 = vsel %vm7747_vm8, %v1107_v51, %v1109_v32  ;;  %v1339_v28 = vsel %vm5860_vm14, %v5867_v17, 0.0  ;;  %v4631_v24 = vpack.i.bf16 %v1301_v3, %v1228_v31 }
  0xc3   : > { %v5889_v37 = vpop.permute.xlu1 %4322  ;;  %v5891_v25 = vpop.permute.xlu0 %4327  ;;  %7748 = vst [vmem:[#allocation35_spill] sm:$0xff] %v5895_v34  ;;  %v4636_v36 = vpack.i.bf16 %v5703_v16, %v1337_v13  ;;  %v1408_v50 = vsel %vm5583_vm12, %v5867_v17, 0.0  ;;  %v7749_v51 = vrot.slane %v5695_v63, 1  ;;  %v1377_v39 = vsel %vm5840_vm3, %v5884_v43, 0.0  ;;  %vm7751_vm13 = vmmov %vm7745_vm4 }
  0xc4   : > { %v5923_v38 = vsel %vm7751_vm13, %v1111_v20, %v7593_v62  ;;  %v1410_v29 = vsel %vm5860_vm14, %v5887_v9, 0.0  ;;  %v4641_v14 = vpack.i.bf16 %v5895_v34, %v1339_v28  ;;  %v5931_v32 = vpack.i.bf16 %v5816_v26, %v5695_v63 }
  0xc5   : > { %4612 = vrot.lane.b32.xlu1 %v4611_v56, %s7655_s30  ;;  %4617 = vrot.lane.b32.xlu0 %v4616_v33, %s7652_s19  ;;  %v5915_v42 = vsel %vm7750_vm9, %v7749_v51, %v1231_v18  ;;  %7752 = vst [vmem:[#allocation36_spill] sm:$0xff] %v5923_v38  ;;  %v7596_v18 = vrot.slane %v5847_v4, 1  ;;  %v7595_v56 = vrot.slane %v5901_v47, 1  ;;  %v4225_v15 = vunpack.i.h.bf16 %v5587_v35 }
  0xc6   : > { %v4295_v55 = vunpack.i.h.bf16 %v5776_v6  ;;  %v5939_v3 = vpack.i.bf16 %v1375_v61, %v1228_v31  ;;  %v5942_v13 = vpack.i.bf16 %v5895_v34, %v1408_v50  ;;  %v5945_v28 = vpack.i.bf16 %v1377_v39, %v5915_v42 }
  0xc7   : > { %v5937_v20 = vpop.permute.xlu1 %4332  ;;  %v4338_v33 = vpop.permute.xlu0 %4337  ;;  %v5948_v63 = vpack.i.bf16 %v5923_v38, %v1410_v29  ;;  %v4294_v51 = vunpack.i.l.bf16 %v5776_v6  ;;  %v4304_v62 = vunpack.i.l.bf16 %v5804_v30  ;;  %v5958_v31 = vadd.s32 200, %v5062_v1 }
  0xc8   : > { %v5961_v61 = vadd.s32 216, %v5062_v1  ;;  %v4310_v50 = vunpack.i.h.bf16 %v5806_v49  ;;  %v4309_v39 = vunpack.i.l.bf16 %v5806_v49  ;;  %v5970_v6 = vsel %vm7753_vm1, %v7596_v18, %v7595_v56 }
  0xc9   : > { %4622 = vrot.lane.b32.xlu1 %v4621_v45, %s7655_s30  ;;  %4627 = vrot.lane.b32.xlu0 %v4626_v23, %s7647_s20  ;;  %v5973_v45 = vadd.s32 192, %v5062_v1  ;;  %v7754_v23 = vsel %vm5197_vm6, %v5134_v40, 0.0  ;;  %vm7755_vm15 = vcmask 23552   ;;  %v7756_v49 = vsel %vm5218_vm7, %v5171_v58, 0.0 }
  0xca   : > { %v2369_v29 = vsel %vm7755_vm15, %v7754_v23, %v4225_v15  ;;  %vm7757_vm0 = vmmov %vm7755_vm15  ;;  %v4315_v35 = vunpack.i.h.bf16 %v5850_v11  ;;  %v4314_v56 = vunpack.i.l.bf16 %v5850_v11  ;;  %v4320_v16 = vunpack.i.h.bf16 %v5852_v60 }
  0xcb   : > { %v2371_v59 = vsel %vm7757_vm0, %v7756_v49, %v4295_v55  ;;  %v4343_v18 = vpop.permute.xlu1 %4342  ;;  %v4348_v34 = vpop.permute.xlu0 %4347  ;;  %v4319_v10 = vunpack.i.l.bf16 %v5852_v60  ;;  %v4325_v40 = vunpack.i.h.bf16 %v5889_v37  ;;  %v4324_v15 = vunpack.i.l.bf16 %v5889_v37  ;;  %vm7758_vm6 = vmmov %vm7757_vm0 }
  0xcc   : > { %v2370_v21 = vsel %vm7758_vm6, %v5137_v41, %v4294_v51  ;;  %vm7759_vm7 = vmmov %vm7757_vm0  ;;  %v4330_v55 = vunpack.i.h.bf16 %v5891_v25  ;;  %v4329_v11 = vunpack.i.l.bf16 %v5891_v25  ;;  %vm7760_vm4 = vcmask 48128  }
  0xcd   : > { %v2372_v58 = vsel %vm7759_vm7, %v5187_v5, %v4304_v62  ;;  %4632 = vrot.lane.b32.xlu1 %v4631_v24, %s7647_s20  ;;  %4637 = vrot.lane.b32.xlu0 %v4636_v36, %s7648_s18  ;;  %v2403_v60 = vsel %vm7760_vm4, %v2370_v21, %v4310_v50  ;;  %vm7761_vm8 = vmmov %vm7760_vm4  ;;  %v4340_v49 = vunpack.i.h.bf16 %v4338_v33  ;;  %v4339_v37 = vunpack.i.l.bf16 %v4338_v33 }
  0xce   : > { %v2402_v23 = vsel %vm7761_vm8, %v2369_v29, %v4309_v39  ;;  %vm7762_vm9 = vmmov %vm7760_vm4  ;;  %v4350_v51 = vunpack.i.h.bf16 %v4348_v34  ;;  %v4349_v5 = vunpack.i.l.bf16 %v4348_v34  ;;  %vm7764_vm1 = vcmask 72704  }
  0xcf   : > { %v2404_v52 = vsel %vm7762_vm9, %v2371_v59, %v4314_v56  ;;  %vm7763_vm13 = vmmov %vm7760_vm4  ;;  %v4353_v62 = vpop.permute.xlu1 %4352  ;;  %v4358_v57 = vpop.permute.xlu0 %4357  ;;  %v2435_v25 = vsel %vm7764_vm1, %v2402_v23, %v4319_v10  ;;  %vm7768_vm7 = vcmask 97280   ;;  %v4335_v34 = vunpack.i.h.bf16 %v5937_v20 }
  0xd0   : > { %v2405_v41 = vsel %vm7763_vm13, %v2372_v58, %v4315_v35  ;;  %vm7765_vm15 = vmmov %vm7764_vm1  ;;  %v2468_v39 = vsel %vm7768_vm7, %v2435_v25, %v4329_v11  ;;  %v4360_v29 = vunpack.i.h.bf16 %v4358_v57  ;;  %v4359_v59 = vunpack.i.l.bf16 %v4358_v57 }
  0xd1   : > { %v2436_v24 = vsel %vm7765_vm15, %v2403_v60, %v4320_v16  ;;  %vm7766_vm0 = vmmov %vm7764_vm1  ;;  %4642 = vrot.lane.b32.xlu1 %v4641_v14, %s7648_s18  ;;  %4647 = vrot.lane.b32.xlu0 %v5813_v2, %s7660_s23  ;;  %v4334_v56 = vunpack.i.l.bf16 %v5937_v20  ;;  %vm7770_vm8 = vcmask 121856   ;;  %v4345_v35 = vunpack.i.h.bf16 %v4343_v18 }
  0xd2   : > { %v2437_v36 = vsel %vm7766_vm0, %v2404_v52, %v4324_v15  ;;  %vm7767_vm6 = vmmov %vm7766_vm0  ;;  %v2501_v16 = vsel %vm7770_vm8, %v2468_v39, %v4339_v37  ;;  %v4344_v10 = vunpack.i.l.bf16 %v4343_v18  ;;  %vm7772_vm13 = vcmask 146432  }
  0xd3   : > { %v2438_v50 = vsel %vm7767_vm6, %v2405_v41, %v4325_v40  ;;  %vm7769_vm4 = vmmov %vm7768_vm7  ;;  %v2534_v40 = vsel %vm7772_vm13, %v2501_v16, %v4349_v5  ;;  %v4363_v57 = vpop.permute.xlu1 %4362  ;;  %v4368_v21 = vpop.permute.xlu0 %4367  ;;  %v4355_v14 = vunpack.i.h.bf16 %v4353_v62  ;;  %v4354_v58 = vunpack.i.l.bf16 %v4353_v62 }
  0xd4   : > { %v2469_v33 = vsel %vm7769_vm4, %v2436_v24, %v4330_v55  ;;  %vm7771_vm9 = vmmov %vm7770_vm8  ;;  %v4370_v55 = vunpack.i.h.bf16 %v4368_v21  ;;  %v4369_v2 = vunpack.i.l.bf16 %v4368_v21  ;;  %vm7774_vm15 = vcmask 171008  }
  0xd5   : > { %v2502_v52 = vsel %vm7771_vm9, %v2469_v33, %v4340_v49  ;;  %vm7773_vm1 = vmmov %vm7772_vm13  ;;  %v2567_v11 = vsel %vm7774_vm15, %v2534_v40, %v4359_v59  ;;  %v4365_v60 = vunpack.i.h.bf16 %v4363_v57  ;;  %v4364_v23 = vunpack.i.l.bf16 %v4363_v57  ;;  %4652 = vrot.lane.b32.xlu1 %v5931_v32, %s7660_s23  ;;  %4657 = vrot.lane.b32.xlu0 %v5939_v3, %s7662_s28 }
  0xd6   : > { %v2535_v15 = vsel %vm7773_vm1, %v2502_v52, %v4350_v51  ;;  %vm7775_vm0 = vmmov %vm7774_vm15  ;;  %v582_v39 = vadd.s32 232, %v5062_v1  ;;  %v7785_v57 = vrot.slane %v5847_v4, 1  ;;  %v7786_v21 = vrot.slane %v5809_v54, 1 }
  0xd7   : > { %v2568_v20 = vsel %vm7775_vm0, %v2535_v15, %v4360_v29  ;;  %vm7776_vm6 = vmmov %vm7769_vm4  ;;  %v6030_v25 = vpop.permute.xlu1 %4372  ;;  %v4378_v24 = vpop.permute.xlu0 %4377 }
  0xd8   : > { %v2470_v18 = vsel %vm7776_vm6, %v2437_v36, %v4334_v56  ;;  %vm7777_vm7 = vmmov %vm7769_vm4  ;;  %vm7778_vm4 = vcmask 195584   ;;  %v4380_v33 = vunpack.i.h.bf16 %v4378_v24  ;;  %v778_v56 = vand.u32 15, %v5961_v61 }
  0xd9   : > { %v2471_v49 = vsel %vm7777_vm7, %v2438_v50, %v4335_v34  ;;  %v2600_v37 = vsel %vm7778_vm4, %v2567_v11, %v4369_v2  ;;  %vm7779_vm8 = vmmov %vm7778_vm4  ;;  %v2503_v51 = vsel %vm7771_vm9, %v2470_v18, %v4344_v10  ;;  %v4379_v50 = vunpack.i.l.bf16 %v4378_v24  ;;  %4662 = vrot.lane.b32.xlu1 %v5945_v28, %s7662_s28  ;;  %4667 = vrot.lane.b32.xlu0 %v5942_v13, %s7649_s26  ;;  %v6075_v2 = vld [vmem:[%s5073_s29 + $0xf0] sm:$0xff] }
  0xda   : > { %v2601_v41 = vsel %vm7779_vm8, %v2568_v20, %v4370_v55  ;;  %vm7780_vm13 = vmmov %vm7771_vm9  ;;  %v2536_v3 = vsel %vm7773_vm1, %v2503_v51, %v4354_v58  ;;  %v764_v34 = vand.u32 15, %v5958_v31  ;;  %v584_v28 = vadd.s32 248, %v5062_v1  ;;  %v6069_v58 = vld [vmem:[%s5073_s29 + $0xd8] sm:$0xff]  ;;  %v6072_v55 = vld [vmem:[%s5073_s29 + $0xe0] sm:$0xff] }
  0xdb   : > { %v2504_v5 = vsel %vm7780_vm13, %v2471_v49, %v4345_v35  ;;  %v2630_v62 = vpack.c.bf16 %v2601_v41, %v2600_v37  ;;  %vm7781_vm15 = vmmov %vm7773_vm1  ;;  %v2569_v29 = vsel %vm7775_vm0, %v2536_v3, %v4364_v23  ;;  %v579_v35 = vadd.s32 208, %v5062_v1  ;;  %v6048_v40 = vpop.permute.xlu1 %4382  ;;  %v6050_v13 = vpop.permute.xlu0 %4387  ;;  %v6079_v20 = vld [vmem:[%s5073_s29 + $0xe8] sm:$0xff] }
  0xdc   : > { %v2537_v36 = vsel %vm7781_vm15, %v2504_v5, %v4355_v14  ;;  %vm7782_vm6 = vmmov %vm7775_vm0  ;;  %v2602_v52 = vsel %vm7778_vm4, %v2569_v29, %v4379_v50  ;;  %v6054_v31 = vpack.i.bf16 %v5847_v4, %v5809_v54  ;;  %v7784_v61 = vsel %vm5835_vm5, %v5884_v43, 0.0 }
  0xdd   : > { %v2570_v59 = vsel %vm7782_vm6, %v2537_v36, %v4365_v60  ;;  %vm7783_vm7 = vmmov %vm7778_vm4  ;;  %4098 = vmatprep.mubr.msk.bf16.mxu0 %vm7608_vm2, %v2630_v62  ;;  %v4686_v15 = vpack.i.bf16 %v7784_v61, %v5915_v42  ;;  %vm7787_vm8 = vcmask 1046528   ;;  %v757_v11 = vand.u32 15, %v5973_v45  ;;  %4672 = vrot.lane.b32.xlu1 %v5948_v63, %s7649_s26  ;;  %v7945_v36 = vld [vmem:[#allocation32_spill] sm:$0xff] }
  0xde   : > { %v2603_v16 = vsel %vm7783_vm7, %v2570_v59, %v4380_v33  ;;  %v6066_v14 = vsel %vm7787_vm8, %v7786_v21, %v7785_v57  ;;  %v792_v12 = vand.u32 15, %v582_v39  ;;  %v1239_v60 = vrot.slane %v6069_v58, 1  ;;  %4677 = vrot.lane.b32.xlu0 %v5931_v32, %s7666_s1  ;;  %vm7796_vm1 = vmmov %vm7787_vm8 }
  0xdf   : > { %v2631_v10 = vpack.c.bf16 %v2603_v16, %v2602_v52  ;;  %v1241_v23 = vrot.slane %v6072_v55, 1  ;;  %v1442_v18 = vsel %vm5840_vm3, %v5970_v6, 0.0  ;;  %vm6090_vm5 = vcmp.ne.s32.totalorder %v764_v34, 15  ;;  %v6102_v0 = vpop.permute.xlu1 %4392  ;;  %v6104_v5 = vpop.permute.xlu0 %4397  ;;  %vm7798_vm15 = vmmov %vm7796_vm1 }
  0xe0   : > { %vm6094_vm9 = vcmp.ne.s32.totalorder %v778_v56, 15  ;;  %v1243_v37 = vrot.slane %v6079_v20, 1  ;;  %v771_v63 = vand.u32 15, %v579_v35  ;;  %v1115_v41 = vrot.slane %v5901_v47, 7  ;;  %vm7805_vm4 = vmmov %vm7796_vm1 }
  0xe1   : > { %4099 = vmatmul.mubr.msk.bf16.gmra.mrb[4].mxu0 %vm7608_vm2, %v2631_v10  ;;  %v806_v32 = vand.u32 15, %v584_v28  ;;  %v7601_v51 = vrot.slane %v6075_v2, 1  ;;  %v4691_v62 = vpack.i.bf16 %v5809_v54, %v5816_v26  ;;  %v4701_v24 = vpack.i.bf16 %v5901_v47, %v5847_v4  ;;  %4682 = vrot.lane.b32.xlu1 %v6054_v31, %s7666_s1 }
  0xe2   : > { %v581_v3 = vadd.s32 224, %v5062_v1  ;;  %vm6113_vm3 = vcmp.ne.s32.totalorder %v757_v11, 0  ;;  %vm6117_vm13 = vcmp.ne.s32.totalorder %v792_v12, 15  ;;  %v6122_v50 = vsel %vm7796_vm1, %v1239_v60, %v1241_v23  ;;  %4687 = vrot.lane.b32.xlu0 %v4686_v15, %s7652_s19 }
  0xe3   : > { %v1117_v54 = vrot.slane %v6069_v58, 7  ;;  %v4696_v26 = vpack.i.bf16 %v1442_v18, %v6066_v14  ;;  %v1303_v29 = vsel %vm6090_vm5, %v5884_v43, 0.0  ;;  %v1305_v59 = vsel %vm6094_vm9, %v5970_v6, 0.0  ;;  %v6158_v10 = vpop.permute.xlu1 %4402  ;;  %v6160_v61 = vpop.permute.xlu0 %4407 }
  0xe4   : > { %v7797_v34 = vrot.slane %v5901_v47, 1  ;;  %vm6140_vm0 = vcmp.ne.s32.totalorder %v771_v63, 0  ;;  %v7801_v52 = vrot.slane %v5847_v4, 7  ;;  %vm7802_vm6 = vcmask 1040384  }
  0xe5   : > { %vm6149_vm7 = vcmp.ne.s32.totalorder %v806_v32, 15  ;;  %v6156_v28 = vsel %vm7805_vm4, %v1243_v37, %v7601_v51  ;;  %v1341_v4 = vsel %vm6113_vm3, %v5887_v9, 0.0  ;;  %v1307_v15 = vsel %vm6117_vm13, %v6122_v50, 0.0  ;;  %vm7806_vm8 = vmmov %vm7802_vm6  ;;  %4692 = vrot.lane.b32.xlu1 %v4691_v62, %s7655_s30 }
  0xe6   : > { %v6138_v56 = vsel %vm7798_vm15, %v7797_v34, %v1239_v60  ;;  %v6147_v35 = vsel %vm7802_vm6, %v7801_v52, %v1115_v41  ;;  %v785_v57 = vand.u32 15, %v581_v3  ;;  %v1119_v21 = vrot.slane %v6072_v55, 7  ;;  %4697 = vrot.lane.b32.xlu0 %v4696_v26, %s7652_s19  ;;  %v6194_v26 = vld [vmem:[%s5073_s29 + $0xf8] sm:$0xff]  ;;  %vm7809_vm4 = vmmov %vm7802_vm6 }
  0xe7   : > { %v4706_v11 = vpack.i.bf16 %v1303_v29, %v5915_v42  ;;  %v4716_v12 = vpack.i.bf16 %v1305_v59, %v6066_v14  ;;  %v1121_v60 = vrot.slane %v6079_v20, 7  ;;  %v6173_v18 = vsel %vm7806_vm8, %v1115_v41, %v1117_v54  ;;  %v4418_v34 = vpop.permute.xlu0 %4417  ;;  %vm7811_vm8 = vmmov %vm7809_vm4 }
  0xe8   : > { %v1343_v63 = vsel %vm6140_vm0, %v6147_v35, 0.0  ;;  %v6181_v32 = vsel %vm7796_vm1, %v1241_v23, %v1243_v37  ;;  %v1309_v42 = vsel %vm6149_vm7, %v6156_v28, 0.0  ;;  %v6187_v3 = vadd.s32 240, %v5062_v1  ;;  %v6199_v37 = vpop.permute.xlu1 %4412 }
  0xe9   : > { %v4721_v41 = vpack.i.bf16 %v5923_v38, %v1341_v4  ;;  %v6191_v62 = vpack.i.bf16 %v1307_v15, %v6138_v56  ;;  %v4305_v59 = vunpack.i.h.bf16 %v5804_v30  ;;  %v4375_v23 = vunpack.i.h.bf16 %v6030_v25  ;;  %4702 = vrot.lane.b32.xlu1 %v4701_v24, %s7655_s30 }
  0xea   : > { %vm6201_vm15 = vcmp.ne.s32.totalorder %v785_v57, 0  ;;  %v6206_v4 = vsel %vm7802_vm6, %v1117_v54, %v1119_v21  ;;  %v6209_v15 = vpack.i.bf16 %v6173_v18, %v1343_v63  ;;  %v6212_v51 = vpack.i.bf16 %v1309_v42, %v6181_v32  ;;  %4707 = vrot.lane.b32.xlu0 %v4706_v11, %s7647_s20 }
  0xeb   : > { %v6215_v30 = vsel %vm7809_vm4, %v1119_v21, %v1121_v60  ;;  %v6219_v39 = vpack.i.bf16 %v6069_v58, %v5901_v47  ;;  %v4374_v57 = vunpack.i.l.bf16 %v6030_v25  ;;  %v4384_v29 = vunpack.i.l.bf16 %v6048_v40  ;;  %v4428_v9 = vpop.permute.xlu0 %4427 }
  0xec   : > { %v4390_v42 = vunpack.i.h.bf16 %v6050_v13  ;;  %v4389_v21 = vunpack.i.l.bf16 %v6050_v13  ;;  %v7810_v25 = vrot.slane %v6075_v2, 7  ;;  %v7812_v24 = vsel %vm5267_vm10, %v5264_v46, 0.0  ;;  %v4423_v38 = vpop.permute.xlu1 %4422 }
  0xed   : > { %vm7813_vm1 = vcmask 23552   ;;  %vm7814_vm6 = vnez %v7657_v7  ;;  %v4395_v54 = vunpack.i.h.bf16 %v6102_v0  ;;  %v4394_v47 = vunpack.i.l.bf16 %v6102_v0 }
  0xee   : > { %v6235_v1 = vsel %vm7811_vm8, %v1121_v60, %v7810_v25  ;;  %v2373_v11 = vsel %vm7813_vm1, %v7812_v24, %v4305_v59  ;;  %v7815_v63 = vsel %vm7814_vm6, %v5304_v19, 0.0  ;;  %vm7816_vm4 = vmmov %vm7813_vm1  ;;  %v4400_v60 = vunpack.i.h.bf16 %v6104_v5  ;;  %4717 = vrot.lane.b32.xlu0 %v4716_v12, %s7647_s20 }
  0xef   : > { %v2375_v13 = vsel %vm7816_vm4, %v7815_v63, %v4375_v23  ;;  %v4399_v48 = vunpack.i.l.bf16 %v6104_v5  ;;  %v4405_v46 = vunpack.i.h.bf16 %v6158_v10  ;;  %v4404_v59 = vunpack.i.l.bf16 %v6158_v10  ;;  %vm7817_vm10 = vmmov %vm7813_vm1  ;;  %v4438_v44 = vpop.permute.xlu0 %4437 }
  0xf0   : > { %v2374_v7 = vsel %vm7817_vm10, %v5278_v53, %v4374_v57  ;;  %vm7818_vm8 = vmmov %vm7813_vm1  ;;  %v4410_v23 = vunpack.i.h.bf16 %v6160_v61  ;;  %v4409_v0 = vunpack.i.l.bf16 %v6160_v61  ;;  %v7819_v63 = vpack.i.bf16 %v6072_v55, %v6069_v58  ;;  %v4433_v61 = vpop.permute.xlu1 %4432 }
  0xf1   : > { %v2376_v19 = vsel %vm7818_vm8, %v5313_v22, %v4384_v29  ;;  %vm7820_vm1 = vcmask 48128   ;;  %v4420_v25 = vunpack.i.h.bf16 %v4418_v34  ;;  %v4419_v53 = vunpack.i.l.bf16 %v4418_v34 }
  0xf2   : > { %4712 = vrot.lane.b32.xlu1 %v7819_v63, %s7655_s30  ;;  %v2407_v5 = vsel %vm7820_vm1, %v2374_v7, %v4390_v42  ;;  %vm7821_vm6 = vmmov %vm7820_vm1  ;;  %v4430_v29 = vunpack.i.h.bf16 %v4428_v9  ;;  %v4429_v24 = vunpack.i.l.bf16 %v4428_v9  ;;  %vm7824_vm8 = vcmask 72704   ;;  %1510 = vrot.lane.b32.xlu0 %v6079_v20, %s7655_s30 }
  0xf3   : > { %v2406_v10 = vsel %vm7821_vm6, %v2373_v11, %v4389_v21  ;;  %vm7822_vm4 = vmmov %vm7820_vm1  ;;  %v4440_v11 = vunpack.i.h.bf16 %v4438_v44  ;;  %v4415_v9 = vunpack.i.h.bf16 %v6199_v37  ;;  %v4448_v7 = vpop.permute.xlu0 %4447 }
  0xf4   : > { %v2408_v57 = vsel %vm7822_vm4, %v2375_v13, %v4394_v47  ;;  %vm7823_vm10 = vmmov %vm7820_vm1  ;;  %v2439_v17 = vsel %vm7824_vm8, %v2406_v10, %v4399_v48  ;;  %vm7828_vm1 = vcmask 97280   ;;  %v4439_v47 = vunpack.i.l.bf16 %v4438_v44  ;;  %v4443_v44 = vpop.permute.xlu1 %4442 }
  0xf5   : > { %v2409_v22 = vsel %vm7823_vm10, %v2376_v19, %v4395_v54  ;;  %vm7825_vm2 = vmmov %vm7824_vm8  ;;  %v2472_v21 = vsel %vm7828_vm1, %v2439_v17, %v4409_v0  ;;  %v4414_v54 = vunpack.i.l.bf16 %v6199_v37  ;;  %v4425_v48 = vunpack.i.h.bf16 %v4423_v38 }
  0xf6   : > { %v2440_v58 = vsel %vm7825_vm2, %v2407_v5, %v4400_v60  ;;  %vm7826_vm12 = vmmov %vm7825_vm2  ;;  %4722 = vrot.lane.b32.xlu1 %v4721_v41, %s7648_s18  ;;  %v4435_v41 = vunpack.i.h.bf16 %v4433_v61  ;;  %v4434_v19 = vunpack.i.l.bf16 %v4433_v61  ;;  %v4449_v0 = vunpack.i.l.bf16 %v4448_v7  ;;  %4732 = vrot.lane.b32.xlu0 %v6209_v15, %s7648_s18 }
  0xf7   : > { %v2441_v12 = vsel %vm7826_vm12, %v2408_v57, %v4404_v59  ;;  %vm7827_vm14 = vmmov %vm7825_vm2  ;;  %vm7830_vm2 = vcmask 121856   ;;  %vm7834_vm10 = vcmask 171008   ;;  %v4445_v5 = vunpack.i.h.bf16 %v4443_v44 }
  0xf8   : > { %v2442_v42 = vsel %vm7827_vm14, %v2409_v22, %v4405_v46  ;;  %vm7829_vm6 = vmmov %vm7828_vm1  ;;  %v2505_v13 = vsel %vm7830_vm2, %v2472_v21, %v4419_v53  ;;  %v4424_v46 = vunpack.i.l.bf16 %v4423_v38  ;;  %vm7832_vm14 = vcmask 146432   ;;  %v6295_v61 = vpop.permute.xlu1 %4452 }
  0xf9   : > { %v2473_v34 = vsel %vm7829_vm6, %v2440_v58, %v4410_v23  ;;  %vm7831_vm12 = vmmov %vm7830_vm2  ;;  %v2538_v17 = vsel %vm7832_vm14, %v2505_v13, %v4429_v24  ;;  %v4450_v23 = vunpack.i.h.bf16 %v4448_v7  ;;  %v4444_v10 = vunpack.i.l.bf16 %v4443_v44  ;;  %v4458_v58 = vpop.permute.xlu0 %4457 }
  0xfa   : > { %v2506_v60 = vsel %vm7831_vm12, %v2473_v34, %v4420_v25  ;;  %vm7833_vm4 = vmmov %vm7832_vm14  ;;  %v2571_v63 = vsel %vm7834_vm10, %v2538_v17, %v4439_v47  ;;  %4727 = vrot.lane.b32.xlu1 %v6191_v62, %s7647_s20  ;;  %v2474_v38 = vsel %vm7828_vm1, %v2441_v12, %v4414_v54  ;;  %vm7837_vm2 = vcmask 195584   ;;  %4742 = vrot.lane.b32.xlu0 %v6212_v51, %s7647_s20 }
  0xfb   : > { %v2539_v59 = vsel %vm7833_vm4, %v2506_v60, %v4430_v29  ;;  %vm7835_vm8 = vmmov %vm7834_vm10  ;;  %v2604_v53 = vsel %vm7837_vm2, %v2571_v63, %v4449_v0  ;;  %vm7839_vm14 = vcmask 121856   ;;  %v7841_v62 = vand.u32 15, %v6187_v3 }
  0xfc   : > { %v2572_v37 = vsel %vm7835_vm8, %v2539_v59, %v4440_v11  ;;  %vm7836_vm6 = vmmov %vm7828_vm1  ;;  %v2507_v22 = vsel %vm7839_vm14, %v2474_v38, %v4424_v46  ;;  %vm7844_vm8 = vcmask 146432   ;;  %v4460_v21 = vunpack.i.h.bf16 %v4458_v58  ;;  %v6330_v59 = vpop.permute.xlu1 %4462 }
  0xfd   : > { %v2475_v25 = vsel %vm7836_vm6, %v2442_v42, %v4415_v9  ;;  %vm7838_vm12 = vmmov %vm7837_vm2  ;;  %vm6299_vm10 = vcmp.ne.s32.totalorder %v7841_v62, 0  ;;  %v2540_v12 = vsel %vm7844_vm8, %v2507_v22, %v4434_v19  ;;  %v4459_v34 = vunpack.i.l.bf16 %v4458_v58 }
  0xfe   : > { %v2605_v57 = vsel %vm7838_vm12, %v2572_v37, %v4450_v23  ;;  %vm7840_vm4 = vmmov %vm7839_vm14  ;;  %vm7846_vm6 = vcmask 171008   ;;  %4737 = vrot.lane.b32.xlu1 %v6054_v31, %s7660_s23  ;;  %v7848_v3 = vsel %vm6201_vm15, %v6206_v4, 0.0  ;;  %v1379_v54 = vsel %vm6090_vm5, %v5970_v6, 0.0  ;;  %v6332_v6 = vpop.permute.xlu0 %4467  ;;  %4752 = vrot.lane.b32.xlu0 %v6219_v39, %s7660_s23 }
  0xff   : > { %v2508_v29 = vsel %vm7840_vm4, %v2475_v25, %v4425_v48  ;;  %v2632_v24 = vpack.c.bf16 %v2605_v57, %v2604_v53  ;;  %vm7845_vm1 = vmmov %vm7844_vm8  ;;  %v2573_v11 = vsel %vm7846_vm6, %v2540_v12, %v4444_v10  ;;  %v4746_v9 = vpack.i.bf16 %v6215_v30, %v7848_v3 }
 0x100   : > { %v2541_v42 = vsel %vm7845_vm1, %v2508_v29, %v4435_v41  ;;  %vm7847_vm2 = vmmov %vm7846_vm6  ;;  %vm7850_vm4 = vcmask 220160   ;;  %v7851_v31 = vrot.slane %v6194_v26, 7  ;;  %v7852_v51 = vrot.slane %v6075_v2, 7  ;;  %v6342_v19 = vpop.permute.xlu1 %4472 }
 0x101   : > { %v2574_v47 = vsel %vm7847_vm2, %v2541_v42, %v4445_v5  ;;  %vm7849_vm14 = vmmov %vm7838_vm12  ;;  %4102 = vmatprep.mubr.msk.bf16.mxu0 %vm7850_vm4, %v2632_v24  ;;  %vm7853_vm8 = vcmask 1040384   ;;  %v1347_v46 = vsel %vm6299_vm10, %v6235_v1, 0.0  ;;  %v4756_v44 = vpack.i.bf16 %v1379_v54, %v6066_v14 }
 0x102   : > { %v2607_v13 = vsel %vm7838_vm12, %v2574_v47, %v4460_v21  ;;  %v2606_v60 = vsel %vm7849_vm14, %v2573_v11, %v4459_v34  ;;  %v1314_v48 = vsel %vm7853_vm8, %v7852_v51, %v7851_v31  ;;  %4747 = vrot.lane.b32.xlu1 %v4746_v9, %s7648_s18  ;;  %vm7854_vm1 = vmmov %vm7850_vm4  ;;  %v1381_v41 = vsel %vm6094_vm9, %v6122_v50, 0.0  ;;  %v6344_v23 = vpop.permute.xlu0 %4477 }
 0x103   : > { %v2633_v17 = vpack.c.bf16 %v2607_v13, %v2606_v60  ;;  %v4761_v7 = vpack.i.bf16 %v1314_v48, %v1347_v46  ;;  %v1349_v0 = vrot.slane %v6194_v26, 1  ;;  %v6351_v14 = vpack.i.bf16 %v6079_v20, %v6072_v55  ;;  %vm7857_vm2 = vmmov %vm7853_vm8  ;;  %v7862_v60 = vld [vmem:[#allocation17_spill] sm:$0xff] }
 0x104   : > { %v4771_v63 = vpack.i.bf16 %v1381_v41, %v6138_v56  ;;  %v1412_v37 = vsel %vm6113_vm3, %v6147_v35, 0.0  ;;  %v6357_v5 = vpop.permute.xlu1 %4482  ;;  %vm7855_vm6 = vcmask 1046528   ;;  %v1383_v25 = vsel %vm6117_vm13, %v6156_v28, 0.0 }
 0x105   : > { %4103 = vmatmul.mubr.msk.bf16.gmra.mrb[8].mxu0 %vm7854_vm1, %v2633_v17  ;;  %4762 = vrot.lane.b32.xlu0 %v4761_v7, %s7648_s18  ;;  %v6362_v38 = vsel %vm7855_vm6, %v1349_v0, 0.0  ;;  %v7856_v55 = vmov %v7851_v31  ;;  %v4776_v53 = vpack.i.bf16 %v6173_v18, %v1412_v37  ;;  %v6376_v57 = vpack.i.bf16 %v6194_v26, %v6075_v2  ;;  %vm7859_vm12 = vmmov %vm7855_vm6 }
 0x106   : > { %4757 = vrot.lane.b32.xlu1 %v4756_v44, %s7662_s28  ;;  %v6359_v10 = vpop.permute.xlu0 %4487  ;;  %v1387_v20 = vsel %vm7857_vm2, %v7856_v55, 0.0  ;;  %v1414_v22 = vsel %vm6140_vm0, %v6206_v4, 0.0  ;;  %v1416_v29 = vsel %vm6201_vm15, %v6235_v1, 0.0  ;;  %v7858_v24 = vrot.slane %v6075_v2, 1 }
 0x107   : > { %v1385_v62 = vsel %vm6149_vm7, %v6362_v38, 0.0  ;;  %v1444_v26 = vsel %vm6090_vm5, %v6122_v50, 0.0  ;;  %v4385_v12 = vunpack.i.h.bf16 %v6048_v40  ;;  %v4455_v42 = vunpack.i.h.bf16 %v6295_v61 }
 0x108   : > { %v6387_v58 = vsel %vm7859_vm12, %v7858_v24, %v1349_v0  ;;  %v6397_v21 = vpop.permute.xlu1 %4492  ;;  %v4786_v2 = vpack.i.bf16 %v1383_v25, %v6181_v32  ;;  %v1418_v34 = vsel %vm6299_vm10, %v1387_v20, 0.0  ;;  %v4791_v11 = vpack.i.bf16 %v6215_v30, %v1414_v22  ;;  %v7870_v25 = vld [vmem:[#allocation18_spill] sm:$0xff]  ;;  %v7872_v20 = vld [vmem:[#allocation20_spill] sm:$0xff] }
 0x109   : > { %4772 = vrot.lane.b32.xlu0 %v4771_v63, %s7662_s28  ;;  %v6403_v43 = vpack.i.bf16 %v1314_v48, %v1416_v29  ;;  %v4454_v47 = vunpack.i.l.bf16 %v6295_v61  ;;  %v4464_v49 = vunpack.i.l.bf16 %v6330_v59  ;;  %v4801_v40 = vpack.i.bf16 %v1385_v62, %v6387_v58  ;;  %v7865_v48 = vld [vmem:[#allocation21_spill] sm:$0xff] }
 0x10a   : > { %4767 = vrot.lane.b32.xlu1 %v6351_v14, %s7660_s23  ;;  %v4498_v1 = vpop.permute.xlu0 %4497  ;;  %v6412_v50 = vpack.i.bf16 %v1444_v26, %v6138_v56  ;;  %v4470_v3 = vunpack.i.h.bf16 %v6332_v6  ;;  %v4469_v9 = vunpack.i.l.bf16 %v6332_v6  ;;  %v7860_v54 = vmov 0.0   ;;  %v7867_v56 = vld [vmem:[#allocation19_spill] sm:$0xff] }
 0x10b   : > { %v6417_v13 = vpack.i.bf16 %v7860_v54, %v1418_v34  ;;  %v1446_v61 = vsel %vm6094_vm9, %v6156_v28, 0.0  ;;  %vm7861_vm5 = vnez %v7665_v8  ;;  %vm7864_vm7 = vcmask 23552  }
 0x10c   : > { %v7863_v31 = vsel %vm7861_vm5, %v7862_v60, 0.0  ;;  %vm7866_vm14 = vnez %v7865_v48  ;;  %vm7869_vm4 = vmmov %vm7864_vm7  ;;  %v4475_v6 = vunpack.i.h.bf16 %v6342_v19  ;;  %v4474_v44 = vunpack.i.l.bf16 %v6342_v19  ;;  %v4503_v7 = vpop.permute.xlu1 %4502 }
 0x10d   : > { %4782 = vrot.lane.b32.xlu0 %v6376_v57, %s7660_s23  ;;  %v2377_v51 = vsel %vm7864_vm7, %v7863_v31, %v4385_v12  ;;  %v7868_v46 = vsel %vm7866_vm14, %v7867_v56, 0.0  ;;  %v4480_v0 = vunpack.i.h.bf16 %v6344_v23  ;;  %v4479_v8 = vunpack.i.l.bf16 %v6344_v23  ;;  %vm7871_vm8 = vmmov %vm7869_vm4 }
 0x10e   : > { %4777 = vrot.lane.b32.xlu1 %v4776_v53, %s7649_s26  ;;  %v2379_v17 = vsel %vm7869_vm4, %v7868_v46, %v4455_v42  ;;  %v4508_v41 = vpop.permute.xlu0 %4507  ;;  %v4485_v63 = vunpack.i.h.bf16 %v6357_v5  ;;  %v4484_v37 = vunpack.i.l.bf16 %v6357_v5  ;;  %v2378_v55 = vsel %vm7871_vm8, %v7870_v25, %v4454_v47  ;;  %vm7873_vm1 = vmmov %vm7869_vm4 }
 0x10f   : > { %v2380_v53 = vsel %vm7873_vm1, %v7872_v20, %v4464_v49  ;;  %v4490_v22 = vunpack.i.h.bf16 %v6359_v10  ;;  %v4489_v19 = vunpack.i.l.bf16 %v6359_v10  ;;  %vm7874_vm6 = vcmask 48128  }
 0x110   : > { %v2411_v23 = vsel %vm7874_vm6, %v2378_v55, %v4470_v3  ;;  %vm7875_vm2 = vmmov %vm7874_vm6  ;;  %v4500_v24 = vunpack.i.h.bf16 %v4498_v1  ;;  %v4499_v5 = vunpack.i.l.bf16 %v4498_v1  ;;  %v4510_v12 = vunpack.i.h.bf16 %v4508_v41  ;;  %v4513_v34 = vpop.permute.xlu1 %4512 }
 0x111   : > { %4792 = vrot.lane.b32.xlu0 %v4791_v11, %s7649_s26  ;;  %v2410_v29 = vsel %vm7875_vm2, %v2377_v51, %v4469_v9  ;;  %vm7876_vm12 = vmmov %vm7875_vm2  ;;  %v4509_v42 = vunpack.i.l.bf16 %v4508_v41  ;;  %vm7878_vm7 = vcmask 72704   ;;  %vm7882_vm1 = vcmask 97280  }
 0x112   : > { %4787 = vrot.lane.b32.xlu1 %v4786_v2, %s7662_s28  ;;  %v2412_v62 = vsel %vm7876_vm12, %v2379_v17, %v4474_v44  ;;  %vm7877_vm5 = vmmov %vm7875_vm2  ;;  %v4518_v47 = vpop.permute.xlu0 %4517  ;;  %v2443_v10 = vsel %vm7878_vm7, %v2410_v29, %v4479_v8  ;;  %v4495_v31 = vunpack.i.h.bf16 %v6397_v21  ;;  %v4494_v51 = vunpack.i.l.bf16 %v6397_v21 }
 0x113   : > { %v2413_v26 = vsel %vm7877_vm5, %v2380_v53, %v4475_v6  ;;  %vm7879_vm14 = vmmov %vm7878_vm7  ;;  %v2476_v3 = vsel %vm7882_vm1, %v2443_v10, %v4489_v19  ;;  %v4520_v9 = vunpack.i.h.bf16 %v4518_v47  ;;  %v4519_v60 = vunpack.i.l.bf16 %v4518_v47 }
 0x114   : > { %v2444_v2 = vsel %vm7879_vm14, %v2411_v23, %v4480_v0  ;;  %vm7880_vm4 = vmmov %vm7878_vm7  ;;  %vm7884_vm2 = vcmask 121856   ;;  %v4505_v46 = vunpack.i.h.bf16 %v4503_v7  ;;  %v4504_v17 = vunpack.i.l.bf16 %v4503_v7  ;;  %v4523_v41 = vpop.permute.xlu1 %4522 }
 0x115   : > { %v2445_v11 = vsel %vm7880_vm4, %v2412_v62, %v4484_v37  ;;  %vm7881_vm8 = vmmov %vm7880_vm4  ;;  %4802 = vrot.lane.b32.xlu0 %v4801_v40, %s7662_s28  ;;  %v2509_v48 = vsel %vm7884_vm2, %v2476_v3, %v4499_v5  ;;  %vm7886_vm5 = vcmask 146432   ;;  %v4515_v8 = vunpack.i.h.bf16 %v4513_v34  ;;  %s4053_s28 = sshll.u32 %s5033_s25, 4  ;;  %s4926_s25 = smov [#allocation4]  }
 0x116   : > { %v2446_v49 = vsel %vm7881_vm8, %v2413_v26, %v4485_v63  ;;  %vm7883_vm6 = vmmov %vm7882_vm1  ;;  %4797 = vrot.lane.b32.xlu1 %v6219_v39, %s7666_s1  ;;  %v2542_v6 = vsel %vm7886_vm5, %v2509_v48, %v4509_v42  ;;  %v4528_v0 = vpop.permute.xlu0 %4527  ;;  %v4514_v39 = vunpack.i.l.bf16 %v4513_v34  ;;  %vm7888_vm14 = vcmask 171008   ;;  %s4855_s20 = sshll.u32 %s4926_s25, 4  ;;  %s4856_s20 = int_to_ptr.vmem [resolvable:$false] %s4855_s20 }
 0x117   : > { %v2477_v1 = vsel %vm7883_vm6, %v2444_v2, %v4490_v22  ;;  %vm7885_vm12 = vmmov %vm7884_vm2  ;;  %v4530_v63 = vunpack.i.h.bf16 %v4528_v0  ;;  %v4529_v40 = vunpack.i.l.bf16 %v4528_v0  ;;  %v2575_v37 = vsel %vm7888_vm14, %v2542_v6, %v4519_v60  ;;  %s4857_s23 = scalar_lea.vmem %s4856_s20, 32 }
 0x118   : > { %v2510_v56 = vsel %vm7885_vm12, %v2477_v1, %v4500_v24  ;;  %vm7887_vm7 = vmmov %vm7886_vm5  ;;  %v4525_v25 = vunpack.i.h.bf16 %v4523_v41  ;;  %v4524_v55 = vunpack.i.l.bf16 %v4523_v41  ;;  %v2479_v20 = vsel %vm7882_vm1, %v2446_v49, %v4495_v31  ;;  %v4533_v24 = vpop.permute.xlu1 %4532  ;;  %v7900_v31 = vld [vmem:[#allocation23_spill] sm:$0xff] }
 0x119   : > { %v2543_v44 = vsel %vm7887_vm7, %v2510_v56, %v4510_v12  ;;  %vm7889_vm4 = vmmov %vm7888_vm14  ;;  %4812 = vrot.lane.b32.xlu0 %v6351_v14, %s7666_s1  ;;  %vm7891_vm6 = vcmask 195584   ;;  %v4831_v34 = vpack.i.bf16 %v1446_v61, %v6181_v32  ;;  %v1448_v2 = vsel %vm6117_vm13, %v6362_v38, 0.0 }
 0x11a   : > { %v2576_v21 = vsel %vm7889_vm4, %v2543_v44, %v4520_v9  ;;  %4807 = vrot.lane.b32.xlu1 %v6403_v43, %s7649_s26  ;;  %vm7890_vm8 = vmmov %vm7882_vm1  ;;  %v2608_v53 = vsel %vm7891_vm6, %v2575_v37, %v4529_v40  ;;  %v4538_v5 = vpop.permute.xlu0 %4537  ;;  %v4836_v45 = vpack.i.bf16 %v1448_v2, %v6387_v58  ;;  %v4535_v61 = vunpack.i.h.bf16 %v4533_v24  ;;  %v7908_v37 = vld [vmem:[#allocation24_spill] sm:$0xff] }
 0x11b   : > { %v2478_v7 = vsel %vm7890_vm8, %v2445_v11, %v4494_v51  ;;  %vm7892_vm2 = vmmov %vm7891_vm6  ;;  %v4540_v14 = vunpack.i.h.bf16 %v4538_v5  ;;  %v4539_v26 = vunpack.i.l.bf16 %v4538_v5  ;;  %v4534_v58 = vunpack.i.l.bf16 %v4533_v24  ;;  %v7902_v51 = vld [vmem:[#allocation22_spill] sm:$0xff] }
 0x11c   : > { %v2609_v22 = vsel %vm7892_vm2, %v2576_v21, %v4530_v63  ;;  %v2511_v19 = vsel %vm7885_vm12, %v2478_v7, %v4504_v17  ;;  %vm7893_vm5 = vmmov %vm7885_vm12  ;;  %v6496_v11 = vpop.permute.xlu1 %4542  ;;  %vm7901_vm13 = vnez %v7900_v31  ;;  %vm7904_vm12 = vcmask 23552  }
 0x11d   : > { %v2512_v23 = vsel %vm7893_vm5, %v2479_v20, %v4505_v46  ;;  %v2634_v29 = vpack.c.bf16 %v2609_v22, %v2608_v53  ;;  %v2544_v43 = vsel %vm7887_vm7, %v2511_v19, %v4514_v39  ;;  %vm7894_vm14 = vmmov %vm7887_vm7  ;;  %4822 = vrot.lane.b32.xlu0 %v6417_v13, %s7649_s26  ;;  %v4544_v1 = vunpack.i.l.bf16 %v6496_v11  ;;  %v7905_v46 = vld [vmem:[#allocation25_spill] sm:$0xff]  ;;  %s512_s26 = sand.u32 1, %s4905_s22  }
 0x11e   : > { %v2545_v62 = vsel %vm7894_vm14, %v2512_v23, %v4515_v8  ;;  %v2577_v12 = vsel %vm7889_vm4, %v2544_v43, %v4524_v55  ;;  %vm7895_vm8 = vmmov %vm7889_vm4  ;;  %4817 = vrot.lane.b32.xlu1 %v6412_v50, %s7652_s19  ;;  %v4548_v13 = vpop.permute.xlu0 %4547  ;;  %v7903_v48 = vsel %vm7901_vm13, %v7902_v51, 0.0  ;;  %v7906_v17 = vsel %vm5560_vm11, %v7905_v46, 0.0 }
 0x11f   : > { %v2578_v42 = vsel %vm7895_vm8, %v2545_v62, %v4525_v25  ;;  %vm7896_vm1 = vmmov %vm7892_vm2  ;;  %vm7898_vm2 = vcmask 220160   ;;  %v4550_v9 = vunpack.i.h.bf16 %v4548_v13  ;;  %v4549_v60 = vunpack.i.l.bf16 %v4548_v13  ;;  %v7910_v25 = vld [vmem:[#allocation26_spill] sm:$0xff] }
 0x120   : > { %v2611_v47 = vsel %vm7896_vm1, %v2578_v42, %v4540_v14  ;;  %vm7897_vm6 = vmmov %vm7896_vm1  ;;  %4106 = vmatprep.mubr.msk.bf16.mxu0 %vm7898_vm2, %v2634_v29  ;;  %v4553_v28 = vpop.permute.xlu1 %4552  ;;  %vm7912_vm4 = vcmask 48128  }
 0x121   : > { %v2610_v10 = vsel %vm7897_vm6, %v2577_v12, %v4539_v26  ;;  %4832 = vrot.lane.b32.xlu0 %v4831_v34, %s7652_s19  ;;  %vm7899_vm9 = vmmov %vm7898_vm2  ;;  %v4555_v6 = vunpack.i.h.bf16 %v4553_v28  ;;  %v4554_v44 = vunpack.i.l.bf16 %v4553_v28  ;;  %vm7916_vm6 = vcmask 72704  }
 0x122   : > { %v2635_v50 = vpack.c.bf16 %v2611_v47, %v2610_v10  ;;  %4827 = vrot.lane.b32.xlu1 %v6376_v57, %s7666_s1  ;;  %v4558_v32 = vpop.permute.xlu0 %4557  ;;  %v4465_v57 = vunpack.i.h.bf16 %v6330_v59  ;;  %vm7907_vm5 = vmmov %vm7904_vm12 }
 0x123   : > { %v2383_v59 = vsel %vm7907_vm5, %v7906_v17, %v4535_v61  ;;  %v4560_v8 = vunpack.i.h.bf16 %v4558_v32  ;;  %v4559_v39 = vunpack.i.l.bf16 %v4558_v32  ;;  %vm7909_vm7 = vmmov %vm7907_vm5 }
 0x124   : > { %4107 = vmatmul.mubr.msk.bf16.gmra.mrb[12].mxu0 %vm7899_vm9, %v2635_v50  ;;  %v4563_v33 = vpop.permute.xlu1 %4562  ;;  %v2381_v56 = vsel %vm7904_vm12, %v7903_v48, %v4465_v57  ;;  %v2382_v21 = vsel %vm7909_vm7, %v7908_v37, %v4534_v58  ;;  %vm7911_vm14 = vmmov %vm7907_vm5  ;;  %vm7920_vm12 = vcmask 97280   ;;  %vm7922_vm7 = vcmask 121856  }
 0x125   : > { %4837 = vrot.lane.b32.xlu0 %v4836_v45, %s7652_s19  ;;  %v4565_v63 = vunpack.i.h.bf16 %v4563_v33  ;;  %v4564_v40 = vunpack.i.l.bf16 %v4563_v33  ;;  %v2384_v55 = vsel %vm7911_vm14, %v7910_v25, %v4544_v1  ;;  %v2415_v20 = vsel %vm7912_vm4, %v2382_v21, %v4550_v9  ;;  %vm7913_vm11 = vmmov %vm7912_vm4 }
 0x126   : > { %2209 = vrot.lane.b32.xlu1 %v7860_v54, %s7666_s1  ;;  %v4568_v38 = vpop.permute.xlu0 %4567  ;;  %v2414_v53 = vsel %vm7913_vm11, %v2381_v56, %v4549_v60  ;;  %vm7914_vm8 = vmmov %vm7912_vm4  ;;  %s513_s1 = scalar_lea.vmem [#allocation4], %s512_s26 }
 0x127   : > { %v4570_v7 = vunpack.i.h.bf16 %v4568_v38  ;;  %v4569_v27 = vunpack.i.l.bf16 %v4568_v38  ;;  %v2416_v23 = vsel %vm7914_vm8, %v2383_v59, %v4554_v44  ;;  %vm7915_vm1 = vmmov %vm7912_vm4  ;;  %v2447_v14 = vsel %vm7916_vm6, %v2414_v53, %v4559_v39  ;;  %s3946_s30 = sshll.u32 %s513_s1, 4  ;;  %s7492_s30 = int_to_ptr.vmem [resolvable:$true] %s3946_s30 }
 0x128   : > { %v4573_v49 = vpop.permute.xlu1 %4572  ;;  %v2417_v29 = vsel %vm7915_vm1, %v2384_v55, %v4555_v6  ;;  %vm7917_vm2 = vmmov %vm7916_vm6  ;;  %vm7924_vm4 = vcmask 146432   ;;  %vm7926_vm8 = vcmask 171008   ;;  %p4858_p0 = scmp.lt.s32.totalorder %s7492_s30, %s4856_s20 }
 0x129   : > { %v2448_v26 = vsel %vm7917_vm2, %v2415_v20, %v4560_v8  ;;  %vm7918_vm9 = vmmov %vm7917_vm2  ;;  %v2480_v34 = vsel %vm7920_vm12, %v2447_v14, %v4569_v27  ;;  %v4575_v50 = vunpack.i.h.bf16 %v4573_v49  ;;  %v4574_v13 = vunpack.i.l.bf16 %v4573_v49  ;;  %v7941_v20 = vld [vmem:[#allocation33_spill] sm:$0xff] }
 0x12a   : > { %2332 = vrot.lane.b32.xlu1 %v7860_v54, %s7652_s19  ;;  %v4578_v3 = vpop.permute.xlu0 %4577  ;;  %v2449_v12 = vsel %vm7918_vm9, %v2416_v23, %v4564_v40  ;;  %vm7919_vm13 = vmmov %vm7917_vm2  ;;  %vm7930_vm9 = vcmask 195584   ;;  %v1176_v53 = vsel %vm6113_vm3, %v7941_v20, 0.0  ;;  %v4545_v14 = vunpack.i.h.bf16 %v6496_v11  ;;  %s7490_s19 = scalar_lea.hbm %s7548_s16, %s4053_s28 }
 0x12b   : > { %v4580_v22 = vunpack.i.h.bf16 %v4578_v3  ;;  %v4579_v19 = vunpack.i.l.bf16 %v4578_v3  ;;  %v2450_v42 = vsel %vm7919_vm13, %v2417_v29, %v4565_v63  ;;  %vm7921_vm5 = vmmov %vm7920_vm12  ;;  %vm7946_vm3 = vnez %v7945_v36 }
 0x12c   : > { %v4583_v41 = vpop.permute.xlu1 %4582  ;;  %v2481_v47 = vsel %vm7921_vm5, %v2448_v26, %v4570_v7  ;;  %vm7923_vm14 = vmmov %vm7922_vm7 }
 0x12d   : > { %v2513_v45 = vsel %vm7922_vm7, %v2480_v34, %v4579_v19  ;;  %v2514_v28 = vsel %vm7923_vm14, %v2481_v47, %v4580_v22  ;;  %v4585_v32 = vunpack.i.h.bf16 %v4583_v41  ;;  %v4584_v33 = vunpack.i.l.bf16 %v4583_v41  ;;  %vm7925_vm11 = vmmov %vm7924_vm4  ;;  %v7944_v34 = vld [vmem:[#allocation30_spill] sm:$0xff] }
 0x12e   : > { %v4588_v0 = vpop.permute.xlu0 %4587  ;;  %vm7927_vm1 = vmmov %vm7926_vm8  ;;  %v1174_v47 = vsel %vm7946_vm3, %v7944_v34, 0.0 }
 0x12f   : > { %v4590_v24 = vunpack.i.h.bf16 %v4588_v0  ;;  %v4589_v5 = vunpack.i.l.bf16 %v4588_v0  ;;  %vm7928_vm6 = vmmov %vm7921_vm5 }
 0x130   : > { %v4593_v43 = vpop.permute.xlu1 %4592  ;;  %v2482_v56 = vsel %vm7928_vm6, %v2449_v12, %v4574_v13  ;;  %vm7929_vm2 = vmmov %vm7921_vm5 }
 0x131   : > { %v2546_v38 = vsel %vm7924_vm4, %v2513_v45, %v4589_v5  ;;  %v2547_v57 = vsel %vm7925_vm11, %v2514_v28, %v4590_v24  ;;  %v4595_v58 = vunpack.i.h.bf16 %v4593_v43  ;;  %v4594_v1 = vunpack.i.l.bf16 %v4593_v43  ;;  %vm7931_vm13 = vmmov %vm7930_vm9  ;;  %v7947_v45 = vld [vmem:[#allocation28_spill] sm:$0xff]  ;;  %v7949_v28 = vld [vmem:[#allocation27_spill] sm:$0xff] }
 0x132   : > { %v4598_v62 = vpop.permute.xlu0 %4597  ;;  %v2483_v46 = vsel %vm7929_vm2, %v2450_v42, %v4575_v50  ;;  %vm7932_vm12 = vmmov %vm7922_vm7 }
 0x133   : > { %v4600_v10 = vunpack.i.h.bf16 %v4598_v62  ;;  %v4599_v2 = vunpack.i.l.bf16 %v4598_v62  ;;  %v2515_v6 = vsel %vm7932_vm12, %v2482_v56, %v4584_v33  ;;  %vm7933_vm5 = vmmov %vm7922_vm7 }
 0x134   : > { %v4603_v61 = vpop.permute.xlu1 %4602  ;;  %v2516_v44 = vsel %vm7933_vm5, %v2483_v46, %v4585_v32  ;;  %vm7934_vm7 = vmmov %vm7924_vm4 }
 0x135   : > { %v2579_v31 = vsel %vm7926_vm8, %v2546_v38, %v4599_v2  ;;  %v2580_v49 = vsel %vm7927_vm1, %v2547_v57, %v4600_v10  ;;  %v4605_v51 = vunpack.i.h.bf16 %v4603_v61  ;;  %v4604_v48 = vunpack.i.l.bf16 %v4603_v61  ;;  %vm7935_vm14 = vmmov %vm7924_vm4 }
 0x136   : > { %v4608_v3 = vpop.permute.xlu0 %4607  ;;  %v2548_v39 = vsel %vm7934_vm7, %v2515_v6, %v4594_v1  ;;  %v2549_v63 = vsel %vm7935_vm14, %v2516_v44, %v4595_v58  ;;  %vm7936_vm4 = vmmov %vm7927_vm1  ;;  %vm7938_vm8 = vcmask 220160  }
 0x137   : > { %v4610_v9 = vunpack.i.h.bf16 %v4608_v3  ;;  %v4609_v60 = vunpack.i.l.bf16 %v4608_v3  ;;  %v2581_v21 = vsel %vm7936_vm4, %v2548_v39, %v4604_v48  ;;  %vm7937_vm11 = vmmov %vm7927_vm1  ;;  %vm7957_vm4 = vcmask 48128  }
 0x138   : > { %v4613_v0 = vpop.permute.xlu1 %4612  ;;  %v2582_v25 = vsel %vm7937_vm11, %v2549_v63, %v4605_v51  ;;  %vm7939_vm1 = vmmov %vm7930_vm9  ;;  %v7955_v51 = vld [vmem:[#allocation31_spill] sm:$0xff] }
 0x139   : > { %v2612_v17 = vsel %vm7930_vm9, %v2579_v31, %v4609_v60  ;;  %v2613_v59 = vsel %vm7931_vm13, %v2580_v49, %v4610_v9  ;;  %vm7940_vm6 = vmmov %vm7939_vm1  ;;  %vm7943_vm9 = vcmask 23552   ;;  %v4615_v26 = vunpack.i.h.bf16 %v4613_v0  ;;  %v7953_v31 = vld [vmem:[#allocation29_spill] sm:$0xff] }
 0x13a   : > { %v2636_v41 = vpack.c.bf16 %v2613_v59, %v2612_v17  ;;  %v4618_v8 = vpop.permute.xlu0 %4617  ;;  %vm7942_vm2 = vmmov %vm7938_vm8  ;;  %v4614_v10 = vunpack.i.l.bf16 %v4613_v0  ;;  %vm7948_vm13 = vnez %v7947_v45 }
 0x13b   : > { %v4620_v40 = vunpack.i.h.bf16 %v4618_v8  ;;  %v4619_v37 = vunpack.i.l.bf16 %v4618_v8  ;;  %v7950_v32 = vsel %vm7948_vm13, %v7949_v28, 0.0  ;;  %vm7951_vm12 = vmmov %vm7943_vm9  ;;  %vm7965_vm13 = vcmask 97280  }
 0x13c   : > { %4110 = vmatprep.mubr.msk.bf16.mxu0 %vm7938_vm8, %v2636_v41  ;;  %v4623_v22 = vpop.permute.xlu1 %4622  ;;  %v2385_v33 = vsel %vm7951_vm12, %v7950_v32, %v4545_v14  ;;  %vm7952_vm5 = vmmov %vm7943_vm9 }
 0x13d   : > { %v2615_v55 = vsel %vm7939_vm1, %v2582_v25, %v4620_v40  ;;  %v2614_v7 = vsel %vm7940_vm6, %v2581_v21, %v4619_v37  ;;  %v4625_v23 = vunpack.i.h.bf16 %v4623_v22  ;;  %v4624_v2 = vunpack.i.l.bf16 %v4623_v22  ;;  %vm7954_vm7 = vmmov %vm7952_vm5 }
 0x13e   : > { %v2637_v27 = vpack.c.bf16 %v2615_v55, %v2614_v7  ;;  %v4628_v19 = vpop.permute.xlu0 %4627  ;;  %v2387_v38 = vsel %vm7952_vm5, %v1174_v47, %v4615_v26  ;;  %v2386_v49 = vsel %vm7954_vm7, %v7953_v31, %v4614_v10  ;;  %vm7956_vm14 = vmmov %vm7952_vm5  ;;  %vm7961_vm6 = vcmask 72704  }
 0x13f   : > { %v6558_v29 = vsel %vm7943_vm9, %v1176_v53, %v4625_v23  ;;  %v4630_v50 = vunpack.i.h.bf16 %v4628_v19  ;;  %v4629_v13 = vunpack.i.l.bf16 %v4628_v19  ;;  %v2388_v48 = vsel %vm7956_vm14, %v7955_v51, %v4624_v2  ;;  %vm7958_vm11 = vmmov %vm7957_vm4 }
 0x140   : > { %4111 = vmatmul.mubr.msk.bf16.gmra.mrb[16].mxu0 %vm7942_vm2, %v2637_v27  ;;  %v4633_v24 = vpop.permute.xlu1 %4632  ;;  %vm7959_vm8 = vmmov %vm7957_vm4  ;;  %vm7967_vm5 = vcmask 121856   ;;  %vm7969_vm14 = vcmask 146432  }
 0x141   : > { %v4635_v11 = vunpack.i.h.bf16 %v4633_v24  ;;  %v4634_v57 = vunpack.i.l.bf16 %v4633_v24  ;;  %v2419_v17 = vsel %vm7957_vm4, %v2386_v49, %v4630_v50  ;;  %v2418_v59 = vsel %vm7958_vm11, %v2385_v33, %v4629_v13  ;;  %vm7960_vm1 = vmmov %vm7957_vm4 }
 0x142   : > { %v4638_v5 = vpop.permute.xlu0 %4637  ;;  %vm7962_vm2 = vmmov %vm7961_vm6  ;;  %vm7971_vm11 = vcmask 171008  }
 0x143   : > { %v4640_v58 = vunpack.i.h.bf16 %v4638_v5  ;;  %v4639_v1 = vunpack.i.l.bf16 %v4638_v5  ;;  %v2420_v41 = vsel %vm7959_vm8, %v2387_v38, %v4634_v57  ;;  %v2421_v0 = vsel %vm7960_vm1, %v2388_v48, %v4635_v11  ;;  %vm7963_vm9 = vmmov %vm7962_vm2 }
 0x144   : > { %v4643_v43 = vpop.permute.xlu1 %4642  ;;  %vm7964_vm3 = vmmov %vm7962_vm2 }
 0x145   : > { %v4645_v9 = vunpack.i.h.bf16 %v4643_v43  ;;  %v4644_v60 = vunpack.i.l.bf16 %v4643_v43  ;;  %v2451_v37 = vsel %vm7961_vm6, %v2418_v59, %v4639_v1  ;;  %v2452_v21 = vsel %vm7962_vm2, %v2419_v17, %v4640_v58  ;;  %vm7966_vm12 = vmmov %vm7965_vm13 }
 0x146   : > { %v4648_v62 = vpop.permute.xlu0 %4647  ;;  %vm7968_vm7 = vmmov %vm7967_vm5  ;;  %vm7975_vm2 = vcmask 195584  }
 0x147   : > { %v4650_v56 = vunpack.i.h.bf16 %v4648_v62  ;;  %v4649_v46 = vunpack.i.l.bf16 %v4648_v62  ;;  %v2453_v25 = vsel %vm7963_vm9, %v2420_v41, %v4644_v60  ;;  %v2454_v55 = vsel %vm7964_vm3, %v2421_v0, %v4645_v9  ;;  %vm7970_vm4 = vmmov %vm7969_vm14 }
 0x148   : > { %v4653_v12 = vpop.permute.xlu1 %4652  ;;  %vm7972_vm8 = vmmov %vm7971_vm11 }
 0x149   : > { %v2484_v7 = vsel %vm7965_vm13, %v2451_v37, %v4649_v46  ;;  %v2485_v27 = vsel %vm7966_vm12, %v2452_v21, %v4650_v56  ;;  %v4655_v22 = vunpack.i.h.bf16 %v4653_v12  ;;  %v4654_v19 = vunpack.i.l.bf16 %v4653_v12  ;;  %vm7973_vm1 = vmmov %vm7966_vm12 }
 0x14a   : > { %v4658_v42 = vpop.permute.xlu0 %4657  ;;  %vm7974_vm6 = vmmov %vm7973_vm1 }
 0x14b   : > { %v4660_v6 = vunpack.i.h.bf16 %v4658_v42  ;;  %v4659_v44 = vunpack.i.l.bf16 %v4658_v42  ;;  %v2486_v45 = vsel %vm7973_vm1, %v2453_v25, %v4654_v19  ;;  %v2487_v28 = vsel %vm7974_vm6, %v2454_v55, %v4655_v22  ;;  %vm7976_vm9 = vmmov %vm7975_vm2 }
 0x14c   : > { %v4663_v61 = vpop.permute.xlu1 %4662  ;;  %vm7977_vm3 = vmmov %vm7967_vm5 }
 0x14d   : > { %v2517_v23 = vsel %vm7967_vm5, %v2484_v7, %v4659_v44  ;;  %v2518_v24 = vsel %vm7968_vm7, %v2485_v27, %v4660_v6  ;;  %v4665_v5 = vunpack.i.h.bf16 %v4663_v61  ;;  %v4664_v43 = vunpack.i.l.bf16 %v4663_v61  ;;  %vm7978_vm13 = vmmov %vm7977_vm3 }
 0x14e   : > { %v4668_v3 = vpop.permute.xlu0 %4667  ;;  %vm7979_vm12 = vmmov %vm7970_vm4 }
 0x14f   : > { %v4670_v8 = vunpack.i.h.bf16 %v4668_v3  ;;  %v4669_v39 = vunpack.i.l.bf16 %v4668_v3  ;;  %v2519_v38 = vsel %vm7977_vm3, %v2486_v45, %v4664_v43  ;;  %v2520_v11 = vsel %vm7978_vm13, %v2487_v28, %v4665_v5  ;;  %vm7980_vm5 = vmmov %vm7970_vm4 }
 0x150   : > { %v4673_v63 = vpop.permute.xlu1 %4672  ;;  %vm7981_vm7 = vmmov %vm7972_vm8  ;;  %v1180_v5 = vsel %vm6201_vm15, %v6147_v35, 0.0 }
 0x151   : > { %v2550_v62 = vsel %vm7969_vm14, %v2517_v23, %v4669_v39  ;;  %v2551_v14 = vsel %vm7970_vm4, %v2518_v24, %v4670_v8  ;;  %v4675_v34 = vunpack.i.h.bf16 %v4673_v63  ;;  %v4674_v36 = vunpack.i.l.bf16 %v4673_v63  ;;  %vm7982_vm14 = vmmov %vm7981_vm7 }
 0x152   : > { %v4678_v40 = vpop.permute.xlu0 %4677  ;;  %vm7983_vm4 = vcmask 220160  }
 0x153   : > { %v4680_v20 = vunpack.i.h.bf16 %v4678_v40  ;;  %v4679_v53 = vunpack.i.l.bf16 %v4678_v40  ;;  %v2552_v58 = vsel %vm7979_vm12, %v2519_v38, %v4674_v36  ;;  %v2553_v1 = vsel %vm7980_vm5, %v2520_v11, %v4675_v34  ;;  %vm7986_vm1 = vmmov %vm7983_vm4 }
 0x154   : > { %v4683_v26 = vpop.permute.xlu1 %4682 }
 0x155   : > { %v2583_v2 = vsel %vm7971_vm11, %v2550_v62, %v4679_v53  ;;  %v2584_v12 = vsel %vm7972_vm8, %v2551_v14, %v4680_v20  ;;  %v4685_v50 = vunpack.i.h.bf16 %v4683_v26  ;;  %v4684_v13 = vunpack.i.l.bf16 %v4683_v26  ;;  %vm7984_vm11 = vmmov %vm7975_vm2  ;;  %v7987_v53 = vld [vmem:[#allocation34_spill] sm:$0xff] }
 0x156   : > { %v4688_v42 = vpop.permute.xlu0 %4687  ;;  %vm7985_vm8 = vmmov %vm7975_vm2  ;;  %v1178_v22 = vsel %vm6140_vm0, %v7987_v53, 0.0  ;;  %v1182_v62 = vsel %vm6299_vm10, %v6206_v4, 0.0  ;;  %vm7988_vm0 = vcmask 23552   ;;  %vm7994_vm10 = vcmask 48128  }
 0x157   : > { %v4690_v47 = vunpack.i.h.bf16 %v4688_v42  ;;  %v4689_v10 = vunpack.i.l.bf16 %v4688_v42  ;;  %v2585_v31 = vsel %vm7981_vm7, %v2552_v58, %v4684_v13  ;;  %v2586_v49 = vsel %vm7982_vm14, %v2553_v1, %v4685_v50  ;;  %vm7990_vm6 = vmmov %vm7988_vm0 }
 0x158   : > { %v4693_v61 = vpop.permute.xlu1 %4692  ;;  %vm7991_vm15 = vmmov %vm7988_vm0  ;;  %vm8000_vm7 = vcmask 72704  }
 0x159   : > { %v2616_v32 = vsel %vm7975_vm2, %v2583_v2, %v4689_v10  ;;  %v2617_v33 = vsel %vm7976_vm9, %v2584_v12, %v4690_v47  ;;  %v4695_v27 = vunpack.i.h.bf16 %v4693_v61  ;;  %v4694_v20 = vunpack.i.l.bf16 %v4693_v61  ;;  %v7989_v47 = vld [vmem:[#allocation35_spill] sm:$0xff]  ;;  %v7992_v12 = vld [vmem:[#allocation36_spill] sm:$0xff]  ;;  %vm7993_vm2 = vmmov %vm7988_vm0 }
 0x15a   : > { %v2638_v57 = vpack.c.bf16 %v2617_v33, %v2616_v32  ;;  %v4698_v3 = vpop.permute.xlu0 %4697  ;;  %vm7995_vm9 = vmmov %vm7994_vm10 }
 0x15b   : > { %v4700_v9 = vunpack.i.h.bf16 %v4698_v3  ;;  %v4699_v60 = vunpack.i.l.bf16 %v4698_v3  ;;  %v2391_v16 = vsel %vm7988_vm0, %v1178_v22, %v4695_v27  ;;  %v2390_v10 = vsel %vm7990_vm6, %v7989_v47, %v4694_v20  ;;  %vm7996_vm3 = vmmov %vm7988_vm0 }
 0x15c   : > { %4114 = vmatprep.mubr.msk.bf16.mxu0 %vm7983_vm4, %v2638_v57  ;;  %v4703_v46 = vpop.permute.xlu1 %4702  ;;  %vm7997_vm13 = vmmov %vm7988_vm0  ;;  %vm8007_vm6 = vcmask 97280  }
 0x15d   : > { %v2619_v51 = vsel %vm7984_vm11, %v2586_v49, %v4700_v9  ;;  %v2618_v48 = vsel %vm7985_vm8, %v2585_v31, %v4699_v60  ;;  %v4705_v19 = vunpack.i.h.bf16 %v4703_v46  ;;  %v4704_v23 = vunpack.i.l.bf16 %v4703_v46  ;;  %vm7998_vm12 = vmmov %vm7995_vm9 }
 0x15e   : > { %v2639_v56 = vpack.c.bf16 %v2619_v51, %v2618_v48  ;;  %v4708_v17 = vpop.permute.xlu0 %4707  ;;  %vm7999_vm5 = vmmov %vm7995_vm9 }
 0x15f   : > { %v4710_v24 = vunpack.i.h.bf16 %v4708_v17  ;;  %v4709_v43 = vunpack.i.l.bf16 %v4708_v17  ;;  %v2393_v35 = vsel %vm7991_vm15, %v1180_v5, %v4705_v19  ;;  %v2392_v15 = vsel %vm7993_vm2, %v7992_v12, %v4704_v23  ;;  %vm8001_vm14 = vmmov %vm7988_vm0 }
 0x160   : > { %4115 = vmatmul.mubr.msk.bf16.gmra.mrb[20].mxu0 %vm7986_vm1, %v2639_v56  ;;  %vm8002_vm4 = vmmov %vm8000_vm7 }
 0x161   : > { %v2423_v4 = vsel %vm7994_vm10, %v2390_v10, %v4710_v24  ;;  %v2422_v13 = vsel %vm7995_vm9, %v6558_v29, %v4709_v43  ;;  %vm8003_vm11 = vmmov %vm7999_vm5 }
 0x162   : > { %v4718_v6 = vpop.permute.xlu0 %4717  ;;  %vm8004_vm8 = vmmov %vm7999_vm5 }
 0x163   : > { %v4720_v42 = vunpack.i.h.bf16 %v4718_v6  ;;  %v4719_v2 = vunpack.i.l.bf16 %v4718_v6  ;;  %vm8005_vm1 = vmmov %vm8002_vm4 }
 0x164   : > { %v4713_v59 = vpop.permute.xlu1 %4712  ;;  %vm8006_vm0 = vmmov %vm8005_vm1 }
 0x165   : > { %v4715_v14 = vunpack.i.h.bf16 %v4713_v59  ;;  %v4714_v26 = vunpack.i.l.bf16 %v4713_v59  ;;  %v2425_v11 = vsel %vm7998_vm12, %v2392_v15, %v4720_v42  ;;  %v2424_v58 = vsel %vm7999_vm5, %v2391_v16, %v4719_v2  ;;  %vm8008_vm15 = vmmov %vm8007_vm6 }
 0x166   : > { %v1511_v41 = vpop.permute.xlu0 %1510  ;;  %vm8009_vm2 = vmmov %vm7999_vm5  ;;  %vm8015_vm5 = vcmask 121856  }
 0x167   : > { %v2395_v33 = vsel %vm7996_vm3, %v1182_v62, %v4715_v14  ;;  %v2394_v38 = vsel %vm7997_vm13, %v6173_v18, %v4714_v26  ;;  %v2396_v29 = vsel %vm8001_vm14, %v6215_v30, %v1511_v41  ;;  %vm8010_vm10 = vmmov %vm8009_vm2 }
 0x168   : > { %v4723_v44 = vpop.permute.xlu1 %4722  ;;  %vm8011_vm9 = vmmov %vm8006_vm0 }
 0x169   : > { %v4724_v52 = vunpack.i.l.bf16 %v4723_v44  ;;  %v4725_v50 = vunpack.i.h.bf16 %v4723_v44  ;;  %vm8012_vm3 = vmmov %vm8006_vm0 }
 0x16a   : > { %v4733_v8 = vpop.permute.xlu0 %4732  ;;  %vm8013_vm13 = vmmov %vm8007_vm6 }
 0x16b   : > { %v4734_v32 = vunpack.i.l.bf16 %v4733_v8  ;;  %v4735_v57 = vunpack.i.h.bf16 %v4733_v8  ;;  %v2455_v1 = vsel %vm8000_vm7, %v2422_v13, %v4724_v52  ;;  %v2456_v60 = vsel %vm8002_vm4, %v2423_v4, %v4725_v50  ;;  %vm8014_vm12 = vmmov %vm8007_vm6 }
 0x16c   : > { %v4728_v0 = vpop.permute.xlu1 %4727  ;;  %vm8016_vm7 = vmmov %vm8015_vm5  ;;  %vm2860_vm4 = vcmask 130048  }
 0x16d   : > { %v4730_v45 = vunpack.i.h.bf16 %v4728_v0  ;;  %v4729_v28 = vunpack.i.l.bf16 %v4728_v0  ;;  %v2457_v56 = vsel %vm8005_vm1, %v2424_v58, %v4734_v32  ;;  %v2458_v30 = vsel %vm8006_vm0, %v2425_v11, %v4735_v57  ;;  %vm8017_vm14 = vmmov %vm8006_vm0 }
 0x16e   : > { %v6606_v63 = vpop.permute.xlu0 %4742  ;;  %vm8020_vm1 = vmmov %vm8015_vm5 }
 0x16f   : > { %v4745_v31 = vunpack.i.h.bf16 %v6606_v63  ;;  %v4744_v49 = vunpack.i.l.bf16 %v6606_v63  ;;  %v2426_v51 = vsel %vm8003_vm11, %v2393_v35, %v4729_v28  ;;  %v2427_v48 = vsel %vm8004_vm8, %v2394_v38, %v4730_v45  ;;  %vm8018_vm11 = vmmov %vm8006_vm0 }
 0x170   : > { %v6604_v39 = vpop.permute.xlu1 %4737  ;;  %vm8019_vm8 = vmmov %vm8007_vm6 }
 0x171   : > { %v4739_v9 = vunpack.i.l.bf16 %v6604_v39  ;;  %v4740_v18 = vunpack.i.h.bf16 %v6604_v39  ;;  %v2429_v20 = vsel %vm8009_vm2, %v2396_v29, %v4745_v31  ;;  %vm8021_vm0 = vmmov %vm8020_vm1  ;;  %vm8024_vm2 = vcmask 171008  }
 0x172   : > { %v6610_v37 = vpop.permute.xlu0 %4752 }
 0x173   : > { %v4755_v59 = vunpack.i.h.bf16 %v6610_v37  ;;  %v4754_v6 = vunpack.i.l.bf16 %v6610_v37  ;;  %v2488_v0 = vsel %vm8007_vm6, %v2455_v1, %v4739_v9  ;;  %v2489_v27 = vsel %vm8008_vm15, %v2456_v60, %v4740_v18 }
 0x174   : > { %v6608_v40 = vpop.permute.xlu1 %4747  ;;  %vm8022_vm6 = vcmask 146432  }
 0x175   : > { %v4749_v46 = vunpack.i.l.bf16 %v6608_v40  ;;  %v4750_v17 = vunpack.i.h.bf16 %v6608_v40  ;;  %v2428_v40 = vsel %vm8010_vm10, %v2395_v33, %v4744_v49  ;;  %v2490_v24 = vsel %vm8013_vm13, %v2457_v56, %v4754_v6  ;;  %vm8023_vm15 = vmmov %vm8022_vm6 }
 0x176   : > { %v2491_v5 = vsel %vm8014_vm12, %v2458_v30, %v4755_v59  ;;  %vm8025_vm10 = vmmov %vm8024_vm2 }
 0x177   : > { %v6614_v25 = vpop.permute.xlu0 %4762  ;;  %v2459_v37 = vsel %vm8011_vm9, %v2426_v51, %v4749_v46  ;;  %vm8026_vm9 = vmmov %vm8022_vm6 }
 0x178   : > { %v6612_v21 = vpop.permute.xlu1 %4757  ;;  %v4764_v63 = vunpack.i.l.bf16 %v6614_v25  ;;  %v4765_v53 = vunpack.i.h.bf16 %v6614_v25  ;;  %vm8029_vm12 = vmmov %vm8022_vm6 }
 0x179   : > { %v4760_v8 = vunpack.i.h.bf16 %v6612_v21  ;;  %v4759_v39 = vunpack.i.l.bf16 %v6612_v21  ;;  %v2460_v21 = vsel %vm8012_vm3, %v2427_v48, %v4750_v17  ;;  %vm8027_vm3 = vcmask 195584  }
 0x17a   : > { %v2461_v42 = vsel %vm8017_vm14, %v2428_v40, %v4764_v63  ;;  %vm8028_vm13 = vmmov %vm8027_vm3  ;;  %vm8032_vm14 = vcmask 220160  }
 0x17b   : > { %v6618_v7 = vpop.permute.xlu0 %4772  ;;  %v2521_v25 = vsel %vm8015_vm5, %v2488_v0, %v4759_v39  ;;  %v2522_v26 = vsel %vm8016_vm7, %v2489_v27, %v4760_v8  ;;  %vm8030_vm5 = vmmov %vm8024_vm2 }
 0x17c   : > { %v6616_v55 = vpop.permute.xlu1 %4767  ;;  %v4775_v19 = vunpack.i.h.bf16 %v6618_v7  ;;  %v4774_v23 = vunpack.i.l.bf16 %v6618_v7  ;;  %v2462_v7 = vsel %vm8018_vm11, %v2429_v20, %v4765_v53  ;;  %vm8031_vm7 = vmmov %vm8024_vm2 }
 0x17d   : > { %v4769_v22 = vunpack.i.l.bf16 %v6616_v55  ;;  %v4770_v47 = vunpack.i.h.bf16 %v6616_v55  ;;  %vm8033_vm11 = vmmov %vm8027_vm3 }
 0x17e   : > { %v2523_v35 = vsel %vm8020_vm1, %v2490_v24, %v4774_v23  ;;  %v2524_v12 = vsel %vm8021_vm0, %v2491_v5, %v4775_v19  ;;  %vm8035_vm1 = vcmask 97280  }
 0x17f   : > { %v6631_v36 = vpop.permute.xlu0 %4782  ;;  %v2492_v52 = vsel %vm8019_vm8, %v2459_v37, %v4769_v22  ;;  %vm8034_vm8 = vmmov %vm8027_vm3  ;;  %v2493_v20 = vsel %vm8035_vm1, %v2460_v21, %v4770_v47 }
 0x180   : > { %v6629_v34 = vpop.permute.xlu1 %4777  ;;  %v4785_v50 = vunpack.i.h.bf16 %v6631_v36  ;;  %vm8036_vm0 = vmmov %vm8035_vm1 }
 0x181   : > { %v4779_v43 = vunpack.i.l.bf16 %v6629_v34  ;;  %v4780_v16 = vunpack.i.h.bf16 %v6629_v34  ;;  %v4784_v34 = vunpack.i.l.bf16 %v6631_v36 }
 0x183   : > { %v6648_v3 = vpop.permute.xlu0 %4792  ;;  %v2554_v4 = vsel %vm8022_vm6, %v2521_v25, %v4779_v43  ;;  %v2555_v28 = vsel %vm8023_vm15, %v2522_v26, %v4780_v16  ;;  %v2494_v40 = vsel %vm8036_vm0, %v2461_v42, %v4784_v34  ;;  %vm8037_vm6 = vmmov %vm8036_vm0  ;;  %vm8038_vm15 = vcmask 121856  }
 0x184   : > { %v6646_v61 = vpop.permute.xlu1 %4787  ;;  %v4794_v15 = vunpack.i.l.bf16 %v6648_v3  ;;  %v4795_v13 = vunpack.i.h.bf16 %v6648_v3  ;;  %v2495_v53 = vsel %vm8037_vm6, %v2462_v7, %v4785_v50  ;;  %vm8051_vm0 = vcmask 195584  }
 0x185   : > { %v4790_v32 = vunpack.i.h.bf16 %v6646_v61  ;;  %v4789_v29 = vunpack.i.l.bf16 %v6646_v61  ;;  %vm8052_vm6 = vmmov %vm8051_vm0 }
 0x186   : > { %v2556_v36 = vsel %vm8026_vm9, %v2523_v35, %v4794_v15  ;;  %v2557_v60 = vsel %vm8029_vm12, %v2524_v12, %v4795_v13 }
 0x187   : > { %v6667_v41 = vpop.permute.xlu0 %4802  ;;  %v2525_v23 = vsel %vm8038_vm15, %v2492_v52, %v4789_v29  ;;  %v6759_v29 = vld [vmem:[%s8057_s2 + $0x1] ss:$0 sm:$0xff] }
 0x188   : > { %v4798_v44 = vpop.permute.xlu1 %4797  ;;  %v4805_v18 = vunpack.i.h.bf16 %v6667_v41  ;;  %v4804_v31 = vunpack.i.l.bf16 %v6667_v41 }
 0x189   : > { %v4800_v10 = vunpack.i.h.bf16 %v4798_v44  ;;  %v4799_v2 = vunpack.i.l.bf16 %v4798_v44 }
 0x18b   : > { %v4813_v14 = vpop.permute.xlu0 %4812  ;;  %v2587_v11 = vsel %vm8024_vm2, %v2554_v4, %v4799_v2  ;;  %v2588_v57 = vsel %vm8025_vm10, %v2555_v28, %v4800_v10  ;;  %vm8039_vm2 = vmmov %vm8038_vm15 }
 0x18c   : > { %v6685_v62 = vpop.permute.xlu1 %4807  ;;  %v4815_v58 = vunpack.i.h.bf16 %v4813_v14  ;;  %v4814_v1 = vunpack.i.l.bf16 %v4813_v14  ;;  %v2526_v24 = vsel %vm8039_vm2, %v2493_v20, %v4790_v32  ;;  %vm8040_vm10 = vmmov %vm8039_vm2 }
 0x18d   : > { %v4810_v56 = vunpack.i.h.bf16 %v6685_v62  ;;  %v4809_v46 = vunpack.i.l.bf16 %v6685_v62  ;;  %v2527_v5 = vsel %vm8040_vm10, %v2494_v40, %v4804_v31  ;;  %vm8041_vm9 = vmmov %vm8039_vm2 }
 0x18e   : > { %v2589_v17 = vsel %vm8030_vm5, %v2556_v36, %v4814_v1  ;;  %v2590_v59 = vsel %vm8031_vm7, %v2557_v60, %v4815_v58  ;;  %v2528_v43 = vsel %vm8041_vm9, %v2495_v53, %v4805_v18  ;;  %vm8053_vm15 = vmmov %vm8051_vm0 }
 0x18f   : > { %v4823_v55 = vpop.permute.xlu0 %4822  ;;  %vm8054_vm2 = vmmov %vm8051_vm0 }
 0x190   : > { %v4818_v45 = vpop.permute.xlu1 %4817  ;;  %v4825_v6 = vunpack.i.h.bf16 %v4823_v55  ;;  %v4824_v44 = vunpack.i.l.bf16 %v4823_v55 }
 0x191   : > { %v4820_v33 = vunpack.i.h.bf16 %v4818_v45  ;;  %v4819_v38 = vunpack.i.l.bf16 %v4818_v45  ;;  %v4096_v0 = vpop.f32.mrb[0].mxu0 }
 0x192   : > { %v2749_v27 = vpop.f32.mrb[1].mxu0 }
 0x193   : > { %v2620_v3 = vsel %vm8027_vm3, %v2587_v11, %v4819_v38  ;;  %v2621_v9 = vsel %vm8028_vm13, %v2588_v57, %v4820_v33  ;;  %v4833_v48 = vpop.permute.xlu0 %4832  ;;  %2861 = vst.msk [vmem:[#allocation2] sm:$0xff] %vm2860_vm4, %v2749_v27  ;;  %v4097_v22 = vpop.f32.mrb[2].mxu0  ;;  %vm8042_vm3 = vmmov %vm8029_vm12  ;;  %v4843_v33 = vld [vmem:[%s7537_s5] sm:$0xff]  }
 0x194   : > { %v2640_v49 = vpack.c.bf16 %v2621_v9, %v2620_v3  ;;  %v4828_v51 = vpop.permute.xlu1 %4827  ;;  %v4835_v61 = vunpack.i.h.bf16 %v4833_v48  ;;  %v4834_v30 = vunpack.i.l.bf16 %v4833_v48  ;;  %v2752_v14 = vpop.f32.mrb[3].mxu0  ;;  %v2558_v21 = vsel %vm8042_vm3, %v2525_v23, %v4809_v46  ;;  %vm8043_vm13 = vmmov %vm8042_vm3  ;;  %4126 = vmatprep.subr.bf16.mxu1 %v4843_v33  ;;  %v6752_v57 = vld [vmem:[%s8057_s2] ss:$0 sm:$0xff]  ;;  %s3934_s2 = scalar_lea.sflag [#allocation5], %s512_s26 }
 0x195   : > { %v4830_v8 = vunpack.i.h.bf16 %v4828_v51  ;;  %v4829_v41 = vunpack.i.l.bf16 %v4828_v51  ;;  %v2559_v25 = vsel %vm8043_vm13, %v2526_v24, %v4810_v56  ;;  %2862 = vst.msk [vmem:[#allocation2 + $0x8] sm:$0xff] %vm2860_vm4, %v2752_v14  ;;  %vm8044_vm12 = vmmov %vm8032_vm14  ;;  %v8058_v48 = vld [vmem:[#allocation12_spill] sm:$0xff]  ;;  %v8066_v14 = vld [vmem:[#allocation10_spill] sm:$0xff] }
 0x196   : > { %4118 = vmatprep.mubr.msk.bf16.mxu0 %vm8032_vm14, %v2640_v49  ;;  %v2622_v39 = vsel %vm8033_vm11, %v2589_v17, %v4834_v30  ;;  %v2623_v63 = vsel %vm8034_vm8, %v2590_v59, %v4835_v61  ;;  %vm8045_vm5 = vmmov %vm8042_vm3  ;;  %vm8047_vm14 = vcmask 171008   ;;  %v2952_v56 = vand.u32 7, %v8058_v48 }
 0x197   : > { %v2641_v37 = vpack.c.bf16 %v2623_v63, %v2622_v39  ;;  %v4838_v62 = vpop.permute.xlu0 %4837  ;;  %v2560_v16 = vsel %vm8045_vm5, %v2527_v5, %v4824_v44  ;;  %vm8046_vm7 = vmmov %vm8042_vm3  ;;  %v2591_v47 = vsel %vm8047_vm14, %v2558_v21, %v4829_v41  ;;  %vm8061_vm5 = vcmask 1040384   ;;  %v6786_v39 = vld [vmem:[%s8063_s3] sm:$0xff] }
 0x198   : > { %v2210_v19 = vpop.permute.xlu1 %2209  ;;  %v4840_v26 = vunpack.i.h.bf16 %v4838_v62  ;;  %v4839_v42 = vunpack.i.l.bf16 %v4838_v62  ;;  %v2561_v7 = vsel %vm8046_vm7, %v2528_v43, %v4825_v6  ;;  %vm8048_vm11 = vmmov %vm8047_vm14  ;;  %v8062_v6 = vld [vmem:[#allocation9_spill] sm:$0xff]  ;;  %vm6799_vm14 = vcmp.ne.s32.totalorder %v2952_v56, 7 }
 0x199   : > { %4119 = vmatmul.mubr.msk.bf16.gmra.mrb[24].mxu0 %vm8044_vm12, %v2641_v37  ;;  %v2592_v10 = vsel %vm8048_vm11, %v2559_v25, %v4830_v8  ;;  %vm8049_vm8 = vmmov %vm8048_vm11  ;;  %v3156_v44 = vsub.s32 0, %v8062_v6  ;;  %v3168_v8 = vsub.s32 1, %v8062_v6  ;;  %v2938_v41 = vand.u32 7, %v8062_v6 }
 0x19a   : > { %v2593_v2 = vsel %vm8049_vm8, %v2560_v16, %v2210_v19  ;;  %vm8050_vm1 = vmmov %vm8049_vm8  ;;  %v2624_v12 = vsel %vm8051_vm0, %v2591_v47, %v4839_v42  ;;  %v2625_v15 = vsel %vm8052_vm6, %v2592_v10, %v4840_v26  ;;  %v3188_v20 = vsub.s32 2, %v8062_v6 }
 0x19b   : > { %v2594_v52 = vsel %vm8050_vm1, %v2561_v7, %v2210_v19  ;;  %v2642_v34 = vpack.c.bf16 %v2625_v15, %v2624_v12  ;;  %vm8055_vm10 = vmmov %vm8044_vm12  ;;  %vm6772_vm12 = vcmp.ne.s32.totalorder %v2952_v56, 0  ;;  %v6797_v53 = vrot.slane %v6786_v39, %v3156_v44 }
 0x19c   : > { %v2333_v35 = vpop.permute.xlu1 %2332  ;;  %vm8056_vm9 = vmmov %vm8055_vm10  ;;  %v2877_v11 = vld [vmem:[#allocation2] ss:$2 sm:$0xff]  ;;  %v6808_v19 = vrot.slane %v6786_v39, %v3168_v8  ;;  %v3208_v23 = vsub.s32 3, %v8062_v6  ;;  %v2945_v21 = vand.u32 7, %v8066_v14  ;;  %vm6816_vm11 = vcmp.ne.s32.totalorder %v2938_v41, 7 }
 0x19d   : > { %v2626_v4 = vsel %vm8053_vm15, %v2593_v2, %v2333_v35  ;;  %v2627_v50 = vsel %vm8054_vm2, %v2594_v52, %v2333_v35  ;;  %4122 = vmatprep.mubr.msk.bf16.mxu1 %vm8055_vm10, %v2642_v34  ;;  %v2897_v1 = vadd.f32 %v6752_v57, %v2877_v11  ;;  %v6823_v26 = vrot.slane %v6786_v39, %v3188_v20  ;;  %vm8069_vm8 = vmmov %vm8061_vm5 }
 0x19e   : > { %v2643_v13 = vpack.c.bf16 %v2627_v50, %v2626_v4  ;;  %v3228_v42 = vsub.s32 4, %v8062_v6  ;;  %vm8070_vm1 = vcmask 1046528   ;;  %v3158_v35 = vmul.f32 0.0, %v6797_v53  ;;  %vm8074_vm15 = vmmov %vm8061_vm5 }
 0x19f   : > { %v2918_v18 = vmul.f32 %v6759_v29, %v2897_v1  ;;  %vm2905_vm13 = vcmp.ge.f32.partialorder %v2897_v1, 0.0  ;;  %vm8071_vm0 = vmmov %vm8070_vm1  ;;  %v3170_v12 = vmul.f32 0.0, %v6808_v19  ;;  %v6851_v50 = vrot.slane %v6786_v39, %v3208_v23 }
 0x1a0   : > { %4123 = vmatmul.mubr.msk.bf16.vlgmr.msra.gmra.mrb[0].mxu1 %vm8056_vm9, %v2643_v13  ;;  %vm6853_vm6 = vcmp.ne.s32.totalorder %v2945_v21, 0  ;;  %vm6866_vm2 = vcmp.ne.s32.totalorder %v2945_v21, 7  ;;  %vm6870_vm10 = vcmp.ne.s32.totalorder %v2938_v41, 0  ;;  %vm8079_vm9 = vmmov %vm8071_vm0  ;;  %v3268_v14 = vsub.s32 6, %v8062_v6 }
 0x1a1   : > { %4127 = vmatpush3.bf16.msra.mxu1 %v4843_v33  ;;  %v6767_v51 = vsel %vm2905_vm13, %v2897_v1, %v2918_v18  ;;  %v3178_v11 = vadd.f32 %v3170_v12, %v3158_v35  ;;  %vm8080_vm13 = vmmov %vm8061_vm5 }
 0x1a2   : > { %4136 = vmatprep.subr.bf16.mxu1 %v7860_v54  ;;  %v3053_v61 = vrot.slane %v6767_v51, 7  ;;  %v3082_v40 = vrot.slane %v6767_v51, 1 }
 0x1a4   : > { %v3105_v47 = vsel %vm8071_vm0, 0.0, %v3082_v40 }
 0x1a5   : > { %v3106_v13 = vsel %vm6816_vm11, %v3105_v47, 0.0 }
 0x1a6   : > { %v3190_v1 = vmul.f32 %v6823_v26, %v3106_v13  ;;  %v3288_v13 = vsub.s32 7, %v8062_v6 }
 0x1b4   : > { %v4100_v45 = vpop.f32.mrb[4].mxu0 }
 0x1b5   : > { %v2763_v55 = vpop.f32.mrb[5].mxu0  ;;  %v3073_v45 = vsel %vm8074_vm15, 0.0, %v3053_v61  ;;  %vm8088_vm15 = vmmov %vm8080_vm13 }
 0x1b6   : > { %2863 = vst.msk [vmem:[#allocation2 + $0x10] sm:$0xff] %vm2860_vm4, %v2763_v55  ;;  %v4101_v28 = vpop.f32.mrb[6].mxu0  ;;  %v3117_v48 = vsel %vm6870_vm10, %v3073_v45, 0.0 }
 0x1b7   : > { %v2766_v32 = vpop.f32.mrb[7].mxu0 }
 0x1b8   : > { %2864 = vst.msk [vmem:[#allocation2 + $0x18] sm:$0xff] %vm2860_vm4, %v2766_v32  ;;  %v6864_v32 = vrot.slane %v6786_v39, %v3228_v42 }
 0x1bf   : > { %v2879_v38 = vld [vmem:[#allocation2 + $0x10] ss:$2 sm:$0xff] }
 0x1c0   : > { %v2898_v58 = vadd.f32 %v6752_v57, %v2879_v38 }
 0x1c2   : > { %v2919_v3 = vmul.f32 %v6759_v29, %v2898_v58  ;;  %vm2906_vm3 = vcmp.ge.f32.partialorder %v2898_v58, 0.0 }
 0x1c4   : > { %v6765_v49 = vsel %vm2906_vm3, %v2898_v58, %v2919_v3 }
 0x1c5   : > { %v3054_v46 = vrot.slane %v6765_v49, 7  ;;  %v3083_v5 = vrot.slane %v6765_v49, 1  ;;  %v3172_v10 = vmul.f32 %v6808_v19, %v6765_v49 }
 0x1c7   : > { %v6777_v59 = vsel %vm8061_vm5, %v3053_v61, %v3054_v46  ;;  %v3084_v58 = vsel %vm8079_vm9, %v3082_v40, %v3083_v5  ;;  %v3171_v61 = vmul.f32 %v6808_v19, %v6767_v51  ;;  %vm8081_vm5 = vmmov %vm8071_vm0 }
 0x1c8   : > { %v3075_v27 = vsel %vm6772_vm12, %v6777_v59, 0.0  ;;  %v3118_v47 = vsel %vm6853_vm6, %v6777_v59, 0.0 }
 0x1c9   : > { %v3160_v62 = vmul.f32 %v6797_v53, %v3075_v27  ;;  %v3127_v27 = vsel %vm6816_vm11, %v3084_v58, 0.0  ;;  %v3211_v12 = vmul.f32 %v6851_v50, %v3118_v47 }
 0x1cb   : > { %v3180_v15 = vadd.f32 %v3172_v10, %v3160_v62 }
 0x1d8   : > { %v4104_v36 = vpop.f32.mrb[8].mxu0 }
 0x1d9   : > { %v2777_v9 = vpop.f32.mrb[9].mxu0 }
 0x1da   : > { %2865 = vst.msk [vmem:[#allocation2 + $0x20] sm:$0xff] %vm2860_vm4, %v2777_v9  ;;  %v4105_v60 = vpop.f32.mrb[10].mxu0  ;;  %v3074_v9 = vsel %vm6853_vm6, %v3073_v45, 0.0 }
 0x1db   : > { %v2780_v31 = vpop.f32.mrb[11].mxu0  ;;  %v3248_v60 = vsub.s32 5, %v8062_v6  ;;  %v3159_v56 = vmul.f32 %v6797_v53, %v3074_v9 }
 0x1dc   : > { %2866 = vst.msk [vmem:[#allocation2 + $0x28] sm:$0xff] %vm2860_vm4, %v2780_v31  ;;  %v3107_v31 = vsel %vm6866_vm2, %v3084_v58, 0.0 }
 0x1dd   : > { %v6895_v41 = vrot.slane %v6786_v39, %v3248_v60 }
 0x1df   : > { %v3250_v35 = vmul.f32 %v6895_v41, %v3127_v27 }
 0x1e3   : > { %v2881_v17 = vld [vmem:[#allocation2 + $0x20] ss:$2 sm:$0xff] }
 0x1e4   : > { %v2899_v0 = vadd.f32 %v6752_v57, %v2881_v17  ;;  %v3191_v17 = vmul.f32 %v6823_v26, %v3107_v31 }
 0x1e6   : > { %vm2907_vm7 = vcmp.ge.f32.partialorder %v2899_v0, 0.0  ;;  %v2920_v63 = vmul.f32 %v6759_v29, %v2899_v0 }
 0x1e8   : > { %v6803_v22 = vsel %vm2907_vm7, %v2899_v0, %v2920_v63  ;;  %v3210_v0 = vmul.f32 %v6851_v50, %v3117_v48 }
 0x1e9   : > { %v3056_v24 = vrot.slane %v6803_v22, 7  ;;  %v3085_v43 = vrot.slane %v6803_v22, 1  ;;  %v3232_v3 = vmul.f32 %v6864_v32, %v6803_v22 }
 0x1eb   : > { %v6829_v16 = vsel %vm8069_vm8, %v3054_v46, %v3056_v24  ;;  %v6834_v7 = vsel %vm8070_vm1, %v3083_v5, %v3085_v43  ;;  %v3198_v46 = vadd.f32 %v3190_v1, %v3178_v11  ;;  %v3179_v5 = vadd.f32 %v3171_v61, %v3159_v56 }
 0x1ec   : > { %v3108_v2 = vsel %vm6799_vm14, %v6834_v7, 0.0  ;;  %v3119_v52 = vsel %vm6772_vm12, %v6829_v16, 0.0  ;;  %v3128_v45 = vsel %vm6866_vm2, %v6834_v7, 0.0  ;;  %v3231_v11 = vmul.f32 %v6864_v32, %v6765_v49 }
 0x1ed   : > { %v3192_v4 = vmul.f32 %v6823_v26, %v3108_v2  ;;  %v3212_v28 = vmul.f32 %v6851_v50, %v3119_v52  ;;  %v3218_v62 = vadd.f32 %v3210_v0, %v3198_v46  ;;  %v3199_v2 = vadd.f32 %v3191_v17, %v3179_v5 }
 0x1ee   : > { %v3230_v52 = vmul.f32 %v6864_v32, %v6767_v51  ;;  %v3137_v51 = vsel %vm6870_vm10, %v6777_v59, 0.0  ;;  %v3251_v58 = vmul.f32 %v6895_v41, %v3128_v45  ;;  %v6936_v59 = vld [vmem:[%s8063_s3 + $0x8] ss:$0 sm:$0xff]  ;;  %v3138_v46 = vsel %vm6853_vm6, %v6829_v16, 0.0  ;;  %s4851_s3 = scalar_lea.vmem %s7492_s30, 16 }
 0x1ef   : > { %v3200_v55 = vadd.f32 %v3192_v4, %v3180_v15  ;;  %v6912_v4 = vrot.slane %v6786_v39, %v3268_v14  ;;  %p4852_p11 = scmp.ne.s32.totalorder %s7492_s30, %s4851_s3  ;;  %p4859_p1 = scmp.lt.s32.totalorder %s4857_s23, %s4851_s3 }
 0x1f0   : > { %v3238_v15 = vadd.f32 %v3230_v52, %v3218_v62 }
 0x1f1   : > { %v3220_v36 = vadd.f32 %v3212_v28, %v3200_v55  ;;  %v3219_v55 = vadd.f32 %v3211_v12, %v3199_v2  ;;  %v3270_v1 = vmul.f32 %v6912_v4, %v3137_v51  ;;  %v3271_v0 = vmul.f32 %v6912_v4, %v3138_v46  ;;  %p4853_p12 = pnand %p4852_p11, %p5050_p5  ;;  %p4860_p2 = por %p4859_p1, %p4858_p0 }
 0x1f2   : > { %v3258_v28 = vadd.f32 %v3250_v35, %v3238_v15 }
 0x1f3   : > { %v6881_v18 = vadd.f32 %v3232_v3, %v3220_v36  ;;  %v6928_v36 = vrot.slane %v6786_v39, %v3288_v13  ;;  %v3145_v3 = vsel %vm6816_vm11, %v6834_v7, 0.0  ;;  %v3239_v31 = vadd.f32 %v3231_v11, %v3219_v55  ;;  %p4854_p13 = pneg %p4853_p12 }
 0x1f4   : > { %v3278_v48 = vadd.f32 %v3270_v1, %v3258_v28  ;;  %v3310_v7 = vmul.f32 %v6936_v59, %v3145_v3 }
 0x1f5   : > { %v3259_v39 = vadd.f32 %v3251_v58, %v3239_v31  ;;  %v3290_v61 = vmul.f32 %v6928_v36, %v6765_v49  ;;  %v6954_v49 = vld [vmem:[%s7536_s4] ss:$0 sm:$0xff]  ;;  %p4861_p3 = pnand %p4860_p2, %p4854_p13 }
 0x1f7   : > { %v4108_v63 = vpop.f32.mrb[12].mxu0  ;;  %v3279_v34 = vadd.f32 %v3271_v0, %v3259_v39 }
 0x1f8   : > { %v2791_v40 = vpop.f32.mrb[13].mxu0  ;;  %v3298_v63 = vadd.f32 %v3290_v61, %v3278_v48 }
 0x1f9   : > { %2867 = vst.msk [vmem:[#allocation2 + $0x30] sm:$0xff] %vm2860_vm4, %v2791_v40  ;;  %v4109_v21 = vpop.f32.mrb[14].mxu0 }
 0x1fa   : > { %v2794_v10 = vpop.f32.mrb[15].mxu0  ;;  %v3318_v62 = vadd.f32 %v3310_v7, %v3298_v63  ;;  %v8082_v7 = vld [vmem:[#allocation13_spill] sm:$0xff] }
 0x1fb   : > { %2868 = vst.msk [vmem:[#allocation2 + $0x38] sm:$0xff] %vm2860_vm4, %v2794_v10  ;;  %v3291_v10 = vmul.f32 %v6928_v36, %v6803_v22 }
 0x1fc   : > { %v3331_v15 = vadd.f32 %v6954_v49, %v3318_v62 }
 0x1fe   : > { %vm3339_vm7 = vcmp.ge.f32.partialorder %v3331_v15, 0.0 }
 0x202   : > { %v2883_v9 = vld [vmem:[#allocation2 + $0x30] ss:$2 sm:$0xff] }
 0x203   : > { %v2900_v56 = vadd.f32 %v6752_v57, %v2883_v9 }
 0x205   : > { %vm2908_vm3 = vcmp.ge.f32.partialorder %v2900_v56, 0.0  ;;  %v2921_v17 = vmul.f32 %v6759_v29, %v2900_v56 }
 0x207   : > { %v6947_v27 = vsel %vm2908_vm3, %v2900_v56, %v2921_v17  ;;  %v2966_v17 = vand.u32 7, %v8082_v7  ;;  %v3173_v7 = vmul.f32 %v6808_v19, %v6803_v22 }
 0x208   : > { %v3058_v40 = vrot.slane %v6947_v27, 7  ;;  %v3087_v5 = vrot.slane %v6947_v27, 1  ;;  %v3292_v1 = vmul.f32 %v6928_v36, %v6947_v27 }
 0x209   : > { %vm6998_vm1 = vcmp.ne.s32.totalorder %v2966_v17, 0  ;;  %vm7009_vm6 = vcmp.ne.s32.totalorder %v2966_v17, 7 }
 0x20a   : > { %v6959_v21 = vsel %vm8080_vm13, %v3056_v24, %v3058_v40  ;;  %v6964_v47 = vsel %vm8081_vm5, %v3085_v43, %v3087_v5  ;;  %v3299_v24 = vadd.f32 %v3291_v10, %v3279_v34  ;;  %v6980_v43 = vld [vmem:[%s7536_s4 + $0x1] ss:$0 sm:$0xff] }
 0x20b   : > { %v3129_v2 = vsel %vm6799_vm14, %v6964_v47, 0.0  ;;  %v3146_v52 = vsel %vm6866_vm2, %v6964_v47, 0.0  ;;  %v3139_v45 = vsel %vm6772_vm12, %v6959_v21, 0.0  ;;  %v3352_v11 = vmul.f32 %v6980_v43, %v3331_v15  ;;  %vm8089_vm2 = vmmov %vm8081_vm5 }
 0x20c   : > { %v3252_v35 = vmul.f32 %v6895_v41, %v3129_v2  ;;  %v3311_v12 = vmul.f32 %v6936_v59, %v3146_v52  ;;  %v3272_v55 = vmul.f32 %v6912_v4, %v3139_v45  ;;  %v3077_v10 = vsel %vm6998_vm1, %v6959_v21, 0.0  ;;  %vm8094_vm5 = vmmov %vm8089_vm2 }
 0x20d   : > { %v3360_v31 = vsel %vm3339_vm7, %v3331_v15, %v3352_v11  ;;  %v8087_v15 = vld [vmem:[#allocation11_spill] sm:$0xff]  ;;  %vm8095_vm7 = vmmov %vm8088_vm15 }
 0x20e   : > { %v3319_v51 = vadd.f32 %v3311_v12, %v3299_v24  ;;  %v3260_v33 = vadd.f32 %v3252_v35, %v6881_v18  ;;  %v3162_v12 = vmul.f32 %v6797_v53, %v3077_v10  ;;  %v2959_v45 = vand.u32 7, %v8087_v15 }
 0x210   : > { %v3332_v28 = vadd.f32 %v6954_v49, %v3319_v51  ;;  %v3280_v58 = vadd.f32 %v3272_v55, %v3260_v33  ;;  %v3174_v55 = vmul.f32 %v6808_v19, %v6947_v27  ;;  %vm7029_vm9 = vcmp.ne.s32.totalorder %v2959_v45, 0 }
 0x211   : > { %vm7034_vm3 = vcmp.ne.s32.totalorder %v2959_v45, 7  ;;  %v3120_v10 = vsel %vm7029_vm9, %v6959_v21, 0.0 }
 0x212   : > { %vm3340_vm8 = vcmp.ge.f32.partialorder %v3332_v28, 0.0  ;;  %v3353_v3 = vmul.f32 %v6980_v43, %v3332_v28  ;;  %v6992_v9 = vadd.f32 %v3292_v1, %v3280_v58  ;;  %v3182_v58 = vadd.f32 %v3174_v55, %v3162_v12 }
 0x213   : > { %v4112_v18 = vpop.f32.mrb[16].mxu0 }
 0x214   : > { %v3361_v48 = vsel %vm3340_vm8, %v3332_v28, %v3353_v3  ;;  %v2805_v46 = vpop.f32.mrb[17].mxu0  ;;  %v3076_v18 = vsel %vm7029_vm9, %v6829_v16, 0.0 }
 0x215   : > { %v3368_v56 = vpack.c.bf16 %v3361_v48, %v3360_v31  ;;  %2869 = vst.msk [vmem:[#allocation2 + $0x40] sm:$0xff] %vm2860_vm4, %v2805_v46  ;;  %v4113_v39 = vpop.f32.mrb[18].mxu0 }
 0x216   : > { %v2808_v61 = vpop.f32.mrb[19].mxu0  ;;  %v3109_v39 = vsel %vm7034_vm3, %v6964_v47, 0.0  ;;  %v3213_v47 = vmul.f32 %v6851_v50, %v3120_v10 }
 0x217   : > { %4128 = vmatprep.mubr.msk.bf16.mxu1 %vm2860_vm4, %v3368_v56  ;;  %2870 = vst.msk [vmem:[#allocation2 + $0x48] sm:$0xff] %vm2860_vm4, %v2808_v61  ;;  %v3161_v61 = vmul.f32 %v6797_v53, %v3076_v18  ;;  %v3193_v17 = vmul.f32 %v6823_v26, %v3109_v39 }
 0x21e   : > { %v2885_v63 = vld [vmem:[#allocation2 + $0x40] ss:$2 sm:$0xff] }
 0x21f   : > { %v2901_v34 = vadd.f32 %v6752_v57, %v2885_v63 }
 0x221   : > { %vm2909_vm0 = vcmp.ge.f32.partialorder %v2901_v34, 0.0  ;;  %v2922_v62 = vmul.f32 %v6759_v29, %v2901_v34 }
 0x223   : > { %v7007_v2 = vsel %vm2909_vm0, %v2901_v34, %v2922_v62  ;;  %v3181_v34 = vadd.f32 %v3173_v7, %v3161_v61 }
 0x224   : > { %v3060_v35 = vrot.slane %v7007_v2, 7  ;;  %v3089_v24 = vrot.slane %v7007_v2, 1  ;;  %v3234_v56 = vmul.f32 %v6864_v32, %v7007_v2 }
 0x225   : > { %v3201_v12 = vadd.f32 %v3193_v17, %v3181_v34  ;;  %v3293_v17 = vmul.f32 %v6928_v36, %v7007_v2 }
 0x226   : > { %v7018_v51 = vsel %vm8088_vm15, %v3058_v40, %v3060_v35  ;;  %v3090_v33 = vsel %vm8089_vm2, %v3087_v5, %v3089_v24 }
 0x227   : > { %v3110_v28 = vsel %vm7009_vm6, %v3090_v33, 0.0  ;;  %v3121_v1 = vsel %vm6998_vm1, %v7018_v51, 0.0  ;;  %v3130_v22 = vsel %vm7034_vm3, %v3090_v33, 0.0  ;;  %v3221_v45 = vadd.f32 %v3213_v47, %v3201_v12 }
 0x228   : > { %v3194_v11 = vmul.f32 %v6823_v26, %v3110_v28  ;;  %v3214_v5 = vmul.f32 %v6851_v50, %v3121_v1  ;;  %v3147_v55 = vsel %vm6799_vm14, %v3090_v33, 0.0  ;;  %v3233_v28 = vmul.f32 %v6864_v32, %v6947_v27 }
 0x229   : > { %v3253_v21 = vmul.f32 %v6895_v41, %v3130_v22 }
 0x22a   : > { %v3202_v40 = vadd.f32 %v3194_v11, %v3182_v58  ;;  %v3241_v58 = vadd.f32 %v3233_v28, %v3221_v45 }
 0x22c   : > { %v3222_v48 = vadd.f32 %v3214_v5, %v3202_v40  ;;  %v3140_v40 = vsel %vm7029_vm9, %v7018_v51, 0.0  ;;  %v3312_v5 = vmul.f32 %v6936_v59, %v3147_v55 }
 0x22d   : > { %v3273_v33 = vmul.f32 %v6912_v4, %v3140_v40 }
 0x22e   : > { %v3242_v46 = vadd.f32 %v3234_v56, %v3222_v48  ;;  %v3261_v48 = vadd.f32 %v3253_v21, %v3241_v58  ;;  %v3320_v27 = vadd.f32 %v3312_v5, %v6992_v9 }
 0x230   : > { %v3281_v61 = vadd.f32 %v3273_v33, %v3261_v48  ;;  %v3333_v9 = vadd.f32 %v6954_v49, %v3320_v27 }
 0x232   : > { %v3354_v22 = vmul.f32 %v6980_v43, %v3333_v9  ;;  %vm3341_vm8 = vcmp.ge.f32.partialorder %v3333_v9, 0.0 }
 0x233   : > { %v4116_v63 = vpop.f32.mrb[20].mxu0 }
 0x234   : > { %v2819_v62 = vpop.f32.mrb[21].mxu0 }
 0x235   : > { %2871 = vst.msk [vmem:[#allocation2 + $0x50] sm:$0xff] %vm2860_vm4, %v2819_v62  ;;  %v4117_v16 = vpop.f32.mrb[22].mxu0  ;;  %v3301_v62 = vadd.f32 %v3293_v17, %v3281_v61 }
 0x236   : > { %v2822_v15 = vpop.f32.mrb[23].mxu0 }
 0x237   : > { %2872 = vst.msk [vmem:[#allocation2 + $0x58] sm:$0xff] %vm2860_vm4, %v2822_v15 }
 0x23e   : > { %v2887_v11 = vld [vmem:[#allocation2 + $0x50] ss:$2 sm:$0xff] }
 0x23f   : > { %v2902_v1 = vadd.f32 %v6752_v57, %v2887_v11  ;;  %v3362_v11 = vsel %vm3341_vm8, %v3333_v9, %v3354_v22  ;;  %v8101_v9 = vld [vmem:[#allocation14_spill] sm:$0xff]  ;;  %vm8111_vm8 = vcmask 1040384  }
 0x241   : > { %v2923_v56 = vmul.f32 %v6759_v29, %v2902_v1  ;;  %vm2910_vm13 = vcmp.ge.f32.partialorder %v2902_v1, 0.0 }
 0x243   : > { %v7070_v18 = vsel %vm2910_vm13, %v2902_v1, %v2923_v56 }
 0x244   : > { %v3091_v39 = vrot.slane %v7070_v18, 1  ;;  %v3062_v7 = vrot.slane %v7070_v18, 7  ;;  %v3294_v55 = vmul.f32 %v6928_v36, %v7070_v18 }
 0x246   : > { %v3092_v3 = vsel %vm8094_vm5, %v3089_v24, %v3091_v39  ;;  %v3063_v63 = vsel %vm8095_vm7, %v3060_v35, %v3062_v7 }
 0x247   : > { %v3148_v34 = vsel %vm7034_vm3, %v3092_v3, 0.0  ;;  %v3131_v16 = vsel %vm7009_vm6, %v3092_v3, 0.0  ;;  %v3141_v24 = vsel %vm6998_vm1, %v3063_v63, 0.0 }
 0x248   : > { %v3313_v10 = vmul.f32 %v6936_v59, %v3148_v34  ;;  %v3254_v12 = vmul.f32 %v6895_v41, %v3131_v16  ;;  %v3274_v35 = vmul.f32 %v6912_v4, %v3141_v24 }
 0x24a   : > { %v3321_v15 = vadd.f32 %v3313_v10, %v3301_v62  ;;  %v3262_v47 = vadd.f32 %v3254_v12, %v3242_v46  ;;  %v8096_v46 = vld [vmem:[#allocation15_spill] sm:$0xff]  ;;  %v2980_v62 = vand.u32 7, %v8101_v9  ;;  %v3235_v9 = vmul.f32 %v6864_v32, %v7070_v18 }
 0x24b   : > { %v2973_v40 = vand.u32 7, %v8096_v46 }
 0x24c   : > { %v3334_v31 = vadd.f32 %v6954_v49, %v3321_v15  ;;  %v3282_v45 = vadd.f32 %v3274_v35, %v3262_v47  ;;  %vm7123_vm9 = vcmp.ne.s32.totalorder %v2980_v62, 0  ;;  %vm7141_vm5 = vcmp.ne.s32.totalorder %v2980_v62, 7 }
 0x24d   : > { %vm7102_vm15 = vcmp.ne.s32.totalorder %v2973_v40, 0  ;;  %vm7106_vm2 = vcmp.ne.s32.totalorder %v2973_v40, 7 }
 0x24e   : > { %vm3342_vm0 = vcmp.ge.f32.partialorder %v3334_v31, 0.0  ;;  %v3355_v28 = vmul.f32 %v6980_v43, %v3334_v31  ;;  %v7098_v21 = vadd.f32 %v3294_v55, %v3282_v45  ;;  %v3078_v27 = vsel %vm7102_vm15, %v7018_v51, 0.0  ;;  %v8104_v55 = vld [vmem:[#allocation16_spill] sm:$0xff] }
 0x24f   : > { %v3111_v34 = vsel %vm7106_vm2, %v3092_v3, 0.0  ;;  %v3163_v10 = vmul.f32 %v6797_v53, %v3078_v27  ;;  %v3175_v51 = vmul.f32 %v6808_v19, %v7007_v2 }
 0x250   : > { %v3363_v58 = vsel %vm3342_vm0, %v3334_v31, %v3355_v28  ;;  %v3195_v24 = vmul.f32 %v6823_v26, %v3111_v34  ;;  %v3122_v31 = vsel %vm7102_vm15, %v3063_v63, 0.0  ;;  %v2987_v28 = vand.u32 7, %v8104_v55 }
 0x251   : > { %v3369_v1 = vpack.c.bf16 %v3363_v58, %v3362_v11  ;;  %v3183_v35 = vadd.f32 %v3175_v51, %v3163_v10  ;;  %v3079_v11 = vsel %vm7123_vm9, %v3063_v63, 0.0  ;;  %v3215_v58 = vmul.f32 %v6851_v50, %v3122_v31 }
 0x252   : > { %v3164_v46 = vmul.f32 %v6797_v53, %v3079_v11  ;;  %vm7137_vm13 = vcmp.ne.s32.totalorder %v2987_v28, 0  ;;  %v3176_v34 = vmul.f32 %v6808_v19, %v7070_v18  ;;  %vm7149_vm7 = vcmp.ne.s32.totalorder %v2987_v28, 7 }
 0x253   : > { %4129 = vmatmul.mubr.msk.bf16.vlgmr.msra.gmra.mrb[4].mxu1 %vm2860_vm4, %v3369_v1  ;;  %v3203_v45 = vadd.f32 %v3195_v24, %v3183_v35  ;;  %vm8112_vm0 = vcmask 1046528  }
 0x255   : > { %v3223_v40 = vadd.f32 %v3215_v58, %v3203_v45 }
 0x257   : > { %v3243_v51 = vadd.f32 %v3235_v9, %v3223_v40 }
 0x26c   : > { %v4120_v48 = vpop.f32.mrb[24].mxu0 }
 0x26d   : > { %v2833_v33 = vpop.f32.mrb[25].mxu0 }
 0x26e   : > { %2873 = vst.msk [vmem:[#allocation2 + $0x60] sm:$0xff] %vm2860_vm4, %v2833_v33  ;;  %v4121_v61 = vpop.f32.mrb[26].mxu0  ;;  %v4039_v33 = vld [vmem:[%s7540_s8 + $0x1] ss:$0 sm:$0xff] }
 0x26f   : > { %v2836_v17 = vpop.f32.mrb[27].mxu0 }
 0x270   : > { %2874 = vst.msk [vmem:[#allocation2 + $0x68] sm:$0xff] %vm2860_vm4, %v2836_v17 }
 0x273   : > { %v4124_v16 = vpop.f32.mrb[0].mxu1 }
 0x274   : > { %v2847_v12 = vpop.f32.mrb[1].mxu1 }
 0x275   : > { %2875 = vst.msk [vmem:[#allocation2 + $0x70] sm:$0xff] %vm2860_vm4, %v2847_v12  ;;  %v4125_v15 = vpop.f32.mrb[2].mxu1  ;;  %v3184_v12 = vadd.f32 %v3176_v34, %v3164_v46 }
 0x276   : > { %v2850_v3 = vpop.f32.mrb[3].mxu1 }
 0x277   : > { %2876 = vst.msk [vmem:[#allocation2 + $0x78] sm:$0xff] %vm2860_vm4, %v2850_v3  ;;  %v2889_v22 = vld [vmem:[#allocation2 + $0x60] ss:$2 sm:$0xff] }
 0x278   : > { %v2903_v2 = vadd.f32 %v6752_v57, %v2889_v22 }
 0x27a   : > { %vm2911_vm3 = vcmp.ge.f32.partialorder %v2903_v2, 0.0  ;;  %v2924_v1 = vmul.f32 %v6759_v29, %v2903_v2 }
 0x27c   : > { %v2932_v27 = vsel %vm2911_vm3, %v2903_v2, %v2924_v1 }
 0x27d   : > { %v3064_v17 = vrot.slane %v2932_v27, 7  ;;  %v3093_v63 = vrot.slane %v2932_v27, 1  ;;  %v3295_v28 = vmul.f32 %v6928_v36, %v2932_v27 }
 0x27e   : > { %v2891_v61 = vld [vmem:[#allocation2 + $0x70] ss:$2 sm:$0xff] }
 0x27f   : > { %v2904_v16 = vadd.f32 %v6752_v57, %v2891_v61  ;;  %v3065_v62 = vsel %vm8111_vm8, %v3062_v7, %v3064_v17  ;;  %v3094_v24 = vsel %vm8112_vm0, %v3091_v39, %v3093_v63  ;;  %v3177_v39 = vmul.f32 %v6808_v19, %v2932_v27 }
 0x280   : > { %v3080_v3 = vsel %vm7137_vm13, %v3065_v62, 0.0  ;;  %v3112_v35 = vsel %vm7141_vm5, %v3094_v24, 0.0  ;;  %v3132_v57 = vsel %vm7106_vm2, %v3094_v24, 0.0  ;;  %v3142_v7 = vsel %vm7102_vm15, %v3065_v62, 0.0  ;;  %vm8113_vm15 = vmmov %vm8112_vm0 }
 0x281   : > { %vm2912_vm3 = vcmp.ge.f32.partialorder %v2904_v16, 0.0  ;;  %v2925_v15 = vmul.f32 %v6759_v29, %v2904_v16  ;;  %v3149_v18 = vsel %vm7009_vm6, %v3094_v24, 0.0  ;;  %v3165_v29 = vmul.f32 %v6797_v53, %v3080_v3 }
 0x282   : > { %v3196_v22 = vmul.f32 %v6823_v26, %v3112_v35  ;;  %v3255_v45 = vmul.f32 %v6895_v41, %v3132_v57  ;;  %v3314_v2 = vmul.f32 %v6936_v59, %v3149_v18  ;;  %v3123_v5 = vsel %vm7123_vm9, %v3065_v62, 0.0 }
 0x283   : > { %v2933_v31 = vsel %vm2912_vm3, %v2904_v16, %v2925_v15  ;;  %v3185_v58 = vadd.f32 %v3177_v39, %v3165_v29  ;;  %v3275_v19 = vmul.f32 %v6912_v4, %v3142_v7  ;;  %vm8114_vm3 = vmmov %vm8111_vm8  ;;  %v3216_v56 = vmul.f32 %v6851_v50, %v3123_v5 }
 0x284   : > { %v3095_v55 = vrot.slane %v2933_v31, 1  ;;  %v3114_v11 = vrot.slane %v2933_v31, 7  ;;  %v3263_v1 = vadd.f32 %v3255_v45, %v3243_v51  ;;  %v3204_v53 = vadd.f32 %v3196_v22, %v3184_v12 }
 0x285   : > { %v3322_v40 = vadd.f32 %v3314_v2, %v7098_v21 }
 0x286   : > { %v3096_v46 = vsel %vm8113_vm15, %v3093_v63, %v3095_v55  ;;  %v3115_v61 = vsel %vm8111_vm8, %v3064_v17, %v3114_v11  ;;  %v3283_v16 = vadd.f32 %v3275_v19, %v3263_v1  ;;  %v3126_v62 = vsel %vm8112_vm0, %v3095_v55, 0.0 }
 0x287   : > { %v3113_v34 = vsel %vm7149_vm7, %v3096_v46, 0.0  ;;  %v3150_v9 = vsel %vm7106_vm2, %v3096_v46, 0.0  ;;  %v3335_v63 = vadd.f32 %v6954_v49, %v3322_v40  ;;  %v3124_v21 = vsel %vm7137_vm13, %v3115_v61, 0.0 }
 0x288   : > { %v3197_v24 = vmul.f32 %v6823_v26, %v3113_v34  ;;  %v3315_v51 = vmul.f32 %v6936_v59, %v3150_v9  ;;  %v3133_v17 = vsel %vm7141_vm5, %v3096_v46, 0.0  ;;  %v3303_v12 = vadd.f32 %v3295_v28, %v3283_v16 }
 0x289   : > { %v3136_v15 = vsel %vm8114_vm3, %v3114_v11, 0.0  ;;  %v3134_v35 = vsel %vm7149_vm7, %v3126_v62, 0.0  ;;  %v3236_v26 = vmul.f32 %v6864_v32, %v2932_v27  ;;  %v3143_v7 = vsel %vm7123_vm9, %v3115_v61, 0.0 }
 0x28a   : > { %v3205_v3 = vadd.f32 %v3197_v24, %v3185_v58  ;;  %v3323_v57 = vadd.f32 %v3315_v51, %v3303_v12  ;;  %v3217_v18 = vmul.f32 %v6851_v50, %v3124_v21  ;;  %v3224_v39 = vadd.f32 %v3216_v56, %v3204_v53  ;;  %v7243_v56 = vld [vmem:[%s7538_s6] ss:$0 sm:$0xff] }
 0x28b   : > { %vm3343_vm2 = vcmp.ge.f32.partialorder %v3335_v63, 0.0  ;;  %v3356_v29 = vmul.f32 %v6980_v43, %v3335_v63  ;;  %v3144_v22 = vsel %vm7137_vm13, %v3136_v15, 0.0  ;;  %v3256_v45 = vmul.f32 %v6895_v41, %v3133_v17 }
 0x28c   : > { %v3336_v10 = vadd.f32 %v6954_v49, %v3323_v57  ;;  %v3225_v55 = vadd.f32 %v3217_v18, %v3205_v3  ;;  %v3237_v27 = vmul.f32 %v6864_v32, %v2933_v31  ;;  %v3244_v28 = vadd.f32 %v3236_v26, %v3224_v39  ;;  %v7258_v57 = vld [vmem:[%s7538_s6 + $0x1] ss:$0 sm:$0xff] }
 0x28d   : > { %v3257_v2 = vmul.f32 %v6895_v41, %v3134_v35  ;;  %v3276_v11 = vmul.f32 %v6912_v4, %v3143_v7  ;;  %v3364_v1 = vsel %vm3343_vm2, %v3335_v63, %v3356_v29  ;;  %v3151_v48 = vsel %vm7141_vm5, %v3126_v62, 0.0 }
 0x28e   : > { %vm3344_vm7 = vcmp.ge.f32.partialorder %v3336_v10, 0.0  ;;  %v3357_v50 = vmul.f32 %v6980_v43, %v3336_v10  ;;  %v3245_v5 = vadd.f32 %v3237_v27, %v3225_v55  ;;  %v3264_v58 = vadd.f32 %v3256_v45, %v3244_v28 }
 0x28f   : > { %v3277_v19 = vmul.f32 %v6912_v4, %v3144_v22  ;;  %v3297_v46 = vmul.f32 0.0, %v6928_v36  ;;  %v3296_v41 = vmul.f32 %v6928_v36, %v2933_v31  ;;  %v3316_v16 = vmul.f32 %v6936_v59, %v3151_v48 }
 0x290   : > { %v3365_v53 = vsel %vm3344_vm7, %v3336_v10, %v3357_v50  ;;  %v3265_v32 = vadd.f32 %v3257_v2, %v3245_v5  ;;  %v3284_v40 = vadd.f32 %v3276_v11, %v3264_v58  ;;  %v3317_v24 = vmul.f32 0.0, %v6936_v59  ;;  %v4844_v59 = vld [vmem:[%s7541_s9] sm:$0xff]  }
 0x291   : > { %v3370_v61 = vpack.c.bf16 %v3365_v53, %v3364_v1  ;;  %vm4925_vm8 = vmmov 0   ;;  %4137 = vmatpush3.bf16.msra.mxu1 %v4844_v59  ;;  %vm8115_vm7 = vcmask 1046528  }
 0x292   : > { %v3285_v34 = vadd.f32 %v3277_v19, %v3265_v32  ;;  %v3304_v9 = vadd.f32 %v3296_v41, %v3284_v40  ;;  %4138 = vmatprep.subr.bf16.mxu1 %v7860_v54 }
 0x293   : > { %4132 = vmatprep.mubr.msk.bf16.mxu1 %vm2860_vm4, %v3370_v61 }
 0x294   : > { %v3305_v51 = vadd.f32 %v3297_v46, %v3285_v34  ;;  %v3324_v62 = vadd.f32 %v3316_v16, %v3304_v9 }
 0x296   : > { %v3325_v63 = vadd.f32 %v3317_v24, %v3305_v51  ;;  %v3337_v4 = vadd.f32 %v6954_v49, %v3324_v62 }
 0x298   : > { %v3338_v21 = vadd.f32 %v6954_v49, %v3325_v63  ;;  %v3358_v17 = vmul.f32 %v6980_v43, %v3337_v4  ;;  %vm3345_vm13 = vcmp.ge.f32.partialorder %v3337_v4, 0.0  ;;  %v4845_v49 = vld [vmem:[%s7541_s9 + $0x8] sm:$0xff]  }
 0x299   : > { %4139 = vmatpush3.bf16.msra.mxu1 %v4845_v49 }
 0x29a   : > { %vm3346_vm15 = vcmp.ge.f32.partialorder %v3338_v21, 0.0  ;;  %v3359_v36 = vmul.f32 %v6980_v43, %v3338_v21  ;;  %v3366_v31 = vsel %vm3345_vm13, %v3337_v4, %v3358_v17  ;;  %4144 = vmatprep.subr.bf16.mxu1 %v7860_v54  ;;  %v7238_v43 = vld [vmem:[%s7539_s7] sm:$0xff]  ;;  %vm8116_vm13 = vcmask 1040384  }
 0x29b   : > { %v7248_v3 = vrot.slane %v7238_v43, %v3156_v44  ;;  %v7253_v35 = vrot.slane %v7238_v43, %v3168_v8  ;;  %v7274_v11 = vrot.slane %v7238_v43, %v3228_v42  ;;  %v7279_v5 = vrot.slane %v7238_v43, %v3188_v20 }
 0x29c   : > { %v3367_v12 = vsel %vm3346_vm15, %v3338_v21, %v3359_v36  ;;  %v7284_v58 = vrot.slane %v7238_v43, %v3208_v23  ;;  %v7318_v59 = vrot.slane %v7238_v43, %v3248_v60 }
 0x29d   : > { %v3371_v15 = vpack.c.bf16 %v3367_v12, %v3366_v31  ;;  %v3578_v29 = vmul.f32 0.0, %v7248_v3  ;;  %v3586_v8 = vmul.f32 0.0, %v7253_v35 }
 0x29f   : > { %4133 = vmatmul.mubr.msk.bf16.gmra.mrb[8].mxu1 %vm2860_vm4, %v3371_v15  ;;  %v3590_v19 = vadd.f32 %v3586_v8, %v3578_v29 }
 0x2a0   : > { %4140 = vmatprep.mubr.msk.bf16.mxu1 %vm4925_vm8, %v7860_v54 }
 0x326   : > { %v4130_v26 = vpop.f32.mrb[4].mxu1 }
 0x327   : > { %v3440_v7 = vadd.f32 %v4130_v26, %v7243_v56  ;;  %v3431_v18 = vpop.f32.mrb[5].mxu1 }
 0x328   : > { %v3432_v39 = vadd.f32 %v7243_v56, %v3431_v18  ;;  %v4131_v44 = vpop.f32.mrb[6].mxu1 }
 0x329   : > { %vm3464_vm0 = vcmp.ge.f32.partialorder %v3440_v7, 0.0  ;;  %v3477_v22 = vmul.f32 %v7258_v57, %v3440_v7  ;;  %v3443_v45 = vadd.f32 %v4131_v44, %v7243_v56  ;;  %v3434_v10 = vpop.f32.mrb[7].mxu1 }
 0x32a   : > { %vm3462_vm3 = vcmp.ge.f32.partialorder %v3432_v39, 0.0  ;;  %v3475_v55 = vmul.f32 %v7258_v57, %v3432_v39  ;;  %v3435_v2 = vadd.f32 %v7243_v56, %v3434_v10 }
 0x32b   : > { %v7267_v27 = vsel %vm3464_vm0, %v3440_v7, %v3477_v22  ;;  %vm3465_vm2 = vcmp.ge.f32.partialorder %v3443_v45, 0.0  ;;  %v3478_v28 = vmul.f32 %v7258_v57, %v3443_v45  ;;  %vm8117_vm0 = vmmov %vm8116_vm13 }
 0x32c   : > { %v3483_v50 = vsel %vm3462_vm3, %v3432_v39, %v3475_v55  ;;  %v3500_v53 = vrot.slane %v7267_v27, 7  ;;  %v3515_v42 = vrot.slane %v7267_v27, 1  ;;  %vm3463_vm15 = vcmp.ge.f32.partialorder %v3435_v2, 0.0  ;;  %vm8118_vm3 = vmmov %vm8115_vm7 }
 0x32d   : > { %v3497_v1 = vrot.slane %v3483_v50, 7  ;;  %v3513_v48 = vrot.slane %v3483_v50, 1  ;;  %v7286_v46 = vsel %vm3465_vm2, %v3443_v45, %v3478_v28  ;;  %v3476_v23 = vmul.f32 %v7258_v57, %v3435_v2  ;;  %vm8119_vm2 = vmmov %vm8117_vm0 }
 0x32e   : > { %v3501_v32 = vrot.slane %v7286_v46, 7  ;;  %v3517_v40 = vrot.slane %v7286_v46, 1  ;;  %v3588_v63 = vmul.f32 %v7253_v35, %v7286_v46  ;;  %v3622_v12 = vmul.f32 %v7274_v11, %v3483_v50 }
 0x32f   : > { %v3527_v20 = vsel %vm8115_vm7, 0.0, %v3513_v48  ;;  %v3540_v41 = vsel %vm8116_vm13, 0.0, %v3497_v1  ;;  %v3484_v4 = vsel %vm3463_vm15, %v3435_v2, %v3476_v23  ;;  %vm8120_vm7 = vmmov %vm8118_vm3  ;;  %v7326_v39 = vrot.slane %v7238_v43, %v3268_v14 }
 0x330   : > { %v3528_v61 = vsel %vm6816_vm11, %v3527_v20, 0.0  ;;  %v3541_v34 = vsel %vm6870_vm10, %v3540_v41, 0.0  ;;  %v3502_v9 = vsel %vm8117_vm0, %v3500_v53, %v3501_v32  ;;  %v3547_v16 = vsel %vm8118_vm3, %v3515_v42, %v3517_v40  ;;  %vm8121_vm13 = vmmov %vm8117_vm0 }
 0x331   : > { %v3598_v24 = vmul.f32 %v7279_v5, %v3528_v61  ;;  %v3510_v51 = vsel %vm6998_vm1, %v3502_v9, 0.0  ;;  %v3610_v17 = vmul.f32 %v7284_v58, %v3541_v34  ;;  %v3498_v36 = vrot.slane %v3484_v4, 7  ;;  %vm8122_vm15 = vmmov %vm8118_vm3 }
 0x332   : > { %v3580_v62 = vmul.f32 %v7248_v3, %v3510_v51  ;;  %v3514_v31 = vrot.slane %v3484_v4, 1  ;;  %v7340_v14 = vrot.slane %v7238_v43, %v3288_v13  ;;  %v3587_v55 = vmul.f32 %v7253_v35, %v3484_v4  ;;  %v7354_v13 = vld [vmem:[%s7539_s7 + $0x8] ss:$0 sm:$0xff] }
 0x333   : > { %v3602_v21 = vadd.f32 %v3598_v24, %v3590_v19  ;;  %v3499_v26 = vsel %vm8119_vm2, %v3497_v1, %v3498_v36  ;;  %v3532_v18 = vsel %vm8121_vm13, %v3498_v36, %v3500_v53  ;;  %v3556_v20 = vsel %vm6799_vm14, %v3547_v16, 0.0  ;;  %vm8123_vm13 = vmmov %vm8118_vm3 }
 0x334   : > { %v7313_v15 = vadd.f32 %v3588_v63, %v3580_v62  ;;  %v3516_v7 = vsel %vm8120_vm7, %v3514_v31, %v3515_v42  ;;  %v3509_v29 = vsel %vm6772_vm12, %v3499_v26, 0.0  ;;  %v3546_v44 = vsel %vm8122_vm15, %v3513_v48, %v3514_v31  ;;  %vm8124_vm15 = vmmov %vm8119_vm2 }
 0x335   : > { %v3614_v49 = vadd.f32 %v3610_v17, %v3602_v21  ;;  %v3529_v60 = vsel %vm6799_vm14, %v3516_v7, 0.0  ;;  %v3555_v8 = vsel %vm6816_vm11, %v3546_v44, 0.0  ;;  %v3562_v45 = vsel %vm6870_vm10, %v3499_v26, 0.0 }
 0x336   : > { %v3579_v10 = vmul.f32 %v7248_v3, %v3509_v29  ;;  %v3634_v28 = vmul.f32 %v7318_v59, %v3555_v8  ;;  %v3542_v2 = vsel %vm6772_vm12, %v3532_v18, 0.0  ;;  %v3599_v1 = vmul.f32 %v7279_v5, %v3529_v60 }
 0x337   : > { %v3626_v22 = vadd.f32 %v3622_v12, %v3614_v49  ;;  %v3646_v38 = vmul.f32 %v7326_v39, %v3562_v45  ;;  %v3568_v6 = vsel %vm6816_vm11, %v3516_v7, 0.0  ;;  %v3611_v19 = vmul.f32 %v7284_v58, %v3542_v2 }
 0x338   : > { %v3591_v50 = vadd.f32 %v3587_v55, %v3579_v10  ;;  %v3658_v42 = vmul.f32 %v7340_v14, %v3484_v4  ;;  %v3623_v41 = vmul.f32 %v7274_v11, %v7267_v27  ;;  %v3670_v61 = vmul.f32 %v7354_v13, %v3568_v6 }
 0x339   : > { %v3638_v48 = vadd.f32 %v3634_v28, %v3626_v22  ;;  %v3563_v34 = vsel %vm6772_vm12, %v3502_v9, 0.0  ;;  %vm3678_vm11 = vcmask 261120   ;;  %v3635_v24 = vmul.f32 %v7318_v59, %v3556_v20 }
 0x33a   : > { %v3603_v43 = vadd.f32 %v3599_v1, %v3591_v50  ;;  %v3647_v63 = vmul.f32 %v7326_v39, %v3563_v34  ;;  %v3659_v27 = vmul.f32 %v7340_v14, %v7286_v46 }
 0x33b   : > { %v3650_v53 = vadd.f32 %v3646_v38, %v3638_v48 }
 0x33c   : > { %v3615_v23 = vadd.f32 %v3611_v19, %v3603_v43 }
 0x33d   : > { %v3662_v25 = vadd.f32 %v3658_v42, %v3650_v53 }
 0x33e   : > { %v3627_v51 = vadd.f32 %v3623_v41, %v3615_v23 }
 0x33f   : > { %v3674_v62 = vadd.f32 %v3670_v61, %v3662_v25 }
 0x340   : > { %v3639_v4 = vadd.f32 %v3635_v24, %v3627_v51 }
 0x341   : > { %3679 = vst.msk [vmem:[#allocation3] sm:$0xff] %vm3678_vm11, %v3674_v62 }
 0x342   : > { %v3651_v16 = vadd.f32 %v3647_v63, %v3639_v4 }
 0x344   : > { %v3663_v21 = vadd.f32 %v3659_v27, %v3651_v16 }
 0x372   : > { %v4134_v17 = vpop.f32.mrb[8].mxu1 }
 0x373   : > { %v3456_v36 = vadd.f32 %v4134_v17, %v7243_v56  ;;  %v3447_v30 = vpop.f32.mrb[9].mxu1 }
 0x374   : > { %v3448_v9 = vadd.f32 %v7243_v56, %v3447_v30  ;;  %v4135_v31 = vpop.f32.mrb[10].mxu1 }
 0x375   : > { %vm3468_vm12 = vcmp.ge.f32.partialorder %v3456_v36, 0.0  ;;  %v3481_v12 = vmul.f32 %v7258_v57, %v3456_v36  ;;  %v3459_v49 = vadd.f32 %v4135_v31, %v7243_v56  ;;  %v3450_v26 = vpop.f32.mrb[11].mxu1 }
 0x376   : > { %vm3466_vm10 = vcmp.ge.f32.partialorder %v3448_v9, 0.0  ;;  %v3479_v7 = vmul.f32 %v7258_v57, %v3448_v9  ;;  %v3451_v44 = vadd.f32 %v7243_v56, %v3450_v26 }
 0x377   : > { %v3489_v18 = vsel %vm3468_vm12, %v3456_v36, %v3481_v12  ;;  %vm3469_vm0 = vcmp.ge.f32.partialorder %v3459_v49, 0.0  ;;  %v3482_v29 = vmul.f32 %v7258_v57, %v3459_v49  ;;  %vm8126_vm12 = vmmov %vm8118_vm3 }
 0x378   : > { %v3487_v22 = vsel %vm3466_vm10, %v3448_v9, %v3479_v7  ;;  %v3521_v10 = vrot.slane %v3489_v18, 1  ;;  %v3534_v55 = vrot.slane %v3489_v18, 7  ;;  %vm3467_vm7 = vcmp.ge.f32.partialorder %v3451_v44, 0.0  ;;  %vm8127_vm10 = vmmov %vm8119_vm2 }
 0x379   : > { %v3503_v60 = vrot.slane %v3487_v22, 7  ;;  %v3518_v8 = vrot.slane %v3487_v22, 1  ;;  %v3490_v45 = vsel %vm3469_vm0, %v3459_v49, %v3482_v29  ;;  %v3480_v48 = vmul.f32 %v7258_v57, %v3451_v44  ;;  %vm8128_vm0 = vmmov %vm8118_vm3 }
 0x37a   : > { %v3549_v28 = vrot.slane %v3490_v45, 1  ;;  %v3559_v2 = vrot.slane %v3490_v45, 7  ;;  %v3624_v37 = vmul.f32 %v7274_v11, %v3487_v22  ;;  %v3625_v7 = vmul.f32 %v7274_v11, %v3489_v18 }
 0x37b   : > { %v3519_v50 = vsel %vm8118_vm3, %v3517_v40, %v3518_v8  ;;  %v3533_v1 = vsel %vm8119_vm2, %v3501_v32, %v3503_v60  ;;  %v3488_v19 = vsel %vm3467_vm7, %v3451_v44, %v3480_v48  ;;  %v3661_v47 = vmul.f32 %v7340_v14, %v3490_v45 }
 0x37c   : > { %v3530_v56 = vsel %vm7009_vm6, %v3519_v50, 0.0  ;;  %v3543_v38 = vsel %vm6998_vm1, %v3533_v1, 0.0  ;;  %v3569_v6 = vsel %vm6799_vm14, %v3519_v50, 0.0  ;;  %v3550_v43 = vsel %vm8123_vm13, %v3521_v10, %v3549_v28  ;;  %vm8125_vm14 = vmmov %vm8119_vm2 }
 0x37d   : > { %v3600_v40 = vmul.f32 %v7279_v5, %v3530_v56  ;;  %v3671_v46 = vmul.f32 %v7354_v13, %v3569_v6  ;;  %v3560_v32 = vsel %vm8124_vm15, %v3534_v55, %v3559_v2  ;;  %v3612_v53 = vmul.f32 %v7284_v58, %v3543_v38  ;;  %v4846_v6 = vld [vmem:[%s7543_s11] sm:$0xff]  }
 0x37e   : > { %v3504_v20 = vrot.slane %v3488_v19, 7  ;;  %v3520_v41 = vrot.slane %v3488_v19, 1  ;;  %v3589_v16 = vmul.f32 %v7253_v35, %v3488_v19  ;;  %v3660_v26 = vmul.f32 %v7340_v14, %v3488_v19 }
 0x37f   : > { %v3604_v57 = vadd.f32 %v3600_v40, %v7313_v15  ;;  %v3675_v42 = vadd.f32 %v3671_v46, %v3663_v21  ;;  %v4040_v40 = vld [vmem:[%s7542_s10] ss:$0 sm:$0xff] }
 0x380   : > { %v3505_v25 = vsel %vm8125_vm14, %v3503_v60, %v3504_v20  ;;  %v3522_v61 = vsel %vm8126_vm12, %v3520_v41, %v3521_v10  ;;  %v3535_v34 = vsel %vm8127_vm10, %v3504_v20, %v3534_v55  ;;  %v3548_v24 = vsel %vm8128_vm0, %v3518_v8, %v3520_v41  ;;  %v4847_v20 = vld [vmem:[%s7546_s14] sm:$0xff]  }
 0x381   : > { %v3616_v23 = vadd.f32 %v3612_v53, %v3604_v57  ;;  %3680 = vst.msk [vmem:[#allocation3 + $0x8] sm:$0xff] %vm3678_vm11, %v3675_v42  ;;  %v3511_v15 = vsel %vm7123_vm9, %v3505_v25, 0.0  ;;  %v3531_v62 = vsel %vm7141_vm5, %v3522_v61, 0.0  ;;  %v3557_v63 = vsel %vm7009_vm6, %v3548_v24, 0.0  ;;  %v4047_v24 = vld [vmem:[%s7544_s12 + $0x1] ss:$0 sm:$0xff] }
 0x382   : > { %v3564_v4 = vsel %vm6998_vm1, %v3505_v25, 0.0  ;;  %v3581_v27 = vmul.f32 %v7248_v3, %v3511_v15  ;;  %v3544_v21 = vsel %vm7123_vm9, %v3535_v34, 0.0  ;;  %v3636_v17 = vmul.f32 %v7318_v59, %v3557_v63  ;;  %vm8129_vm1 = vmmov %vm8128_vm0  ;;  %v4850_v25 = vld [vmem:[%s7546_s14 + $0x18] sm:$0xff]  }
 0x383   : > { %v3628_v51 = vadd.f32 %v3624_v37, %v3616_v23  ;;  %v3601_v30 = vmul.f32 %v7279_v5, %v3531_v62  ;;  %v3648_v31 = vmul.f32 %v7326_v39, %v3564_v4  ;;  %v3570_v12 = vsel %vm7009_vm6, %v3522_v61, 0.0  ;;  %v4848_v23 = vld [vmem:[%s7546_s14 + $0x8] sm:$0xff]   ;;  %v4849_v37 = vld [vmem:[%s7546_s14 + $0x10] sm:$0xff]   ;;  %v4044_v61 = vld [vmem:[%s7544_s12] ss:$0 sm:$0xff] }
 0x384   : > { %v3593_v36 = vadd.f32 %v3589_v16, %v3581_v27  ;;  %v3613_v49 = vmul.f32 %v7284_v58, %v3544_v21  ;;  %v3558_v3 = vsel %vm7141_vm5, %v3550_v43, 0.0  ;;  %v3565_v5 = vsel %vm7123_vm9, %v3560_v32, 0.0  ;;  %v3841_v16 = vld [vmem:[%s7545_s13] sm:$0xff] }
 0x385   : > { %v3640_v9 = vadd.f32 %v3636_v17, %v3628_v51  ;;  %v3672_v22 = vmul.f32 %v7354_v13, %v3570_v12  ;;  %v3567_v52 = vsel %vm8129_vm1, %v3549_v28, 0.0  ;;  %v3637_v60 = vmul.f32 %v7318_v59, %v3558_v3  ;;  %v3842_v17 = vld [vmem:[%s7545_s13 + $0x8] sm:$0xff] }
 0x386   : > { %v3605_v0 = vadd.f32 %v3601_v30, %v3593_v36  ;;  %v3649_v10 = vmul.f32 %v7326_v39, %v3565_v5  ;;  %v3571_v2 = vsel %vm7141_vm5, %v3567_v52, 0.0  ;;  %v4038_v39 = vld [vmem:[%s7540_s8] ss:$0 sm:$0xff] }
 0x387   : > { %v3652_v35 = vadd.f32 %v3648_v31, %v3640_v9  ;;  %v3673_v18 = vmul.f32 %v7354_v13, %v3571_v2 }
 0x388   : > { %v3617_v29 = vadd.f32 %v3613_v49, %v3605_v0  ;;  %v3683_v59 = vld [vmem:[#allocation3] ss:$2 sm:$0xff] }
 0x389   : > { %v3664_v44 = vadd.f32 %v3660_v26, %v3652_v35  ;;  %v3691_v28 = vadd.f32 %v4038_v39, %v3683_v59 }
 0x38a   : > { %v3629_v58 = vadd.f32 %v3625_v7, %v3617_v29 }
 0x38b   : > { %v3676_v8 = vadd.f32 %v3672_v22, %v3664_v44  ;;  %v3700_v14 = vmul.f32 %v4039_v33, %v3691_v28  ;;  %vm3693_vm6 = vcmp.ge.f32.partialorder %v3691_v28, 0.0  ;;  %v3930_v22 = vld [vmem:[%s7547_s15] sm:$0x1] }
 0x38c   : > { %v3641_v55 = vadd.f32 %v3637_v60, %v3629_v58 }
 0x38d   : > { %3681 = vst.msk [vmem:[#allocation3 + $0x10] sm:$0xff] %vm3678_vm11, %v3676_v8  ;;  %v3702_v45 = vsel %vm3693_vm6, %v3691_v28, %v3700_v14 }
 0x38e   : > { %v3653_v11 = vadd.f32 %v3649_v10, %v3641_v55 }
 0x390   : > { %v3665_v50 = vadd.f32 %v3661_v47, %v3653_v11 }
 0x392   : > { %v3677_v1 = vadd.f32 %v3673_v18, %v3665_v50 }
 0x394   : > { %3682 = vst.msk [vmem:[#allocation3 + $0x18] sm:$0xff] %vm3678_vm11, %v3677_v1 }
 0x39b   : > { %v3685_v48 = vld [vmem:[#allocation3 + $0x10] ss:$2 sm:$0xff] }
 0x39c   : > { %v3692_v56 = vadd.f32 %v4038_v39, %v3685_v48 }
 0x39e   : > { %vm3694_vm9 = vcmp.ge.f32.partialorder %v3692_v56, 0.0  ;;  %v3701_v13 = vmul.f32 %v4039_v33, %v3692_v56 }
 0x3a0   : > { %v3703_v38 = vsel %vm3694_vm9, %v3692_v56, %v3701_v13 }
 0x3a1   : > { %v3704_v43 = vpack.c.bf16 %v3703_v38, %v3702_v45 }
 0x3a3   : > { %4141 = vmatmul.mubr.msk.bf16.vlgmr.msra.gmra.mrb[12].mxu1 %vm3678_vm11, %v3704_v43 }
 0x3a4   : > { %4145 = vmatpush3.bf16.msra.mxu1 %v4846_v6  ;;  %4146 = vmatprep.mubr.msk.bf16.mxu1 %vm4925_vm8, %v7860_v54 }
 0x3a5   : > { %4150 = vmatprep.subr.bf16.mxu1 %v7860_v54 }
 0x476   : > { %v3765_v46 = vpop.f32.mrb[12].mxu1 }
 0x477   : > { %v4142_v32 = vpop.f32.mrb[13].mxu1  ;;  %v3766_v57 = vadd.f32 %v4040_v40, %v3765_v46 }
 0x478   : > { %v3768_v19 = vpop.f32.mrb[14].mxu1 }
 0x479   : > { %v3769_v53 = vadd.f32 %v4040_v40, %v3768_v19  ;;  %v4143_v42 = vpop.f32.mrb[15].mxu1 }
 0x47b   : > { %v3772_v41 = vpack.c.bf16 %v3769_v53, %v3766_v57 }
 0x47d   : > { %4147 = vmatmul.mubr.msk.bf16.vlgmr.msra.gmra.mrb[16].mxu1 %vm2860_vm4, %v3772_v41 }
 0x47e   : > { %4151 = vmatpush3.bf16.msra.mxu1 %v4847_v20  ;;  %4158 = vmatprep.mubr.msk.bf16.mxu1 %vm4925_vm8, %v7860_v54  ;;  %vm3878_vm8 = vcmask 523264  }
 0x47f   : > { %4152 = vmatprep.subr.bf16.mxu1 %v7860_v54 }
 0x482   : > { %4153 = vmatpush3.bf16.msra.mxu1 %v4848_v23 }
 0x483   : > { %4154 = vmatprep.subr.bf16.mxu1 %v7860_v54 }
 0x486   : > { %4155 = vmatpush3.bf16.msra.mxu1 %v4849_v37 }
 0x487   : > { %4156 = vmatprep.subr.bf16.mxu1 %v7860_v54 }
 0x48a   : > { %4157 = vmatpush3.bf16.msra.mxu1 %v4850_v25 }
 0x550   : > { %v3823_v34 = vpop.f32.mrb[16].mxu1 }
 0x551   : > { %v3824_v51 = vadd.f32 %v4044_v61, %v3823_v34  ;;  %v4148_v15 = vpop.f32.mrb[17].mxu1 }
 0x552   : > { %v3826_v62 = vpop.f32.mrb[18].mxu1 }
 0x553   : > { %vm3830_vm4 = vcmp.ge.f32.partialorder %v3824_v51, 0.0  ;;  %v3837_v63 = vmul.f32 %v4047_v24, %v3824_v51  ;;  %v3827_v54 = vadd.f32 %v4044_v61, %v3826_v62  ;;  %v4149_v4 = vpop.f32.mrb[19].mxu1 }
 0x555   : > { %v3839_v27 = vsel %vm3830_vm4, %v3824_v51, %v3837_v63  ;;  %vm3831_vm5 = vcmp.ge.f32.partialorder %v3827_v54, 0.0  ;;  %v3838_v21 = vmul.f32 %v4047_v24, %v3827_v54 }
 0x556   : > { %v3843_v30 = vmul.f32 %v3841_v16, %v3839_v27 }
 0x557   : > { %v3840_v36 = vsel %vm3831_vm5, %v3827_v54, %v3838_v21 }
 0x558   : > { %v3844_v9 = vmul.f32 %v3842_v17, %v3840_v36 }
 0x55a   : > { %v3845_v31 = vpack.c.bf16 %v3844_v9, %v3843_v30 }
 0x55c   : > { %4159 = vmatmul.mubr.msk.bf16.vlgmr.msra.gmra.mrb[20].mxu1 %vm3878_vm8, %v3845_v31 }
 0x62f   : > { %v3916_v12 = vpop.f32.mrb[20].mxu1 }
 0x630   : > { %v4160_v0 = vpop.f32.mrb[21].mxu1 }
 0x631   : > { %v3919_v49 = vpop.f32.mrb[22].mxu1 }
 0x632   : > { %v3923_v3 = vadd.f32 %v3919_v49, %v3916_v12  ;;  %v4161_v35 = vpop.f32.mrb[23].mxu1 }
 0x634   : > { %v3924_v26 = vrot.slane %v3923_v3, 4 }
 0x636   : > { %v3925_v7 = vadd.f32 %v3924_v26, %v3923_v3 }
 0x638   : > { %v3926_v29 = vrot.slane %v3925_v7, 2 }
 0x63a   : > { %v3927_v5 = vadd.f32 %v3926_v29, %v3925_v7 }
 0x63c   : > { %v3928_v44 = vrot.slane %v3927_v5, 1 }
 0x63e   : > { %v3929_v52 = vadd.f32 %v3928_v44, %v3927_v5 }
 0x640   : > { %v3931_v60 = vadd.f32 %v3930_v22, %v3929_v52 }
 0x642   : > { %3932 = vst [vmem:[%s513_s1] sm:$0x1] %v3931_v60 }
 0x643   : > { %4864 = shalt.err (!%p4861_p3)
}
 0x644   : > { %s4865_s26 = scalar_lea.hbm %s7490_s19, 16  ;;  %s4869_s29 = scalar_lea.hbm %s7548_s16, 32 }
 0x645   : > { %p4866_p4 = scmp.ne.s32.totalorder %s7490_s19, %s4865_s26  ;;  %p4870_p9 = scmp.lt.u32.totalorder %s7490_s19, %s7548_s16 }
 0x646   : > { %p4871_p10 = scmp.lt.u32.totalorder %s4869_s29, %s4865_s26  ;;  %p4873_p12 = scmp.lt.u32.totalorder %s4865_s26, %s7490_s19 }
 0x647   : > { %p4867_p7 = pnand %p4866_p4, %p5050_p5 }
 0x648   : > { %p4872_p11 = por %p4871_p10, %p4870_p9 }
 0x649   : > { %p4868_p8 = pneg %p4867_p7 }
 0x64a   : > { %p4874_p13 = por %p4873_p12, %p4872_p11 }
 0x64c   : > { %p4875_p0 = pnand %p4874_p13, %p4868_p8 }
 0x64e   : > { %4878 = shalt.err (!%p4875_p0)
}
 0x64f   : > { %4166 = dma.vmem_to_hbm [thread:$0]  (%p5050_p5), %s7492_s30, 16, %s7490_s19, %s3934_s2  }
 0x650 PF: > { %p4172_p1 = scmp.ge.s32.totalorder %s4913_s24, 2  ;;  %s3958_s3 = sand.u32 1, %s4901_s21  }
 0x651   : > { %s3959_s20 = scalar_lea.sflag [#allocation5], %s3958_s3 }
 0x652   : > { %p4169_p2 = pnand %p4172_p1, %p5054_p6 }
 0x654   : > { %4896 = dma.done.wait (!%p4169_p2), %s3959_s20, 16  }
 0x655   : > { %4898 = vsyncadd (!%p4169_p2), %s3959_s20, 4294967280  ;;  %s8130_s23 = sld [smem:[#allocation7_spill]]  ;;  %s8131_s26 = sld [smem:[#allocation8_spill]] }
 0x656   : > { %p26_p3 = scmp.ge.s32.totalorder %s5037_s27, 4   ;;  %s8132_s21 = smov %s4905_s22 }
 0x657   : > { %s8135_s24 = smov %s5037_s27 }
 0x658   :  { %28 = sbr.rel (!%p26_p3) target bundleno = 8 (0x8), region = 127 }
 0x65b   : > { %s8133_s22 = smov %s8130_s23  ;;  %s8134_s23 = smov %s8131_s26 }
 0x65f   :  { %3963 = vsyncpa [#allocation5], 1 }
 0x660   :  { %3965 = vsyncpa [#allocation5 + $0x1], 1 }

</bundles_post_ra>
